<compile_context>
chip_gen: v5e
topology: v5e:2x2
jax: 0.10.0
libtpu: 0.0.40
codegen_flags: <defaults>
</compile_context>

<pallas_src>
import jax
import jax.numpy as jnp
from jax.experimental import pallas as pl
from jax.experimental.pallas import tpu as pltpu

LANE = 128
BF16 = jnp.bfloat16
F32 = jnp.float32


def _round_up(x, m):
    return (x + m - 1) // m * m


def _vmem_limit(*buf_bytes):
    # 2x for double buffering + headroom; cap well under v7x's 64 MiB physical
    # VMEM (v5e/v6e have 128 MiB physical, 16/32 MiB default scoped limits).
    need = 2 * int(sum(buf_bytes))
    return int(min(max(need, 4 << 20), 32 << 20))


def _pick_tile_m(m, cap=256):
    # TM multiple of 16 (bf16 sublane packing on v5e), capped to bound VMEM use.
    return cap if m > cap else _round_up(max(m, 16), 16)


# ----------------------------- Pallas kernels --------------------------------
def _matmul_kernel(a_ref, w_ref, o_ref):
    # bf16 x bf16 -> f32 on the MXU; OC padded to 128 => unmasked 128-lane vst.
    o_ref[...] = jnp.dot(a_ref[...], w_ref[...], preferred_element_type=jnp.float32)


def matmul_lane_dense(a_bf16, w_bf16, *, tm_cap=256):
    """a: [M, K] bf16, w: [K, Np] bf16 with Np % 128 == 0. Returns [M, Np] f32."""
    M, K = a_bf16.shape
    K2, Np = w_bf16.shape
    assert K == K2 and Np % LANE == 0
    TM = _pick_tile_m(M, tm_cap)
    Mp = _round_up(M, TM)
    if Mp != M:
        a_bf16 = jnp.pad(a_bf16, ((0, Mp - M), (0, 0)))
    out = pl.pallas_call(
        _matmul_kernel,
        out_shape=jax.ShapeDtypeStruct((Mp, Np), F32),
        grid=(Mp // TM,),
        in_specs=[
            pl.BlockSpec((TM, K), lambda i: (i, 0)),     # M-tiled activations
            pl.BlockSpec((K, Np), lambda i: (0, 0)),     # weight resident in VMEM
        ],
        out_specs=pl.BlockSpec((TM, Np), lambda i: (i, 0)),
        compiler_params=pltpu.CompilerParams(
            dimension_semantics=("parallel",),           # shard M tiles (v7x megacore)
            vmem_limit_bytes=_vmem_limit(TM * K * 2, K * Np * 2, TM * Np * 4),
        ),
        cost_estimate=pl.CostEstimate(
            flops=2 * Mp * K * Np,
            transcendentals=0,
            bytes_accessed=Mp * K * 2 + K * Np * 2 + Mp * Np * 4,
        ),
    )(a_bf16, w_bf16)
    return out[:M] if Mp != M else out


def _mlp_head_kernel(x_ref, w1_ref, b1_ref, w2_ref, b2_ref, o_ref):
    # Fused Linear(1152,100) -> ReLU -> Linear(100,10) -> Softmax.
    # Hidden activations never leave VMEM/vregs; padded logit lanes carry a
    # -1e30 bias so exp() underflows to exactly 0 and the softmax matches the
    # 10-class softmax bit-for-bit in f32.
    h = jnp.dot(x_ref[...], w1_ref[...], preferred_element_type=jnp.float32)
    h = jnp.maximum(h + b1_ref[...], 0.0)
    logits = jnp.dot(h.astype(jnp.bfloat16), w2_ref[...],
                     preferred_element_type=jnp.float32) + b2_ref[...]
    m = jnp.max(logits, axis=-1, keepdims=True)
    e = jnp.exp(logits - m)
    o_ref[...] = e / jnp.sum(e, axis=-1, keepdims=True)


def mlp_head(x_bf16, w1, b1, w2, b2, *, tm_cap=256):
    """x: [M,K] bf16; w1: [K,H] bf16; b1: [1,H] f32; w2: [H,O] bf16;
    b2: [1,O] f32 (padded lanes hold -1e30). Returns softmax probs [M,O] f32."""
    M, K = x_bf16.shape
    _, H = w1.shape
    _, O = w2.shape
    TM = _pick_tile_m(M, tm_cap)
    Mp = _round_up(M, TM)
    if Mp != M:
        x_bf16 = jnp.pad(x_bf16, ((0, Mp - M), (0, 0)))
    out = pl.pallas_call(
        _mlp_head_kernel,
        out_shape=jax.ShapeDtypeStruct((Mp, O), F32),
        grid=(Mp // TM,),
        in_specs=[
            pl.BlockSpec((TM, K), lambda i: (i, 0)),
            pl.BlockSpec((K, H), lambda i: (0, 0)),
            pl.BlockSpec((1, H), lambda i: (0, 0)),
            pl.BlockSpec((H, O), lambda i: (0, 0)),
            pl.BlockSpec((1, O), lambda i: (0, 0)),
        ],
        out_specs=pl.BlockSpec((TM, O), lambda i: (i, 0)),
        compiler_params=pltpu.CompilerParams(
            dimension_semantics=("parallel",),
            vmem_limit_bytes=_vmem_limit(
                TM * K * 2, K * H * 2, H * O * 2, TM * H * 4, TM * O * 4),
        ),
        cost_estimate=pl.CostEstimate(
            flops=2 * Mp * (K * H + H * O),
            transcendentals=Mp * O,
            bytes_accessed=Mp * K * 2 + K * H * 2 + H * O * 2 + Mp * O * 4,
        ),
    )(x_bf16, w1, b1, w2, b2)
    return out[:M] if Mp != M else out


# ------------------------------- JAX glue -------------------------------------
def _im2col(x_nhwc, kh, kw, pad):
    """[N,H,W,C] -> bf16 [N*OH*OW, kh*kw*C], column order (kh, kw, C)."""
    x = x_nhwc.astype(BF16)
    if pad:
        x = jnp.pad(x, ((0, 0), (pad, pad), (pad, pad), (0, 0)))
    N, H, W, C = x.shape
    OH, OW = H - kh + 1, W - kw + 1
    patches = [x[:, i:i + OH, j:j + OW, :] for i in range(kh) for j in range(kw)]
    cols = jnp.stack(patches, axis=3).reshape(N * OH * OW, kh * kw * C)
    return cols, (N, OH, OW)


def conv2d(x_nhwc, w_mat, kh, kw, oc, pad):
    """Stride-1, bias-free Conv2d via im2col + lane-dense Pallas matmul (NHWC)."""
    cols, (N, OH, OW) = _im2col(x_nhwc, kh, kw, pad)
    out = matmul_lane_dense(cols, w_mat)              # [M, OC_padded] f32
    return out[:, :oc].reshape(N, OH, OW, oc)


def batchnorm2d(x_nhwc, gamma, beta, eps=1e-5):
    # Training-mode BatchNorm2d (batch statistics, biased variance) as PyTorch.
    mean = jnp.mean(x_nhwc, axis=(0, 1, 2), keepdims=True)
    var = jnp.mean(jnp.square(x_nhwc - mean), axis=(0, 1, 2), keepdims=True)
    return (x_nhwc - mean) * jax.lax.rsqrt(var + eps) * gamma + beta


def maxpool2x2(x_nhwc):
    N, H, W, C = x_nhwc.shape
    H2, W2 = (H // 2) * 2, (W // 2) * 2
    x = x_nhwc[:, :H2, :W2, :].reshape(N, H2 // 2, 2, W2 // 2, 2, C)
    return jnp.max(x, axis=(2, 4))


def relu(x):
    return jnp.maximum(x, 0.0)


# ------------------------------ parameters ------------------------------------
_CONV_CFG = {
    "c1": dict(kh=3, kw=3, ic=1, oc=32, pad=0),
    "c2": dict(kh=3, kw=3, ic=32, oc=64, pad=0),
    "c3a": dict(kh=4, kw=4, ic=64, oc=64, pad=1),
    "c3b": dict(kh=2, kw=2, ic=64, oc=64, pad=1),
    "c4": dict(kh=3, kw=3, ic=64, oc=128, pad=0),
}


def init_params():
    """Weights stored once in kernel-ready layout:
       * conv weights as [kh*kw*ic, round_up(oc,128)] bf16 matrices (row order
         (kh,kw,C), matching the im2col column order),
       * linear weights pre-transposed and zero-padded to 128 lanes, bf16,
       * conv biases omitted: training-mode BatchNorm cancels them exactly.
    """
    key = jax.random.PRNGKey(42)
    ks = jax.random.split(key, 16)

    def conv_w(k, kh, kw, ic, oc):
        w_oihw = jax.random.normal(k, (oc, ic, kh, kw), F32) * 0.05  # PyTorch OIHW
        ocp = _round_up(oc, LANE)
        wm = jnp.transpose(w_oihw, (2, 3, 1, 0)).reshape(kh * kw * ic, oc)
        return jnp.pad(wm, ((0, 0), (0, ocp - oc))).astype(BF16)

    p = {}
    for i, (name, cfg) in enumerate(_CONV_CFG.items()):
        p[name + "_w"] = conv_w(ks[i], cfg["kh"], cfg["kw"], cfg["ic"], cfg["oc"])
        p[name + "_g"] = jnp.ones((cfg["oc"],), F32)     # BN gamma
        p[name + "_b"] = jnp.zeros((cfg["oc"],), F32)    # BN beta

    # Linear head: 1152 -> 100 -> 10.
    l1_w = jax.random.normal(ks[10], (100, 1152), F32) * 0.05
    l1_b = jax.random.normal(ks[11], (100,), F32) * 0.05
    l2_w = jax.random.normal(ks[12], (10, 100), F32) * 0.05
    l2_b = jax.random.normal(ks[13], (10,), F32) * 0.05
    H = _round_up(100, LANE)   # 128
    O = _round_up(10, LANE)    # 128
    p["l1_w"] = jnp.pad(l1_w.T, ((0, 0), (0, H - 100))).astype(BF16)       # [1152,128]
    p["l1_b"] = jnp.pad(l1_b, (0, H - 100)).reshape(1, H).astype(F32)      # pad bias=0
    p["l2_w"] = jnp.pad(l2_w.T, ((0, H - 100), (0, O - 10))).astype(BF16)  # [128,128]
    p["l2_b"] = jnp.concatenate(
        [l2_b, jnp.full((O - 10,), -1e30, F32)]).reshape(1, O)             # mask pads
    return p


# ------------------------------ forward pass -----------------------------------
@jax.jit
def convnet_forward(x_nchw, params):
    p = params
    x = jnp.transpose(x_nchw, (0, 2, 3, 1)).astype(F32)   # NCHW -> NHWC

    def conv_bn(x, name):
        cfg = _CONV_CFG[name]
        y = conv2d(x, p[name + "_w"], cfg["kh"], cfg["kw"], cfg["oc"], cfg["pad"])
        return batchnorm2d(y, p[name + "_g"], p[name + "_b"])

    # conv_layer1: Conv -> BN -> MaxPool -> ReLU       (28 -> 26 -> 13)
    x = relu(maxpool2x2(conv_bn(x, "c1")))
    # conv_layer2: Conv -> BN -> ReLU                  (13 -> 11)
    x = relu(conv_bn(x, "c2"))
    # conv_layer3: Conv(4x4,p1)->BN->ReLU->Conv(2x2,p1)->BN->MaxPool->ReLU
    x = relu(conv_bn(x, "c3a"))                        # 11 -> 10
    x = relu(maxpool2x2(conv_bn(x, "c3b")))            # 10 -> 11 -> 5
    # conv_layer4: Conv -> BN -> ReLU                  (5 -> 3)
    x = relu(conv_bn(x, "c4"))

    # linear_layer (single fused Pallas kernel): Flatten (PyTorch NCHW order)
    # -> Linear(1152,100) -> ReLU -> Linear(100,10) -> Softmax(dim=1)
    N = x.shape[0]
    feats = jnp.transpose(x, (0, 3, 1, 2)).reshape(N, -1).astype(BF16)    # [N, 1152]
    probs = mlp_head(feats, p["l1_w"], p["l1_b"], p["l2_w"], p["l2_b"])   # [N, 128]
    return probs[:, :10]


# ---------------------------------- main ----------------------------------------
if __name__ == "__main__":
    key = jax.random.PRNGKey(0)
    # Input must be 28x28 so the flattened features equal 1152 (= 128*3*3),
    # as required by the Linear(1152, 100) layer.
    x = jax.random.normal(key, (2, 1, 28, 28), dtype=jnp.float32)   # NCHW
    params = init_params()

    out = jax.block_until_ready(convnet_forward(x, params))

    assert out.shape == (2, 10), out.shape
    assert bool(jnp.allclose(jnp.sum(out, axis=1), 1.0, atol=1e-4))  # softmax rows
    assert bool(jnp.all(out >= 0.0))
    print("KERNEL_OK")
</pallas_src>

<mosaic_0001>
module attributes {stable_mosaic.version = 11 : i64} {
  func.func @_matmul_kernel(%arg0: i32, %arg1: memref<256x9xbf16, #tpu.memory_space<vmem>>, %arg2: memref<9x128xbf16, #tpu.memory_space<vmem>>, %arg3: memref<256x128xf32, #tpu.memory_space<vmem>>) attributes {dimension_semantics = [#tpu.dimension_semantics<parallel>], iteration_bounds = array<i64: 6>, scalar_prefetch = 0 : i64, scratch_operands = 0 : i64, tpu.core_type = #tpu.core_type<tc>, window_params = [{transform_indices = @transform_0, window_bounds = array<i64: 256, 9>}, {pipeline_mode = #tpu.pipeline_mode<synchronous>, transform_indices = @transform_1, window_bounds = array<i64: 9, 128>}, {transform_indices = @transform_2, window_bounds = array<i64: 256, 128>}]} {
    %c0 = arith.constant 0 : index
    %c0_0 = arith.constant 0 : index
    %0 = vector.load %arg1[%c0, %c0_0] : memref<256x9xbf16, #tpu.memory_space<vmem>>, vector<256x9xbf16>
    %c0_1 = arith.constant 0 : index
    %c0_2 = arith.constant 0 : index
    %1 = vector.load %arg2[%c0_1, %c0_2] : memref<9x128xbf16, #tpu.memory_space<vmem>>, vector<9x128xbf16>
    %cst = arith.constant dense<0.000000e+00> : vector<256x128xf32>
    %2 = tpu.matmul %0, %1, %cst {dimension_numbers = #tpu.dot_dimension_numbers<[1], [0], [0], [1], [0, 0, 1, 1], [], []>} : vector<256x9xbf16>, vector<9x128xbf16>, vector<256x128xf32> -> vector<256x128xf32>
    %c0_3 = arith.constant 0 : index
    %c0_4 = arith.constant 0 : index
    %3 = vector.load %arg3[%c0_3, %c0_4] : memref<256x128xf32, #tpu.memory_space<vmem>>, vector<256x128xf32>
    tpu.vector_store %arg3[%c0_3, %c0_4], %2 {strides = array<i32>} : memref<256x128xf32, #tpu.memory_space<vmem>>, vector<256x128xf32>,
    return
  }
  func.func @transform_0(%arg0: i32) -> (i32, i32) {
    %c0_i32 = arith.constant 0 : i32
    %c0_i32_0 = arith.constant 0 : i32
    return %arg0, %c0_i32 : i32, i32
  }
  func.func @transform_1(%arg0: i32) -> (i32, i32) {
    %c0_i32 = arith.constant 0 : i32
    %c0_i32_0 = arith.constant 0 : i32
    %c0_i32_1 = arith.constant 0 : i32
    return %c0_i32, %c0_i32_0 : i32, i32
  }
  func.func @transform_2(%arg0: i32) -> (i32, i32) {
    %c0_i32 = arith.constant 0 : i32
    %c0_i32_0 = arith.constant 0 : i32
    return %arg0, %c0_i32 : i32, i32
  }
}

module attributes {stable_mosaic.version = 11 : i64} {
  func.func @_matmul_kernel(%arg0: i32, %arg1: memref<256x288xbf16, #tpu.memory_space<vmem>>, %arg2: memref<288x128xbf16, #tpu.memory_space<vmem>>, %arg3: memref<256x128xf32, #tpu.memory_space<vmem>>) attributes {dimension_semantics = [#tpu.dimension_semantics<parallel>], iteration_bounds = array<i64: 1>, scalar_prefetch = 0 : i64, scratch_operands = 0 : i64, tpu.core_type = #tpu.core_type<tc>, window_params = [{transform_indices = @transform_0, window_bounds = array<i64: 256, 288>}, {pipeline_mode = #tpu.pipeline_mode<synchronous>, transform_indices = @transform_1, window_bounds = array<i64: 288, 128>}, {transform_indices = @transform_2, window_bounds = array<i64: 256, 128>}]} {
    %c0 = arith.constant 0 : index
    %c0_0 = arith.constant 0 : index
    %0 = vector.load %arg1[%c0, %c0_0] : memref<256x288xbf16, #tpu.memory_space<vmem>>, vector<256x288xbf16>
    %c0_1 = arith.constant 0 : index
    %c0_2 = arith.constant 0 : index
    %1 = vector.load %arg2[%c0_1, %c0_2] : memref<288x128xbf16, #tpu.memory_space<vmem>>, vector<288x128xbf16>
    %cst = arith.constant dense<0.000000e+00> : vector<256x128xf32>
    %2 = tpu.matmul %0, %1, %cst {dimension_numbers = #tpu.dot_dimension_numbers<[1], [0], [0], [1], [0, 0, 1, 1], [], []>} : vector<256x288xbf16>, vector<288x128xbf16>, vector<256x128xf32> -> vector<256x128xf32>
    %c0_3 = arith.constant 0 : index
    %c0_4 = arith.constant 0 : index
    %3 = vector.load %arg3[%c0_3, %c0_4] : memref<256x128xf32, #tpu.memory_space<vmem>>, vector<256x128xf32>
    tpu.vector_store %arg3[%c0_3, %c0_4], %2 {strides = array<i32>} : memref<256x128xf32, #tpu.memory_space<vmem>>, vector<256x128xf32>,
    return
  }
  func.func @transform_0(%arg0: i32) -> (i32, i32) {
    %c0_i32 = arith.constant 0 : i32
    %c0_i32_0 = arith.constant 0 : i32
    return %arg0, %c0_i32 : i32, i32
  }
  func.func @transform_1(%arg0: i32) -> (i32, i32) {
    %c0_i32 = arith.constant 0 : i32
    %c0_i32_0 = arith.constant 0 : i32
    %c0_i32_1 = arith.constant 0 : i32
    return %c0_i32, %c0_i32_0 : i32, i32
  }
  func.func @transform_2(%arg0: i32) -> (i32, i32) {
    %c0_i32 = arith.constant 0 : i32
    %c0_i32_0 = arith.constant 0 : i32
    return %arg0, %c0_i32 : i32, i32
  }
}

module attributes {stable_mosaic.version = 11 : i64} {
  func.func @_matmul_kernel(%arg0: i32, %arg1: memref<208x1024xbf16, #tpu.memory_space<vmem>>, %arg2: memref<1024x128xbf16, #tpu.memory_space<vmem>>, %arg3: memref<208x128xf32, #tpu.memory_space<vmem>>) attributes {dimension_semantics = [#tpu.dimension_semantics<parallel>], iteration_bounds = array<i64: 1>, scalar_prefetch = 0 : i64, scratch_operands = 0 : i64, tpu.core_type = #tpu.core_type<tc>, window_params = [{transform_indices = @transform_0, window_bounds = array<i64: 208, 1024>}, {pipeline_mode = #tpu.pipeline_mode<synchronous>, transform_indices = @transform_1, window_bounds = array<i64: 1024, 128>}, {transform_indices = @transform_2, window_bounds = array<i64: 208, 128>}]} {
    %c0 = arith.constant 0 : index
    %c0_0 = arith.constant 0 : index
    %0 = vector.load %arg1[%c0, %c0_0] : memref<208x1024xbf16, #tpu.memory_space<vmem>>, vector<208x1024xbf16>
    %c0_1 = arith.constant 0 : index
    %c0_2 = arith.constant 0 : index
    %1 = vector.load %arg2[%c0_1, %c0_2] : memref<1024x128xbf16, #tpu.memory_space<vmem>>, vector<1024x128xbf16>
    %cst = arith.constant dense<0.000000e+00> : vector<208x128xf32>
    %2 = tpu.matmul %0, %1, %cst {dimension_numbers = #tpu.dot_dimension_numbers<[1], [0], [0], [1], [0, 0, 1, 1], [], []>} : vector<208x1024xbf16>, vector<1024x128xbf16>, vector<208x128xf32> -> vector<208x128xf32>
    %c0_3 = arith.constant 0 : index
    %c0_4 = arith.constant 0 : index
    %3 = vector.load %arg3[%c0_3, %c0_4] : memref<208x128xf32, #tpu.memory_space<vmem>>, vector<208x128xf32>
    tpu.vector_store %arg3[%c0_3, %c0_4], %2 {strides = array<i32>} : memref<208x128xf32, #tpu.memory_space<vmem>>, vector<208x128xf32>,
    return
  }
  func.func @transform_0(%arg0: i32) -> (i32, i32) {
    %c0_i32 = arith.constant 0 : i32
    %c0_i32_0 = arith.constant 0 : i32
    return %arg0, %c0_i32 : i32, i32
  }
  func.func @transform_1(%arg0: i32) -> (i32, i32) {
    %c0_i32 = arith.constant 0 : i32
    %c0_i32_0 = arith.constant 0 : i32
    %c0_i32_1 = arith.constant 0 : i32
    return %c0_i32, %c0_i32_0 : i32, i32
  }
  func.func @transform_2(%arg0: i32) -> (i32, i32) {
    %c0_i32 = arith.constant 0 : i32
    %c0_i32_0 = arith.constant 0 : i32
    return %arg0, %c0_i32 : i32, i32
  }
}

module attributes {stable_mosaic.version = 11 : i64} {
  func.func @_matmul_kernel(%arg0: i32, %arg1: memref<256x256xbf16, #tpu.memory_space<vmem>>, %arg2: memref<256x128xbf16, #tpu.memory_space<vmem>>, %arg3: memref<256x128xf32, #tpu.memory_space<vmem>>) attributes {dimension_semantics = [#tpu.dimension_semantics<parallel>], iteration_bounds = array<i64: 1>, scalar_prefetch = 0 : i64, scratch_operands = 0 : i64, tpu.core_type = #tpu.core_type<tc>, window_params = [{transform_indices = @transform_0, window_bounds = array<i64: 256, 256>}, {pipeline_mode = #tpu.pipeline_mode<synchronous>, transform_indices = @transform_1, window_bounds = array<i64: 256, 128>}, {transform_indices = @transform_2, window_bounds = array<i64: 256, 128>}]} {
    %c0 = arith.constant 0 : index
    %c0_0 = arith.constant 0 : index
    %0 = vector.load %arg1[%c0, %c0_0] : memref<256x256xbf16, #tpu.memory_space<vmem>>, vector<256x256xbf16>
    %c0_1 = arith.constant 0 : index
    %c0_2 = arith.constant 0 : index
    %1 = vector.load %arg2[%c0_1, %c0_2] : memref<256x128xbf16, #tpu.memory_space<vmem>>, vector<256x128xbf16>
    %cst = arith.constant dense<0.000000e+00> : vector<256x128xf32>
    %2 = tpu.matmul %0, %1, %cst {dimension_numbers = #tpu.dot_dimension_numbers<[1], [0], [0], [1], [0, 0, 1, 1], [], []>} : vector<256x256xbf16>, vector<256x128xbf16>, vector<256x128xf32> -> vector<256x128xf32>
    %c0_3 = arith.constant 0 : index
    %c0_4 = arith.constant 0 : index
    %3 = vector.load %arg3[%c0_3, %c0_4] : memref<256x128xf32, #tpu.memory_space<vmem>>, vector<256x128xf32>
    tpu.vector_store %arg3[%c0_3, %c0_4], %2 {strides = array<i32>} : memref<256x128xf32, #tpu.memory_space<vmem>>, vector<256x128xf32>,
    return
  }
  func.func @transform_0(%arg0: i32) -> (i32, i32) {
    %c0_i32 = arith.constant 0 : i32
    %c0_i32_0 = arith.constant 0 : i32
    return %arg0, %c0_i32 : i32, i32
  }
  func.func @transform_1(%arg0: i32) -> (i32, i32) {
    %c0_i32 = arith.constant 0 : i32
    %c0_i32_0 = arith.constant 0 : i32
    %c0_i32_1 = arith.constant 0 : i32
    return %c0_i32, %c0_i32_0 : i32, i32
  }
  func.func @transform_2(%arg0: i32) -> (i32, i32) {
    %c0_i32 = arith.constant 0 : i32
    %c0_i32_0 = arith.constant 0 : i32
    return %arg0, %c0_i32 : i32, i32
  }
}

module attributes {stable_mosaic.version = 11 : i64} {
  func.func @_matmul_kernel(%arg0: i32, %arg1: memref<32x576xbf16, #tpu.memory_space<vmem>>, %arg2: memref<576x128xbf16, #tpu.memory_space<vmem>>, %arg3: memref<32x128xf32, #tpu.memory_space<vmem>>) attributes {dimension_semantics = [#tpu.dimension_semantics<parallel>], iteration_bounds = array<i64: 1>, scalar_prefetch = 0 : i64, scratch_operands = 0 : i64, tpu.core_type = #tpu.core_type<tc>, window_params = [{transform_indices = @transform_0, window_bounds = array<i64: 32, 576>}, {pipeline_mode = #tpu.pipeline_mode<synchronous>, transform_indices = @transform_1, window_bounds = array<i64: 576, 128>}, {transform_indices = @transform_2, window_bounds = array<i64: 32, 128>}]} {
    %c0 = arith.constant 0 : index
    %c0_0 = arith.constant 0 : index
    %0 = vector.load %arg1[%c0, %c0_0] : memref<32x576xbf16, #tpu.memory_space<vmem>>, vector<32x576xbf16>
    %c0_1 = arith.constant 0 : index
    %c0_2 = arith.constant 0 : index
    %1 = vector.load %arg2[%c0_1, %c0_2] : memref<576x128xbf16, #tpu.memory_space<vmem>>, vector<576x128xbf16>
    %cst = arith.constant dense<0.000000e+00> : vector<32x128xf32>
    %2 = tpu.matmul %0, %1, %cst {dimension_numbers = #tpu.dot_dimension_numbers<[1], [0], [0], [1], [0, 0, 1, 1], [], []>} : vector<32x576xbf16>, vector<576x128xbf16>, vector<32x128xf32> -> vector<32x128xf32>
    %c0_3 = arith.constant 0 : index
    %c0_4 = arith.constant 0 : index
    %3 = vector.load %arg3[%c0_3, %c0_4] : memref<32x128xf32, #tpu.memory_space<vmem>>, vector<32x128xf32>
    tpu.vector_store %arg3[%c0_3, %c0_4], %2 {strides = array<i32>} : memref<32x128xf32, #tpu.memory_space<vmem>>, vector<32x128xf32>,
    return
  }
  func.func @transform_0(%arg0: i32) -> (i32, i32) {
    %c0_i32 = arith.constant 0 : i32
    %c0_i32_0 = arith.constant 0 : i32
    return %arg0, %c0_i32 : i32, i32
  }
  func.func @transform_1(%arg0: i32) -> (i32, i32) {
    %c0_i32 = arith.constant 0 : i32
    %c0_i32_0 = arith.constant 0 : i32
    %c0_i32_1 = arith.constant 0 : i32
    return %c0_i32, %c0_i32_0 : i32, i32
  }
  func.func @transform_2(%arg0: i32) -> (i32, i32) {
    %c0_i32 = arith.constant 0 : i32
    %c0_i32_0 = arith.constant 0 : i32
    return %arg0, %c0_i32 : i32, i32
  }
}

module attributes {stable_mosaic.version = 11 : i64} {
  func.func @_mlp_head_kernel(%arg0: i32, %arg1: memref<16x1152xbf16, #tpu.memory_space<vmem>>, %arg2: memref<1152x128xbf16, #tpu.memory_space<vmem>>, %arg3: memref<1x128xf32, #tpu.memory_space<vmem>>, %arg4: memref<128x128xbf16, #tpu.memory_space<vmem>>, %arg5: memref<1x128xf32, #tpu.memory_space<vmem>>, %arg6: memref<16x128xf32, #tpu.memory_space<vmem>>) attributes {dimension_semantics = [#tpu.dimension_semantics<parallel>], iteration_bounds = array<i64: 1>, scalar_prefetch = 0 : i64, scratch_operands = 0 : i64, tpu.core_type = #tpu.core_type<tc>, window_params = [{transform_indices = @transform_0, window_bounds = array<i64: 16, 1152>}, {pipeline_mode = #tpu.pipeline_mode<synchronous>, transform_indices = @transform_1, window_bounds = array<i64: 1152, 128>}, {pipeline_mode = #tpu.pipeline_mode<synchronous>, transform_indices = @transform_2, window_bounds = array<i64: 1, 128>}, {pipeline_mode = #tpu.pipeline_mode<synchronous>, transform_indices = @transform_3, window_bounds = array<i64: 128, 128>}, {pipeline_mode = #tpu.pipeline_mode<synchronous>, transform_indices = @transform_4, window_bounds = array<i64: 1, 128>}, {transform_indices = @transform_5, window_bounds = array<i64: 16, 128>}]} {
    %c0 = arith.constant 0 : index
    %c0_0 = arith.constant 0 : index
    %0 = vector.load %arg1[%c0, %c0_0] : memref<16x1152xbf16, #tpu.memory_space<vmem>>, vector<16x1152xbf16>
    %c0_1 = arith.constant 0 : index
    %c0_2 = arith.constant 0 : index
    %1 = vector.load %arg2[%c0_1, %c0_2] : memref<1152x128xbf16, #tpu.memory_space<vmem>>, vector<1152x128xbf16>
    %cst = arith.constant dense<0.000000e+00> : vector<16x128xf32>
    %2 = tpu.matmul %0, %1, %cst {dimension_numbers = #tpu.dot_dimension_numbers<[1], [0], [0], [1], [0, 0, 1, 1], [], []>} : vector<16x1152xbf16>, vector<1152x128xbf16>, vector<16x128xf32> -> vector<16x128xf32>
    %c0_3 = arith.constant 0 : index
    %c0_4 = arith.constant 0 : index
    %3 = vector.load %arg3[%c0_3, %c0_4] : memref<1x128xf32, #tpu.memory_space<vmem>>, vector<1x128xf32>
    %4 = vector.broadcast %3 : vector<1x128xf32> to vector<16x128xf32>
    %5 = arith.addf %2, %4 : vector<16x128xf32>
    %cst_5 = arith.constant 0.000000e+00 : f32
    %6 = vector.broadcast %cst_5 : f32 to vector<16x128xf32>
    %7 = arith.maximumf %5, %6 : vector<16x128xf32>
    %8 = arith.truncf %7 : vector<16x128xf32> to vector<16x128xbf16>
    %c0_6 = arith.constant 0 : index
    %c0_7 = arith.constant 0 : index
    %9 = vector.load %arg4[%c0_6, %c0_7] : memref<128x128xbf16, #tpu.memory_space<vmem>>, vector<128x128xbf16>
    %cst_8 = arith.constant dense<0.000000e+00> : vector<16x128xf32>
    %10 = tpu.matmul %8, %9, %cst_8 {dimension_numbers = #tpu.dot_dimension_numbers<[1], [0], [0], [1], [0, 0, 1, 1], [], []>} : vector<16x128xbf16>, vector<128x128xbf16>, vector<16x128xf32> -> vector<16x128xf32>
    %c0_9 = arith.constant 0 : index
    %c0_10 = arith.constant 0 : index
    %11 = vector.load %arg5[%c0_9, %c0_10] : memref<1x128xf32, #tpu.memory_space<vmem>>, vector<1x128xf32>
    %12 = vector.broadcast %11 : vector<1x128xf32> to vector<16x128xf32>
    %13 = arith.addf %10, %12 : vector<16x128xf32>
    %cst_11 = arith.constant dense<0xFF800000> : vector<16xf32>
    %14 = vector.multi_reduction <maximumf>, %13, %cst_11 [1] : vector<16x128xf32> to vector<16xf32>
    %15 = vector.shape_cast %14 : vector<16xf32> to vector<16x1xf32>
    %16 = vector.broadcast %15 : vector<16x1xf32> to vector<16x128xf32>
    %17 = arith.subf %13, %16 : vector<16x128xf32>
    %18 = math.exp %17 : vector<16x128xf32>
    %cst_12 = arith.constant dense<0.000000e+00> : vector<16xf32>
    %19 = vector.multi_reduction <add>, %18, %cst_12 [1] : vector<16x128xf32> to vector<16xf32>
    %20 = vector.shape_cast %19 : vector<16xf32> to vector<16x1xf32>
    %21 = vector.broadcast %20 : vector<16x1xf32> to vector<16x128xf32>
    %22 = arith.divf %18, %21 : vector<16x128xf32>
    %c0_13 = arith.constant 0 : index
    %c0_14 = arith.constant 0 : index
    %23 = vector.load %arg6[%c0_13, %c0_14] : memref<16x128xf32, #tpu.memory_space<vmem>>, vector<16x128xf32>
    tpu.vector_store %arg6[%c0_13, %c0_14], %22 {strides = array<i32>} : memref<16x128xf32, #tpu.memory_space<vmem>>, vector<16x128xf32>,
    return
  }
  func.func @transform_0(%arg0: i32) -> (i32, i32) {
    %c0_i32 = arith.constant 0 : i32
    %c0_i32_0 = arith.constant 0 : i32
    return %arg0, %c0_i32 : i32, i32
  }
  func.func @transform_1(%arg0: i32) -> (i32, i32) {
    %c0_i32 = arith.constant 0 : i32
    %c0_i32_0 = arith.constant 0 : i32
    %c0_i32_1 = arith.constant 0 : i32
    return %c0_i32, %c0_i32_0 : i32, i32
  }
  func.func @transform_2(%arg0: i32) -> (i32, i32) {
    %c0_i32 = arith.constant 0 : i32
    %c0_i32_0 = arith.constant 0 : i32
    %c0_i32_1 = arith.constant 0 : i32
    return %c0_i32, %c0_i32_0 : i32, i32
  }
  func.func @transform_3(%arg0: i32) -> (i32, i32) {
    %c0_i32 = arith.constant 0 : i32
    %c0_i32_0 = arith.constant 0 : i32
    %c0_i32_1 = arith.constant 0 : i32
    return %c0_i32, %c0_i32_0 : i32, i32
  }
  func.func @transform_4(%arg0: i32) -> (i32, i32) {
    %c0_i32 = arith.constant 0 : i32
    %c0_i32_0 = arith.constant 0 : i32
    %c0_i32_1 = arith.constant 0 : i32
    return %c0_i32, %c0_i32_0 : i32, i32
  }
  func.func @transform_5(%arg0: i32) -> (i32, i32) {
    %c0_i32 = arith.constant 0 : i32
    %c0_i32_0 = arith.constant 0 : i32
    return %arg0, %c0_i32 : i32, i32
  }
}

</mosaic_0001>

<bundles_post_ra>
// kernel: convnet_forward.6
= control target key start
LH: loop header
LB: loop body
LE: loop exit
PB: predicated region body
PF: predicated region fallthrough
CT: control target
= control target key end

     0   :  { %s648_s9 = smov 0   ;;  %s725_s0 = inlined_call_operand.vmem [shape: bf16[1536,9], index: 0, kind: input, shape index: {}]   ;;  %s726_s1 = inlined_call_operand.vmem [shape: bf16[9,128], index: 1, kind: input, shape index: {}]   ;;  %s727_s2 = inlined_call_operand.vmem [shape: f32[1536,128], index: 2, kind: output, shape index: {}]  }
   0x1 LB: > { %s500_s10 = sadd.s32 4294967295, %s630_s9   ;;  %p504_p0 = scmp.ge.s32.totalorder %s630_s9, 1  ;;  %s630_s9 = sphi %s648_s9, %s12_s9  }
   0x2   : > { %p113_p1 = scmp.lt.s32.totalorder %s630_s9, 7 }
   0x4   : > { %p114_p2 = pnand %p504_p0, %p113_p1 }
   0x5   : > { %s505_s15 = sshll.u32 (!%p114_p2), %s500_s10, 5 }
   0x6   : > { %117 = sbr.rel (%p114_p2) target bundleno = 211 (0xd3), region = 28  ;;  %p136_p3 = scmp.lt.s32.totalorder (!%p114_p2), %s505_s15, 191 }
   0xb   : > { %v575_v0 = vld [vmem:[%s726_s1] sm:$0xf]  ;;  %v611_v1 = vld [vmem:[%s726_s1] sm:$0x10]  ;;  %vm316_vm0 = vcmask 1043456   ;;  %vm317_vm1 = vcmask 1044480  }
   0xc   : > { %v576_v2 = vor.u32 %v611_v1, %v575_v0  ;;  %v632_v3 = vmov 65535   ;;  %s729_s15 = smov (!%p136_p3, %s505_s15), 191  ;;  %vm267_vm2 = vcmask 72704  }
   0xd   : > { %v318_v4 = vsel %vm316_vm0, 4294967295, %v632_v3  ;;  %s506_s16 = sshll.u32 %s729_s15, 2  ;;  %s508_s20 = sshll.u32 %s729_s15, 3 }
   0xe   : > { %v319_v5 = vsel %vm317_vm1, %v318_v4, 0  ;;  %s139_s19 = scalar_lea.vmem %s725_s0, %s506_s16  ;;  %s688_s23 = scalar_lea.vmem %s727_s2, %s508_s20 }
   0xf   : > { %v321_v6 = vand.u32 %v576_v2, %v319_v5  ;;  %v595_v7 = vld [vmem:[%s139_s19] sm:$0xff]  ;;  %v596_v11 = vld [vmem:[%s139_s19 + $0x8] sm:$0xff]  ;;  %v597_v15 = vld [vmem:[%s139_s19 + $0x10] sm:$0xff] }
  0x10   : > { %v599_v8 = vld [vmem:[%s139_s19 + $0x20] sm:$0xff]  ;;  %v600_v12 = vld [vmem:[%s139_s19 + $0x28] sm:$0xff]  ;;  %v601_v16 = vld [vmem:[%s139_s19 + $0x30] sm:$0xff] }
  0x11   : > { %330 = vmatpush.bf16.msra.mxu0 %v321_v6  ;;  %612 = vmatpush.bf16.msra.mxu1 %v321_v6  ;;  %v603_v9 = vld [vmem:[%s139_s19 + $0x40] sm:$0xff]  ;;  %v604_v13 = vld [vmem:[%s139_s19 + $0x48] sm:$0xff]  ;;  %v605_v17 = vld [vmem:[%s139_s19 + $0x50] sm:$0xff] }
  0x12   : > { %613 = vmatpush.bf16.msra.mxu2 %v321_v6  ;;  %614 = vmatpush.bf16.msra.mxu3 %v321_v6  ;;  %v607_v10 = vld [vmem:[%s139_s19 + $0x60] sm:$0xff]  ;;  %v608_v14 = vld [vmem:[%s139_s19 + $0x68] sm:$0xff]  ;;  %v609_v18 = vld [vmem:[%s139_s19 + $0x70] sm:$0xff] }
  0x13   : > { %v598_v19 = vld [vmem:[%s139_s19 + $0x18] sm:$0xff] }
  0x14   : > { %577 = vmatmul.msk.bf16.vlgmr.msra.gmra.mxu0 %vm267_vm2, %v595_v7  ;;  %581 = vmatmul.msk.bf16.vlgmr.msra.gmra.mxu1 %vm267_vm2, %v599_v8  ;;  %v602_v20 = vld [vmem:[%s139_s19 + $0x38] sm:$0xff] }
  0x15   : > { %585 = vmatmul.msk.bf16.vlgmr.msra.gmra.mxu2 %vm267_vm2, %v603_v9  ;;  %589 = vmatmul.msk.bf16.vlgmr.msra.gmra.mxu3 %vm267_vm2, %v607_v10  ;;  %v606_v21 = vld [vmem:[%s139_s19 + $0x58] sm:$0xff] }
  0x16   : > { %v610_v22 = vld [vmem:[%s139_s19 + $0x78] sm:$0xff] }
  0x24   : > { %578 = vmatmul.msk.bf16.gmra.mxu0 %vm267_vm2, %v596_v11  ;;  %582 = vmatmul.msk.bf16.gmra.mxu1 %vm267_vm2, %v600_v12 }
  0x25   : > { %586 = vmatmul.msk.bf16.gmra.mxu2 %vm267_vm2, %v604_v13  ;;  %590 = vmatmul.msk.bf16.gmra.mxu3 %vm267_vm2, %v608_v14 }
  0x34   : > { %579 = vmatmul.msk.bf16.gmra.mxu0 %vm267_vm2, %v597_v15  ;;  %583 = vmatmul.msk.bf16.gmra.mxu1 %vm267_vm2, %v601_v16 }
  0x35   : > { %587 = vmatmul.msk.bf16.gmra.mxu2 %vm267_vm2, %v605_v17  ;;  %591 = vmatmul.msk.bf16.gmra.mxu3 %vm267_vm2, %v609_v18 }
  0x44   : > { %580 = vmatmul.msk.bf16.gmra.mxu0 %vm267_vm2, %v598_v19  ;;  %584 = vmatmul.msk.bf16.gmra.mxu1 %vm267_vm2, %v602_v20 }
  0x45   : > { %588 = vmatmul.msk.bf16.gmra.mxu2 %vm267_vm2, %v606_v21  ;;  %592 = vmatmul.msk.bf16.gmra.mxu3 %vm267_vm2, %v610_v22 }
  0x91   : > { %v332_v23 = vpop.f32.mrf.mxu0  ;;  %v352_v24 = vpop.f32.mrf.mxu1 }
  0x92   : > { %412 = vst [vmem:[%s688_s23] sm:$0xff] %v332_v23 }
  0x93   : > { %420 = vst [vmem:[%s688_s23 + $0x40] sm:$0xff] %v352_v24 }
  0x98   : > { %v372_v25 = vpop.f32.mrf.mxu2  ;;  %v392_v26 = vpop.f32.mrf.mxu3 }
  0x99   : > { %428 = vst [vmem:[%s688_s23 + $0x80] sm:$0xff] %v372_v25  ;;  %v334_v27 = vpop.f32.mrf.mxu0  ;;  %v354_v28 = vpop.f32.mrf.mxu1 }
  0x9a   : > { %436 = vst [vmem:[%s688_s23 + $0xc0] sm:$0xff] %v392_v26 }
  0x9b   : > { %413 = vst [vmem:[%s688_s23 + $0x8] sm:$0xff] %v334_v27 }
  0x9c   : > { %421 = vst [vmem:[%s688_s23 + $0x48] sm:$0xff] %v354_v28 }
  0xa0   : > { %v374_v29 = vpop.f32.mrf.mxu2  ;;  %v394_v30 = vpop.f32.mrf.mxu3 }
  0xa1   : > { %429 = vst [vmem:[%s688_s23 + $0x88] sm:$0xff] %v374_v29  ;;  %v337_v31 = vpop.f32.mrf.mxu0  ;;  %v357_v32 = vpop.f32.mrf.mxu1 }
  0xa2   : > { %437 = vst [vmem:[%s688_s23 + $0xc8] sm:$0xff] %v394_v30 }
  0xa3   : > { %414 = vst [vmem:[%s688_s23 + $0x10] sm:$0xff] %v337_v31 }
  0xa4   : > { %422 = vst [vmem:[%s688_s23 + $0x50] sm:$0xff] %v357_v32 }
  0xa8   : > { %v377_v33 = vpop.f32.mrf.mxu2  ;;  %v397_v34 = vpop.f32.mrf.mxu3 }
  0xa9   : > { %430 = vst [vmem:[%s688_s23 + $0x90] sm:$0xff] %v377_v33  ;;  %v339_v35 = vpop.f32.mrf.mxu0  ;;  %v359_v36 = vpop.f32.mrf.mxu1 }
  0xaa   : > { %438 = vst [vmem:[%s688_s23 + $0xd0] sm:$0xff] %v397_v34 }
  0xab   : > { %415 = vst [vmem:[%s688_s23 + $0x18] sm:$0xff] %v339_v35 }
  0xac   : > { %423 = vst [vmem:[%s688_s23 + $0x58] sm:$0xff] %v359_v36 }
  0xb0   : > { %v379_v37 = vpop.f32.mrf.mxu2  ;;  %v399_v38 = vpop.f32.mrf.mxu3 }
  0xb1   : > { %431 = vst [vmem:[%s688_s23 + $0x98] sm:$0xff] %v379_v37  ;;  %v342_v39 = vpop.f32.mrf.mxu0  ;;  %v362_v40 = vpop.f32.mrf.mxu1 }
  0xb2   : > { %439 = vst [vmem:[%s688_s23 + $0xd8] sm:$0xff] %v399_v38 }
  0xb3   : > { %416 = vst [vmem:[%s688_s23 + $0x20] sm:$0xff] %v342_v39 }
  0xb4   : > { %424 = vst [vmem:[%s688_s23 + $0x60] sm:$0xff] %v362_v40 }
  0xb8   : > { %v382_v41 = vpop.f32.mrf.mxu2  ;;  %v402_v42 = vpop.f32.mrf.mxu3 }
  0xb9   : > { %432 = vst [vmem:[%s688_s23 + $0xa0] sm:$0xff] %v382_v41  ;;  %v344_v43 = vpop.f32.mrf.mxu0  ;;  %v364_v44 = vpop.f32.mrf.mxu1 }
  0xba   : > { %440 = vst [vmem:[%s688_s23 + $0xe0] sm:$0xff] %v402_v42 }
  0xbb   : > { %417 = vst [vmem:[%s688_s23 + $0x28] sm:$0xff] %v344_v43 }
  0xbc   : > { %425 = vst [vmem:[%s688_s23 + $0x68] sm:$0xff] %v364_v44 }
  0xc0   : > { %v384_v45 = vpop.f32.mrf.mxu2  ;;  %v404_v46 = vpop.f32.mrf.mxu3 }
  0xc1   : > { %433 = vst [vmem:[%s688_s23 + $0xa8] sm:$0xff] %v384_v45  ;;  %v347_v47 = vpop.f32.mrf.mxu0  ;;  %v367_v48 = vpop.f32.mrf.mxu1 }
  0xc2   : > { %441 = vst [vmem:[%s688_s23 + $0xe8] sm:$0xff] %v404_v46 }
  0xc3   : > { %418 = vst [vmem:[%s688_s23 + $0x30] sm:$0xff] %v347_v47 }
  0xc4   : > { %426 = vst [vmem:[%s688_s23 + $0x70] sm:$0xff] %v367_v48 }
  0xc8   : > { %v387_v49 = vpop.f32.mrf.mxu2  ;;  %v407_v50 = vpop.f32.mrf.mxu3 }
  0xc9   : > { %434 = vst [vmem:[%s688_s23 + $0xb0] sm:$0xff] %v387_v49  ;;  %v349_v51 = vpop.f32.mrf.mxu0  ;;  %v369_v52 = vpop.f32.mrf.mxu1 }
  0xca   : > { %442 = vst [vmem:[%s688_s23 + $0xf0] sm:$0xff] %v407_v50 }
  0xcb   : > { %419 = vst [vmem:[%s688_s23 + $0x38] sm:$0xff] %v349_v51 }
  0xcc   : > { %427 = vst [vmem:[%s688_s23 + $0x78] sm:$0xff] %v369_v52 }
  0xd0   : > { %v389_v53 = vpop.f32.mrf.mxu2  ;;  %v409_v54 = vpop.f32.mrf.mxu3 }
  0xd1   : > { %435 = vst [vmem:[%s688_s23 + $0xb8] sm:$0xff] %v389_v53 }
  0xd2   : > { %443 = vst [vmem:[%s688_s23 + $0xf8] sm:$0xff] %v409_v54 }
  0xd3 PF: > { %s12_s9 = sadd.s32 1, %s630_s9  }
  0xd4   : > { %p9_p4 = scmp.ge.s32.totalorder %s12_s9, 8  }
  0xd6   :  { %11 = sbr.rel (!%p9_p4) target bundleno = 1 (0x1), region = 58 }

// kernel: convnet_forward.7
= control target key start
LH: loop header
LB: loop body
LE: loop exit
PB: predicated region body
PF: predicated region fallthrough
CT: control target
= control target key end

     0   :  { %vm460_vm0 = vcmask 261120   ;;  %s1689_s1 = inlined_call_operand.vmem [shape: bf16[288,128], index: 1, kind: input, shape index: {}]   ;;  %s1690_s0 = inlined_call_operand.vmem [shape: bf16[256,288], index: 0, kind: input, shape index: {}]   ;;  %s1691_s2 = inlined_call_operand.vmem [shape: f32[256,128], index: 2, kind: output, shape index: {}]  }
   0x1   :  { %v1147_v0 = vld [vmem:[%s1689_s1 + $0x38] sm:$0xff]  ;;  %v1200_v2 = vld [vmem:[%s1689_s1 + $0x88] sm:$0xff]  ;;  %v1146_v3 = vld [vmem:[%s1689_s1 + $0x30] sm:$0xff] }
   0x2   :  { %v1155_v1 = vld [vmem:[%s1689_s1 + $0x78] sm:$0xff]  ;;  %509 = vmatpush.bf16.msra.mxu0 %v1147_v0  ;;  %1158 = vmatpush.bf16.msra.mxu3 %v1147_v0  ;;  %v1154_v4 = vld [vmem:[%s1689_s1 + $0x70] sm:$0xff]  ;;  %v1212_v5 = vld [vmem:[%s1689_s1 + $0x80] sm:$0xff] }
   0x3   :  { %598 = vmatpush.bf16.msra.mxu1 %v1155_v1  ;;  %693 = vmatpush.bf16.msra.mxu2 %v1200_v2  ;;  %v822_v6 = vld [vmem:[%s1690_s0 + $0x8] sm:$0xf]  ;;  %v1094_v7 = vld [vmem:[%s1690_s0 + $0x10] sm:$0xf0]  ;;  %v1144_v11 = vld [vmem:[%s1689_s1 + $0x20] sm:$0xff] }
   0x4   :  { %v823_v8 = vor.u32 %v1094_v7, %v822_v6  ;;  %v1145_v9 = vld [vmem:[%s1689_s1 + $0x28] sm:$0xff]  ;;  %v1152_v12 = vld [vmem:[%s1689_s1 + $0x60] sm:$0xff]  ;;  %v1143_v13 = vld [vmem:[%s1689_s1 + $0x18] sm:$0xff] }
   0x5   :  { %v1153_v10 = vld [vmem:[%s1689_s1 + $0x68] sm:$0xff]  ;;  %v1151_v14 = vld [vmem:[%s1689_s1 + $0x58] sm:$0xff]  ;;  %v1142_v15 = vld [vmem:[%s1689_s1 + $0x10] sm:$0xff] }
   0x6   :  { %510 = vmatpush.bf16.msra.mxu0 %v1146_v3  ;;  %1159 = vmatpush.bf16.msra.mxu3 %v1146_v3  ;;  %v1150_v16 = vld [vmem:[%s1689_s1 + $0x50] sm:$0xff]  ;;  %v834_v17 = vld [vmem:[%s1690_s0 + $0x20] sm:$0xf]  ;;  %v1097_v18 = vld [vmem:[%s1690_s0 + $0x28] sm:$0xf0] }
   0x7   :  { %599 = vmatpush.bf16.msra.mxu1 %v1154_v4  ;;  %694 = vmatpush.bf16.msra.mxu2 %v1212_v5  ;;  %v835_v19 = vor.u32 %v1097_v18, %v834_v17  ;;  %v1141_v20 = vld [vmem:[%s1689_s1 + $0x8] sm:$0xff]  ;;  %v1140_v22 = vld [vmem:[%s1689_s1] sm:$0xff]  ;;  %v816_v29 = vld [vmem:[%s1690_s0 + $0xc] sm:$0xf0] }
   0x8   :  { %v1149_v21 = vld [vmem:[%s1689_s1 + $0x48] sm:$0xff]  ;;  %v1148_v23 = vld [vmem:[%s1689_s1 + $0x40] sm:$0xff]  ;;  %v846_v33 = vld [vmem:[%s1690_s0 + $0x38] sm:$0xf] }
   0x9   :  { %v814_v24 = vld [vmem:[%s1690_s0] sm:$0xf]  ;;  %v1093_v25 = vld [vmem:[%s1690_s0 + $0x8] sm:$0xf0]  ;;  %v1092_v28 = vld [vmem:[%s1690_s0 + $0x4] sm:$0xf] }
   0xa   :  { %1076 = vmatmul.msk.bf16.vlgmr.msra.gmra.mxu2 %vm460_vm0, %v823_v8  ;;  %511 = vmatpush.bf16.msra.mxu0 %v1145_v9  ;;  %v958_v26 = vld [vmem:[%s1690_s0 + $0x120] sm:$0xf]  ;;  %v1129_v27 = vld [vmem:[%s1690_s0 + $0x128] sm:$0xf0]  ;;  %v815_v30 = vor.u32 %v1093_v25, %v814_v24  ;;  %v819_v32 = vor.u32 %v1092_v28, %v816_v29  ;;  %v1100_v34 = vld [vmem:[%s1690_s0 + $0x40] sm:$0xf0] }
   0xb   :  { %1160 = vmatpush.bf16.msra.mxu3 %v1145_v9  ;;  %600 = vmatpush.bf16.msra.mxu1 %v1153_v10  ;;  %v959_v31 = vor.u32 %v1129_v27, %v958_v26  ;;  %v847_v35 = vor.u32 %v1100_v34, %v846_v33  ;;  %v826_v36 = vld [vmem:[%s1690_s0 + $0x18] sm:$0xf]  ;;  %v1096_v37 = vld [vmem:[%s1690_s0 + $0x20] sm:$0xf0]  ;;  %v1095_v40 = vld [vmem:[%s1690_s0 + $0x1c] sm:$0xf] }
   0xc   :  { %v970_v38 = vld [vmem:[%s1690_s0 + $0x138] sm:$0xf]  ;;  %v1132_v39 = vld [vmem:[%s1690_s0 + $0x140] sm:$0xf0]  ;;  %v828_v41 = vld [vmem:[%s1690_s0 + $0x24] sm:$0xf0]  ;;  %v827_v42 = vor.u32 %v1096_v37, %v826_v36 }
   0xd   :  { %v971_v43 = vor.u32 %v1132_v39, %v970_v38  ;;  %v831_v44 = vor.u32 %v1095_v40, %v828_v41  ;;  %v858_v45 = vld [vmem:[%s1690_s0 + $0x50] sm:$0xf]  ;;  %v1103_v46 = vld [vmem:[%s1690_s0 + $0x58] sm:$0xf0]  ;;  %v1098_v52 = vld [vmem:[%s1690_s0 + $0x34] sm:$0xf] }
   0xe   :  { %512 = vmatpush.bf16.msra.mxu0 %v1144_v11  ;;  %v859_v47 = vor.u32 %v1103_v46, %v858_v45  ;;  %v838_v48 = vld [vmem:[%s1690_s0 + $0x30] sm:$0xf]  ;;  %v1099_v49 = vld [vmem:[%s1690_s0 + $0x38] sm:$0xf0]  ;;  %v840_v53 = vld [vmem:[%s1690_s0 + $0x3c] sm:$0xf0] }
   0xf   :  { %1161 = vmatpush.bf16.msra.mxu3 %v1144_v11  ;;  %601 = vmatpush.bf16.msra.mxu1 %v1152_v12  ;;  %v982_v50 = vld [vmem:[%s1690_s0 + $0x150] sm:$0xf]  ;;  %v1135_v51 = vld [vmem:[%s1690_s0 + $0x158] sm:$0xf0]  ;;  %v839_v54 = vor.u32 %v1099_v49, %v838_v48  ;;  %v843_v56 = vor.u32 %v1098_v52, %v840_v53  ;;  %v870_v57 = vld [vmem:[%s1690_s0 + $0x68] sm:$0xf] }
  0x10   :  { %v983_v55 = vor.u32 %v1135_v51, %v982_v50  ;;  %v1106_v58 = vld [vmem:[%s1690_s0 + $0x70] sm:$0xf0]  ;;  %v850_v60 = vld [vmem:[%s1690_s0 + $0x48] sm:$0xf]  ;;  %v1101_v0 = vld [vmem:[%s1690_s0 + $0x4c] sm:$0xf] }
  0x11   :  { %v871_v59 = vor.u32 %v1106_v58, %v870_v57  ;;  %v1102_v61 = vld [vmem:[%s1690_s0 + $0x50] sm:$0xf0]  ;;  %v994_v62 = vld [vmem:[%s1690_s0 + $0x168] sm:$0xf]  ;;  %v1109_v6 = vld [vmem:[%s1690_s0 + $0x88] sm:$0xf0] }
  0x12   :  { %513 = vmatpush.bf16.msra.mxu0 %v1143_v13  ;;  %v1138_v63 = vld [vmem:[%s1690_s0 + $0x170] sm:$0xf0]  ;;  %v862_v8 = vld [vmem:[%s1690_s0 + $0x60] sm:$0xf]  ;;  %v1105_v9 = vld [vmem:[%s1690_s0 + $0x68] sm:$0xf0] }
  0x13   :  { %1162 = vmatpush.bf16.msra.mxu3 %v1143_v13  ;;  %602 = vmatpush.bf16.msra.mxu1 %v1151_v14  ;;  %v995_v3 = vor.u32 %v1138_v63, %v994_v62  ;;  %v864_v11 = vld [vmem:[%s1690_s0 + $0x6c] sm:$0xf0]  ;;  %v894_v17 = vld [vmem:[%s1690_s0 + $0x98] sm:$0xf]  ;;  %v1112_v18 = vld [vmem:[%s1690_s0 + $0xa0] sm:$0xf0] }
  0x14   :  { %v960_v13 = vld [vmem:[%s1690_s0 + $0x12c] sm:$0xf0]  ;;  %v1131_v24 = vld [vmem:[%s1690_s0 + $0x13c] sm:$0xf]  ;;  %v972_v25 = vld [vmem:[%s1690_s0 + $0x144] sm:$0xf0] }
  0x15   :  { %v975_v28 = vor.u32 %v1131_v24, %v972_v25  ;;  %v906_v29 = vld [vmem:[%s1690_s0 + $0xb0] sm:$0xf]  ;;  %v1111_v33 = vld [vmem:[%s1690_s0 + $0x98] sm:$0xf0]  ;;  %v1110_v34 = vld [vmem:[%s1690_s0 + $0x94] sm:$0xf] }
  0x16   :  { %514 = vmatpush.bf16.msra.mxu0 %v1142_v15  ;;  %v1134_v36 = vld [vmem:[%s1690_s0 + $0x154] sm:$0xf]  ;;  %v984_v37 = vld [vmem:[%s1690_s0 + $0x15c] sm:$0xf0]  ;;  %v918_v41 = vld [vmem:[%s1690_s0 + $0xc8] sm:$0xf] }
  0x17   :  { %1163 = vmatpush.bf16.msra.mxu3 %v1142_v15  ;;  %603 = vmatpush.bf16.msra.mxu1 %v1150_v16  ;;  %v987_v40 = vor.u32 %v1134_v36, %v984_v37  ;;  %v1114_v45 = vld [vmem:[%s1690_s0 + $0xb0] sm:$0xf0]  ;;  %v1113_v46 = vld [vmem:[%s1690_s0 + $0xac] sm:$0xf]  ;;  %v996_v49 = vld [vmem:[%s1690_s0 + $0x174] sm:$0xf0] }
  0x18   :  { %v1137_v48 = vld [vmem:[%s1690_s0 + $0x16c] sm:$0xf]  ;;  %v910_v58 = vld [vmem:[%s1690_s0 + $0xc0] sm:$0xf]  ;;  %v990_v62 = vld [vmem:[%s1690_s0 + $0x158] sm:$0xf] }
  0x19   :  { %v999_v53 = vor.u32 %v1137_v48, %v996_v49  ;;  %v1136_v63 = vld [vmem:[%s1690_s0 + $0x160] sm:$0xf0] }
  0x1a   :  { %1077 = vmatmul.msk.bf16.gmra.mxu2 %vm460_vm0, %v835_v19  ;;  %515 = vmatpush.bf16.msra.mxu0 %v1141_v20  ;;  %v895_v19 = vor.u32 %v1112_v18, %v894_v17  ;;  %v922_v17 = vld [vmem:[%s1690_s0 + $0xd8] sm:$0xf]  ;;  %v1120_v18 = vld [vmem:[%s1690_s0 + $0xe0] sm:$0xf0] }
  0x1b   :  { %1164 = vmatpush.bf16.msra.mxu3 %v1141_v20  ;;  %604 = vmatpush.bf16.msra.mxu1 %v1149_v21  ;;  %v874_v20 = vld [vmem:[%s1690_s0 + $0x78] sm:$0xf]  ;;  %v923_v25 = vor.u32 %v1120_v18, %v922_v17 }
  0x1e   :  { %516 = vmatpush.bf16.msra.mxu0 %v1140_v22 }
  0x1f   :  { %1165 = vmatpush.bf16.msra.mxu3 %v1140_v22  ;;  %605 = vmatpush.bf16.msra.mxu1 %v1148_v23  ;;  %v1107_v22 = vld [vmem:[%s1690_s0 + $0x7c] sm:$0xf] }
  0x21   :  { %517 = vmatmul.bf16.vlgmr.msra.gmra.mxu0 %v815_v30  ;;  %v1115_v30 = vld [vmem:[%s1690_s0 + $0xb8] sm:$0xf0] }
  0x22   :  { %577 = vmatmul.bf16.vlgmr.msra.gmra.mxu3 %v959_v31  ;;  %606 = vmatmul.bf16.vlgmr.msra.gmra.mxu1 %v819_v32  ;;  %v907_v31 = vor.u32 %v1115_v30, %v906_v29  ;;  %v886_v32 = vld [vmem:[%s1690_s0 + $0x90] sm:$0xf] }
  0x23   :  { %1166 = vmatpush.bf16.msrb.mxu3 %v1155_v1  ;;  %v852_v1 = vld [vmem:[%s1690_s0 + $0x54] sm:$0xf0]  ;;  %v887_v38 = vor.u32 %v1111_v33, %v886_v32  ;;  %v954_v32 = vld [vmem:[%s1690_s0 + $0x110] sm:$0xf]  ;;  %v1127_v33 = vld [vmem:[%s1690_s0 + $0x118] sm:$0xf0] }
  0x24   :  { %v955_v37 = vor.u32 %v1127_v33, %v954_v32 }
  0x27   :  { %1167 = vmatpush.bf16.msrb.mxu3 %v1154_v4  ;;  %v855_v4 = vor.u32 %v1101_v0, %v852_v1 }
  0x2a   :  { %1078 = vmatmul.msk.bf16.gmra.mxu2 %vm460_vm0, %v847_v35  ;;  %v888_v35 = vld [vmem:[%s1690_s0 + $0x9c] sm:$0xf0] }
  0x2b   :  { %1168 = vmatpush.bf16.msrb.mxu3 %v1153_v10  ;;  %v1104_v10 = vld [vmem:[%s1690_s0 + $0x64] sm:$0xf]  ;;  %v891_v39 = vor.u32 %v1110_v34, %v888_v35 }
  0x2c   :  { %v867_v15 = vor.u32 %v1104_v10, %v864_v11 }
  0x2f   :  { %1169 = vmatpush.bf16.msrb.mxu3 %v1152_v12  ;;  %v1128_v12 = vld [vmem:[%s1690_s0 + $0x124] sm:$0xf] }
  0x31   :  { %522 = vmatmul.bf16.gmra.mxu0 %v827_v42  ;;  %v1118_v42 = vld [vmem:[%s1690_s0 + $0xd0] sm:$0xf0] }
  0x32   :  { %582 = vmatmul.bf16.gmra.mxu3 %v971_v43  ;;  %611 = vmatmul.bf16.gmra.mxu1 %v831_v44  ;;  %v919_v43 = vor.u32 %v1118_v42, %v918_v41  ;;  %v898_v44 = vld [vmem:[%s1690_s0 + $0xa8] sm:$0xf]  ;;  %v934_v41 = vld [vmem:[%s1690_s0 + $0xf0] sm:$0xf]  ;;  %v1123_v42 = vld [vmem:[%s1690_s0 + $0xf8] sm:$0xf0] }
  0x33   :  { %1170 = vmatpush.bf16.msrb.mxu3 %v1151_v14  ;;  %v863_v14 = vor.u32 %v1105_v9, %v862_v8  ;;  %v899_v51 = vor.u32 %v1114_v45, %v898_v44  ;;  %v942_v8 = vld [vmem:[%s1690_s0 + $0xf8] sm:$0xf]  ;;  %v1124_v9 = vld [vmem:[%s1690_s0 + $0x100] sm:$0xf0]  ;;  %v936_v44 = vld [vmem:[%s1690_s0 + $0xfc] sm:$0xf0] }
  0x37   :  { %1171 = vmatpush.bf16.msrb.mxu3 %v1150_v16  ;;  %v963_v16 = vor.u32 %v1128_v12, %v960_v13  ;;  %v943_v13 = vor.u32 %v1124_v9, %v942_v8 }
  0x3a   :  { %1079 = vmatmul.msk.bf16.gmra.mxu2 %vm460_vm0, %v859_v47  ;;  %v900_v47 = vld [vmem:[%s1690_s0 + $0xb4] sm:$0xf0] }
  0x3b   :  { %1172 = vmatpush.bf16.msrb.mxu3 %v1149_v21  ;;  %v1108_v21 = vld [vmem:[%s1690_s0 + $0x80] sm:$0xf0]  ;;  %v903_v52 = vor.u32 %v1113_v46, %v900_v47  ;;  %v935_v47 = vor.u32 %v1123_v42, %v934_v41 }
  0x3c   :  { %v875_v26 = vor.u32 %v1108_v21, %v874_v20  ;;  %v924_v20 = vld [vmem:[%s1690_s0 + $0xe4] sm:$0xf0]  ;;  %v1002_v21 = vld [vmem:[%s1690_s0 + $0x170] sm:$0xf] }
  0x3f   :  { %1173 = vmatpush.bf16.msrb.mxu3 %v1148_v23  ;;  %v876_v23 = vld [vmem:[%s1690_s0 + $0x84] sm:$0xf0] }
  0x40   :  { %v879_v27 = vor.u32 %v1107_v22, %v876_v23  ;;  %v1139_v22 = vld [vmem:[%s1690_s0 + $0x178] sm:$0xf0] }
  0x41   :  { %527 = vmatmul.bf16.gmra.mxu0 %v839_v54  ;;  %v930_v54 = vld [vmem:[%s1690_s0 + $0xe0] sm:$0xf] }
  0x42   :  { %587 = vmatmul.bf16.gmra.mxu3 %v983_v55  ;;  %616 = vmatmul.bf16.gmra.mxu1 %v843_v56  ;;  %v1121_v55 = vld [vmem:[%s1690_s0 + $0xe8] sm:$0xf0] }
  0x43   :  { %1174 = vmatpush.bf16.msra.mxu3 %v1200_v2  ;;  %v851_v2 = vor.u32 %v1102_v61, %v850_v60  ;;  %v931_v57 = vor.u32 %v1121_v55, %v930_v54  ;;  %v1116_v60 = vld [vmem:[%s1690_s0 + $0xc4] sm:$0xf]  ;;  %v912_v61 = vld [vmem:[%s1690_s0 + $0xcc] sm:$0xf0]  ;;  %v1130_v54 = vld [vmem:[%s1690_s0 + $0x130] sm:$0xf0] }
  0x47   :  { %1175 = vmatpush.bf16.msra.mxu3 %v1212_v5  ;;  %v882_v5 = vld [vmem:[%s1690_s0 + $0x80] sm:$0xf] }
  0x48   :  { %v883_v7 = vor.u32 %v1109_v6, %v882_v5 }
  0x4a   :  { %1080 = vmatmul.msk.bf16.gmra.mxu2 %vm460_vm0, %v871_v59  ;;  %v1117_v59 = vld [vmem:[%s1690_s0 + $0xc8] sm:$0xf0] }
  0x4b   :  { %v911_v1 = vor.u32 %v1117_v59, %v910_v58 }
  0x51   :  { %532 = vmatmul.bf16.gmra.mxu0 %v851_v2 }
  0x52   :  { %592 = vmatmul.bf16.gmra.mxu3 %v995_v3  ;;  %621 = vmatmul.bf16.gmra.mxu1 %v855_v4  ;;  %v915_v3 = vor.u32 %v1116_v60, %v912_v61  ;;  %v991_v4 = vor.u32 %v1136_v63, %v990_v62  ;;  %v946_v62 = vld [vmem:[%s1690_s0 + $0x108] sm:$0xf]  ;;  %v1126_v63 = vld [vmem:[%s1690_s0 + $0x110] sm:$0xf0] }
  0x5a   :  { %1081 = vmatmul.msk.bf16.gmra.mxu2 %vm460_vm0, %v883_v7 }
  0x61   :  { %537 = vmatmul.bf16.gmra.mxu0 %v863_v14 }
  0x62   :  { %626 = vmatmul.bf16.gmra.mxu1 %v867_v15  ;;  %666 = vmatmul.bf16.vlgmr.msrb.gmra.mxu3 %v963_v16 }
  0x6a   :  { %1082 = vmatmul.msk.bf16.gmra.mxu2 %vm460_vm0, %v895_v19  ;;  %v1119_v19 = vld [vmem:[%s1690_s0 + $0xdc] sm:$0xf] }
  0x71   :  { %542 = vmatmul.bf16.gmra.mxu0 %v875_v26 }
  0x72   :  { %631 = vmatmul.bf16.gmra.mxu1 %v879_v27  ;;  %671 = vmatmul.bf16.gmra.mxu3 %v975_v28  ;;  %v927_v27 = vor.u32 %v1119_v19, %v924_v20  ;;  %v1003_v28 = vor.u32 %v1139_v22, %v1002_v21 }
  0x7a   :  { %1083 = vmatmul.msk.bf16.gmra.mxu2 %vm460_vm0, %v907_v31 }
  0x81   :  { %547 = vmatmul.bf16.gmra.mxu0 %v887_v38 }
  0x82   :  { %636 = vmatmul.bf16.gmra.mxu1 %v891_v39  ;;  %676 = vmatmul.bf16.gmra.mxu3 %v987_v40 }
  0x8a   :  { %1084 = vmatmul.msk.bf16.gmra.mxu2 %vm460_vm0, %v919_v43  ;;  %v1122_v43 = vld [vmem:[%s1690_s0 + $0xf4] sm:$0xf] }
  0x8b   :  { %v939_v49 = vor.u32 %v1122_v43, %v936_v44 }
  0x8d   :  { %v696_v50 = vpop.f32.mrf.mxu2 }
  0x91   :  { %552 = vmatmul.bf16.gmra.mxu0 %v899_v51 }
  0x92   :  { %641 = vmatmul.bf16.gmra.mxu1 %v903_v52  ;;  %681 = vmatmul.bf16.gmra.mxu3 %v999_v53  ;;  %v966_v53 = vld [vmem:[%s1690_s0 + $0x128] sm:$0xf] }
  0x93   :  { %v967_v58 = vor.u32 %v1130_v54, %v966_v53 }
  0x95   :  { %v698_v56 = vpop.f32.mrf.mxu2 }
  0x9a   :  { %1085 = vmatmul.msk.bf16.gmra.mxu2 %vm460_vm0, %v931_v57 }
  0x9d   :  { %v701_v0 = vpop.f32.mrf.mxu2 }
  0x9e   :  { %v518_v2 = vpop.f32.mrf.mxu0 }
  0x9f   :  { %v607_v5 = vpop.f32.mrf.mxu1 }
  0xa0   :  { %v608_v6 = vadd.f32 %v607_v5, %v518_v2 }
  0xa1   :  { %557 = vmatmul.bf16.gmra.mxu0 %v911_v1  ;;  %v948_v1 = vld [vmem:[%s1690_s0 + $0x114] sm:$0xf0] }
  0xa2   :  { %v697_v7 = vadd.f32 %v696_v50, %v608_v6  ;;  %646 = vmatmul.bf16.gmra.mxu1 %v915_v3  ;;  %1090 = vmatmul.msk.bf16.vlgmr.msra.gmra.mxu3 %vm460_vm0, %v991_v4  ;;  %v947_v4 = vor.u32 %v1126_v63, %v946_v62 }
  0xa4   :  { %776 = vst [vmem:[%s1691_s2] sm:$0xff] %v697_v7 }
  0xa5   :  { %v1495_v10 = vpop.f32.mrf.mxu3  ;;  %v703_v11 = vpop.f32.mrf.mxu2 }
  0xa6   :  { %v520_v12 = vpop.f32.mrf.mxu0 }
  0xa7   :  { %v609_v14 = vpop.f32.mrf.mxu1 }
  0xa8   :  { %v610_v15 = vadd.f32 %v609_v14, %v520_v12  ;;  %v1133_v12 = vld [vmem:[%s1690_s0 + $0x148] sm:$0xf0] }
  0xaa   :  { %v699_v16 = vadd.f32 %v698_v56, %v610_v15  ;;  %1086 = vmatmul.msk.bf16.gmra.mxu2 %vm460_vm0, %v943_v13 }
  0xac   :  { %777 = vst [vmem:[%s1691_s2 + $0x8] sm:$0xff] %v699_v16 }
  0xad   :  { %v1519_v23 = vpop.f32.mrf.mxu3  ;;  %v706_v24 = vpop.f32.mrf.mxu2 }
  0xae   :  { %v523_v26 = vpop.f32.mrf.mxu0 }
  0xaf   :  { %v612_v29 = vpop.f32.mrf.mxu1 }
  0xb0   :  { %v613_v30 = vadd.f32 %v612_v29, %v523_v26 }
  0xb1   :  { %562 = vmatmul.bf16.gmra.mxu0 %v923_v25 }
  0xb2   :  { %v702_v31 = vadd.f32 %v701_v0, %v613_v30  ;;  %651 = vmatmul.bf16.gmra.mxu1 %v927_v27  ;;  %1091 = vmatmul.msk.bf16.gmra.mxu3 %vm460_vm0, %v1003_v28  ;;  %v1125_v0 = vld [vmem:[%s1690_s0 + $0x10c] sm:$0xf] }
  0xb3   :  { %v951_v6 = vor.u32 %v1125_v0, %v948_v1 }
  0xb4   :  { %778 = vst [vmem:[%s1691_s2 + $0x10] sm:$0xff] %v702_v31 }
  0xb5   :  { %v1531_v34 = vpop.f32.mrf.mxu3  ;;  %v708_v35 = vpop.f32.mrf.mxu2 }
  0xb6   :  { %v525_v36 = vpop.f32.mrf.mxu0 }
  0xb7   :  { %v614_v38 = vpop.f32.mrf.mxu1 }
  0xb8   :  { %v615_v39 = vadd.f32 %v614_v38, %v525_v36 }
  0xba   :  { %v704_v40 = vadd.f32 %v703_v11, %v615_v39  ;;  %1087 = vmatmul.msk.bf16.gmra.mxu2 %vm460_vm0, %v955_v37  ;;  %v978_v11 = vld [vmem:[%s1690_s0 + $0x140] sm:$0xf] }
  0xbb   :  { %v979_v16 = vor.u32 %v1133_v12, %v978_v11 }
  0xbc   :  { %779 = vst [vmem:[%s1691_s2 + $0x18] sm:$0xff] %v704_v40 }
  0xbd   :  { %v1549_v45 = vpop.f32.mrf.mxu3  ;;  %v711_v46 = vpop.f32.mrf.mxu2 }
  0xbe   :  { %v528_v48 = vpop.f32.mrf.mxu0 }
  0xbf   :  { %v617_v50 = vpop.f32.mrf.mxu1 }
  0xc0   :  { %v618_v51 = vadd.f32 %v617_v50, %v528_v48 }
  0xc1   :  { %567 = vmatmul.bf16.gmra.mxu0 %v935_v47 }
  0xc2   :  { %v707_v52 = vadd.f32 %v706_v24, %v618_v51  ;;  %656 = vmatmul.bf16.gmra.mxu1 %v939_v49 }
  0xc4   :  { %780 = vst [vmem:[%s1691_s2 + $0x20] sm:$0xff] %v707_v52 }
  0xc5   :  { %v1560_v55 = vpop.f32.mrf.mxu3  ;;  %v713_v56 = vpop.f32.mrf.mxu2 }
  0xc6   :  { %v530_v57 = vpop.f32.mrf.mxu0 }
  0xc7   :  { %v619_v59 = vpop.f32.mrf.mxu1 }
  0xc8   :  { %v620_v60 = vadd.f32 %v619_v59, %v530_v57 }
  0xca   :  { %v709_v61 = vadd.f32 %v708_v35, %v620_v60  ;;  %1088 = vmatmul.msk.bf16.gmra.mxu2 %vm460_vm0, %v967_v58 }
  0xcc   :  { %781 = vst [vmem:[%s1691_s2 + $0x28] sm:$0xff] %v709_v61 }
  0xcd   :  { %v1578_v2 = vpop.f32.mrf.mxu3  ;;  %v716_v3 = vpop.f32.mrf.mxu2 }
  0xce   :  { %v533_v5 = vpop.f32.mrf.mxu0 }
  0xcf   :  { %v622_v7 = vpop.f32.mrf.mxu1 }
  0xd0   :  { %v623_v8 = vadd.f32 %v622_v7, %v533_v5 }
  0xd1   :  { %572 = vmatmul.bf16.gmra.mxu0 %v947_v4 }
  0xd2   :  { %v712_v9 = vadd.f32 %v711_v46, %v623_v8  ;;  %661 = vmatmul.bf16.gmra.mxu1 %v951_v6 }
  0xd4   :  { %782 = vst [vmem:[%s1691_s2 + $0x30] sm:$0xff] %v712_v9 }
  0xd5   :  { %v1589_v13 = vpop.f32.mrf.mxu3  ;;  %v718_v14 = vpop.f32.mrf.mxu2 }
  0xd6   :  { %v535_v15 = vpop.f32.mrf.mxu0 }
  0xd7   :  { %v624_v17 = vpop.f32.mrf.mxu1 }
  0xd8   :  { %v625_v18 = vadd.f32 %v624_v17, %v535_v15 }
  0xda   :  { %v714_v19 = vadd.f32 %v713_v56, %v625_v18  ;;  %1089 = vmatmul.msk.bf16.gmra.mxu2 %vm460_vm0, %v979_v16 }
  0xdc   :  { %783 = vst [vmem:[%s1691_s2 + $0x38] sm:$0xff] %v714_v19 }
  0xdd   :  { %v1595_v20 = vpop.f32.mrf.mxu3  ;;  %v721_v21 = vpop.f32.mrf.mxu2 }
  0xde   :  { %v538_v22 = vpop.f32.mrf.mxu0 }
  0xdf   :  { %v627_v24 = vpop.f32.mrf.mxu1 }
  0xe0   :  { %v628_v25 = vadd.f32 %v627_v24, %v538_v22 }
  0xe2   :  { %v717_v26 = vadd.f32 %v716_v3, %v628_v25 }
  0xe4   :  { %784 = vst [vmem:[%s1691_s2 + $0x40] sm:$0xff] %v717_v26 }
  0xe5   :  { %v667_v27 = vpop.f32.mrf.mxu3  ;;  %v723_v28 = vpop.f32.mrf.mxu2 }
  0xe6   :  { %v1601_v29 = vadd.f32 %v667_v27, %v1495_v10  ;;  %v540_v30 = vpop.f32.mrf.mxu0 }
  0xe7   :  { %v629_v31 = vpop.f32.mrf.mxu1 }
  0xe8   :  { %v630_v32 = vadd.f32 %v629_v31, %v540_v30 }
  0xea   :  { %v719_v33 = vadd.f32 %v718_v14, %v630_v32 }
  0xec   :  { %785 = vst [vmem:[%s1691_s2 + $0x48] sm:$0xff] %v719_v33 }
  0xed   :  { %v669_v35 = vpop.f32.mrf.mxu3  ;;  %v726_v36 = vpop.f32.mrf.mxu2 }
  0xee   :  { %v1607_v37 = vadd.f32 %v669_v35, %v1519_v23  ;;  %v543_v38 = vpop.f32.mrf.mxu0 }
  0xef   :  { %v632_v39 = vpop.f32.mrf.mxu1 }
  0xf0   :  { %v633_v40 = vadd.f32 %v632_v39, %v543_v38 }
  0xf2   :  { %v722_v41 = vadd.f32 %v721_v21, %v633_v40 }
  0xf4   :  { %786 = vst [vmem:[%s1691_s2 + $0x50] sm:$0xff] %v722_v41 }
  0xf5   :  { %v672_v10 = vpop.f32.mrf.mxu3  ;;  %v728_v42 = vpop.f32.mrf.mxu2 }
  0xf6   :  { %v1613_v43 = vadd.f32 %v672_v10, %v1531_v34  ;;  %v545_v44 = vpop.f32.mrf.mxu0 }
  0xf7   :  { %v634_v46 = vpop.f32.mrf.mxu1 }
  0xf8   :  { %v635_v47 = vadd.f32 %v634_v46, %v545_v44 }
  0xfa   :  { %v724_v48 = vadd.f32 %v723_v28, %v635_v47 }
  0xfc   :  { %787 = vst [vmem:[%s1691_s2 + $0x58] sm:$0xff] %v724_v48 }
  0xfd   :  { %v674_v23 = vpop.f32.mrf.mxu3  ;;  %v731_v49 = vpop.f32.mrf.mxu2 }
  0xfe   :  { %v1619_v50 = vadd.f32 %v674_v23, %v1549_v45  ;;  %v548_v51 = vpop.f32.mrf.mxu0 }
  0xff   :  { %v637_v52 = vpop.f32.mrf.mxu1 }
 0x100   :  { %v638_v53 = vadd.f32 %v637_v52, %v548_v51 }
 0x102   :  { %v727_v54 = vadd.f32 %v726_v36, %v638_v53 }
 0x104   :  { %788 = vst [vmem:[%s1691_s2 + $0x60] sm:$0xff] %v727_v54 }
 0x105   :  { %v677_v34 = vpop.f32.mrf.mxu3  ;;  %v733_v56 = vpop.f32.mrf.mxu2 }
 0x106   :  { %v550_v57 = vpop.f32.mrf.mxu0  ;;  %v678_v17 = vadd.f32 %v677_v34, %v1560_v55 }
 0x107   :  { %v639_v58 = vpop.f32.mrf.mxu1 }
 0x108   :  { %v640_v59 = vadd.f32 %v639_v58, %v550_v57 }
 0x10a   :  { %v729_v60 = vadd.f32 %v728_v42, %v640_v59 }
 0x10c   :  { %789 = vst [vmem:[%s1691_s2 + $0x68] sm:$0xff] %v729_v60 }
 0x10d   :  { %v679_v45 = vpop.f32.mrf.mxu3  ;;  %v736_v61 = vpop.f32.mrf.mxu2 }
 0x10e   :  { %v553_v62 = vpop.f32.mrf.mxu0  ;;  %v680_v27 = vadd.f32 %v679_v45, %v1578_v2 }
 0x10f   :  { %v642_v63 = vpop.f32.mrf.mxu1 }
 0x110   :  { %v643_v0 = vadd.f32 %v642_v63, %v553_v62 }
 0x112   :  { %v732_v1 = vadd.f32 %v731_v49, %v643_v0 }
 0x114   :  { %790 = vst [vmem:[%s1691_s2 + $0x70] sm:$0xff] %v732_v1 }
 0x115   :  { %v682_v3 = vpop.f32.mrf.mxu3  ;;  %v738_v4 = vpop.f32.mrf.mxu2 }
 0x116   :  { %v555_v5 = vpop.f32.mrf.mxu0  ;;  %v683_v36 = vadd.f32 %v682_v3, %v1589_v13 }
 0x117   :  { %v644_v6 = vpop.f32.mrf.mxu1 }
 0x118   :  { %v645_v7 = vadd.f32 %v644_v6, %v555_v5 }
 0x11a   :  { %v734_v8 = vadd.f32 %v733_v56, %v645_v7 }
 0x11c   :  { %791 = vst [vmem:[%s1691_s2 + $0x78] sm:$0xff] %v734_v8 }
 0x11d   :  { %v684_v9 = vpop.f32.mrf.mxu3  ;;  %v741_v11 = vpop.f32.mrf.mxu2 }
 0x11e   :  { %v558_v12 = vpop.f32.mrf.mxu0  ;;  %v685_v44 = vadd.f32 %v684_v9, %v1595_v20 }
 0x11f   :  { %v647_v14 = vpop.f32.mrf.mxu1 }
 0x120   :  { %v648_v15 = vadd.f32 %v647_v14, %v558_v12 }
 0x122   :  { %v737_v16 = vadd.f32 %v736_v61, %v648_v15 }
 0x124   :  { %792 = vst [vmem:[%s1691_s2 + $0x80] sm:$0xff] %v737_v16 }
 0x125   :  { %v743_v18 = vpop.f32.mrf.mxu2  ;;  %v766_v19 = vpop.f32.mrf.mxu3 }
 0x126   :  { %v767_v21 = vadd.f32 %v766_v19, %v678_v17  ;;  %v560_v22 = vpop.f32.mrf.mxu0 }
 0x127   :  { %v649_v24 = vpop.f32.mrf.mxu1 }
 0x128   :  { %804 = vst [vmem:[%s1691_s2 + $0xe0] sm:$0xff] %v767_v21  ;;  %v650_v25 = vadd.f32 %v649_v24, %v560_v22 }
 0x12a   :  { %v739_v26 = vadd.f32 %v738_v4, %v650_v25 }
 0x12c   :  { %793 = vst [vmem:[%s1691_s2 + $0x88] sm:$0xff] %v739_v26 }
 0x12d   :  { %v746_v55 = vpop.f32.mrf.mxu2  ;;  %v768_v28 = vpop.f32.mrf.mxu3 }
 0x12e   :  { %v769_v30 = vadd.f32 %v768_v28, %v680_v27  ;;  %v563_v31 = vpop.f32.mrf.mxu0 }
 0x12f   :  { %v652_v32 = vpop.f32.mrf.mxu1 }
 0x130   :  { %805 = vst [vmem:[%s1691_s2 + $0xe8] sm:$0xff] %v769_v30  ;;  %v653_v33 = vadd.f32 %v652_v32, %v563_v31 }
 0x132   :  { %v742_v35 = vadd.f32 %v741_v11, %v653_v33 }
 0x134   :  { %794 = vst [vmem:[%s1691_s2 + $0x90] sm:$0xff] %v742_v35 }
 0x135   :  { %v748_v2 = vpop.f32.mrf.mxu2  ;;  %v771_v38 = vpop.f32.mrf.mxu3 }
 0x136   :  { %v772_v39 = vadd.f32 %v771_v38, %v683_v36  ;;  %v565_v40 = vpop.f32.mrf.mxu0 }
 0x137   :  { %v654_v41 = vpop.f32.mrf.mxu1 }
 0x138   :  { %806 = vst [vmem:[%s1691_s2 + $0xf0] sm:$0xff] %v772_v39  ;;  %v655_v10 = vadd.f32 %v654_v41, %v565_v40 }
 0x13a   :  { %v744_v42 = vadd.f32 %v743_v18, %v655_v10 }
 0x13c   :  { %795 = vst [vmem:[%s1691_s2 + $0x98] sm:$0xff] %v744_v42 }
 0x13d   :  { %v751_v13 = vpop.f32.mrf.mxu2  ;;  %v773_v46 = vpop.f32.mrf.mxu3 }
 0x13e   :  { %v774_v47 = vadd.f32 %v773_v46, %v685_v44  ;;  %v568_v48 = vpop.f32.mrf.mxu0 }
 0x13f   :  { %v657_v23 = vpop.f32.mrf.mxu1 }
 0x140   :  { %807 = vst [vmem:[%s1691_s2 + $0xf8] sm:$0xff] %v774_v47  ;;  %v658_v49 = vadd.f32 %v657_v23, %v568_v48 }
 0x142   :  { %v747_v51 = vadd.f32 %v746_v55, %v658_v49 }
 0x144   :  { %796 = vst [vmem:[%s1691_s2 + $0xa0] sm:$0xff] %v747_v51 }
 0x145   :  { %v753_v20 = vpop.f32.mrf.mxu2 }
 0x146   :  { %v570_v52 = vpop.f32.mrf.mxu0 }
 0x147   :  { %v659_v53 = vpop.f32.mrf.mxu1 }
 0x148   :  { %v660_v54 = vadd.f32 %v659_v53, %v570_v52 }
 0x14a   :  { %v749_v34 = vadd.f32 %v748_v2, %v660_v54 }
 0x14c   :  { %797 = vst [vmem:[%s1691_s2 + $0xa8] sm:$0xff] %v749_v34 }
 0x14d   :  { %v756_v56 = vpop.f32.mrf.mxu2 }
 0x14e   :  { %v757_v57 = vadd.f32 %v756_v56, %v1601_v29  ;;  %v573_v58 = vpop.f32.mrf.mxu0 }
 0x14f   :  { %v662_v59 = vpop.f32.mrf.mxu1 }
 0x150   :  { %800 = vst [vmem:[%s1691_s2 + $0xc0] sm:$0xff] %v757_v57  ;;  %v663_v60 = vadd.f32 %v662_v59, %v573_v58 }
 0x152   :  { %v752_v45 = vadd.f32 %v751_v13, %v663_v60 }
 0x154   :  { %798 = vst [vmem:[%s1691_s2 + $0xb0] sm:$0xff] %v752_v45 }
 0x155   :  { %v758_v61 = vpop.f32.mrf.mxu2 }
 0x156   :  { %v759_v62 = vadd.f32 %v758_v61, %v1607_v37  ;;  %v575_v63 = vpop.f32.mrf.mxu0 }
 0x157   :  { %v664_v0 = vpop.f32.mrf.mxu1 }
 0x158   :  { %801 = vst [vmem:[%s1691_s2 + $0xc8] sm:$0xff] %v759_v62  ;;  %v665_v29 = vadd.f32 %v664_v0, %v575_v63 }
 0x15a   :  { %v754_v1 = vadd.f32 %v753_v20, %v665_v29 }
 0x15c   :  { %799 = vst [vmem:[%s1691_s2 + $0xb8] sm:$0xff] %v754_v1 }
 0x15d   :  { %v761_v3 = vpop.f32.mrf.mxu2 }
 0x15e   :  { %v762_v4 = vadd.f32 %v761_v3, %v1613_v43 }
 0x160   :  { %802 = vst [vmem:[%s1691_s2 + $0xd0] sm:$0xff] %v762_v4 }
 0x165   :  { %v763_v37 = vpop.f32.mrf.mxu2 }
 0x166   :  { %v764_v5 = vadd.f32 %v763_v37, %v1619_v50 }
 0x168   :  { %803 = vst [vmem:[%s1691_s2 + $0xd8] sm:$0xff] %v764_v5 }

// kernel: convnet_forward.8
= control target key start
LH: loop header
LB: loop body
LE: loop exit
PB: predicated region body
PF: predicated region fallthrough
CT: control target
= control target key end

     0   :  { %s3596_s1 = inlined_call_operand.vmem [shape: bf16[1024,128], index: 1, kind: input, shape index: {}]   ;;  %s3597_s0 = inlined_call_operand.vmem [shape: bf16[208,1024], index: 0, kind: input, shape index: {}]   ;;  %s3598_s2 = inlined_call_operand.vmem [shape: f32[208,128], index: 2, kind: output, shape index: {}]  }
   0x1   :  { %v2552_v0 = vld [vmem:[%s3596_s1 + $0x38] sm:$0xff]  ;;  %v2551_v4 = vld [vmem:[%s3596_s1 + $0x30] sm:$0xff]  ;;  %v2550_v8 = vld [vmem:[%s3596_s1 + $0x28] sm:$0xff] }
   0x2   :  { %v2560_v1 = vld [vmem:[%s3596_s1 + $0x78] sm:$0xff]  ;;  %1147 = vmatpush.bf16.msra.mxu0 %v2552_v0  ;;  %v2559_v5 = vld [vmem:[%s3596_s1 + $0x70] sm:$0xff]  ;;  %v2558_v9 = vld [vmem:[%s3596_s1 + $0x68] sm:$0xff] }
   0x3   :  { %v2568_v2 = vld [vmem:[%s3596_s1 + $0xb8] sm:$0xff]  ;;  %1221 = vmatpush.bf16.msra.mxu1 %v2560_v1  ;;  %v2567_v6 = vld [vmem:[%s3596_s1 + $0xb0] sm:$0xff]  ;;  %v2566_v10 = vld [vmem:[%s3596_s1 + $0xa8] sm:$0xff] }
   0x4   :  { %v2576_v3 = vld [vmem:[%s3596_s1 + $0xf8] sm:$0xff]  ;;  %1295 = vmatpush.bf16.msra.mxu2 %v2568_v2  ;;  %v2575_v7 = vld [vmem:[%s3596_s1 + $0xf0] sm:$0xff]  ;;  %v2574_v11 = vld [vmem:[%s3596_s1 + $0xe8] sm:$0xff] }
   0x5   :  { %1369 = vmatpush.bf16.msra.mxu3 %v2576_v3  ;;  %v2549_v12 = vld [vmem:[%s3596_s1 + $0x20] sm:$0xff]  ;;  %v2548_v16 = vld [vmem:[%s3596_s1 + $0x18] sm:$0xff]  ;;  %v2547_v20 = vld [vmem:[%s3596_s1 + $0x10] sm:$0xff] }
   0x6   :  { %1148 = vmatpush.bf16.msra.mxu0 %v2551_v4  ;;  %v2557_v13 = vld [vmem:[%s3596_s1 + $0x60] sm:$0xff]  ;;  %v2556_v17 = vld [vmem:[%s3596_s1 + $0x58] sm:$0xff]  ;;  %v2555_v21 = vld [vmem:[%s3596_s1 + $0x50] sm:$0xff] }
   0x7   :  { %1222 = vmatpush.bf16.msra.mxu1 %v2559_v5  ;;  %v2565_v14 = vld [vmem:[%s3596_s1 + $0xa0] sm:$0xff]  ;;  %v2564_v18 = vld [vmem:[%s3596_s1 + $0x98] sm:$0xff]  ;;  %v2563_v22 = vld [vmem:[%s3596_s1 + $0x90] sm:$0xff] }
   0x8   :  { %1296 = vmatpush.bf16.msra.mxu2 %v2567_v6  ;;  %v2573_v15 = vld [vmem:[%s3596_s1 + $0xe0] sm:$0xff]  ;;  %v2572_v19 = vld [vmem:[%s3596_s1 + $0xd8] sm:$0xff]  ;;  %v2571_v23 = vld [vmem:[%s3596_s1 + $0xd0] sm:$0xff] }
   0x9   :  { %1370 = vmatpush.bf16.msra.mxu3 %v2575_v7  ;;  %v2546_v24 = vld [vmem:[%s3596_s1 + $0x8] sm:$0xff]  ;;  %v2545_v28 = vld [vmem:[%s3596_s1] sm:$0xff]  ;;  %v2600_v40 = vld [vmem:[%s3596_s1 + $0x1b8] sm:$0xff] }
   0xa   :  { %1149 = vmatpush.bf16.msra.mxu0 %v2550_v8  ;;  %v2554_v25 = vld [vmem:[%s3596_s1 + $0x48] sm:$0xff]  ;;  %v2553_v29 = vld [vmem:[%s3596_s1 + $0x40] sm:$0xff]  ;;  %v2584_v41 = vld [vmem:[%s3596_s1 + $0x138] sm:$0xff] }
   0xb   :  { %1223 = vmatpush.bf16.msra.mxu1 %v2558_v9  ;;  %v2562_v26 = vld [vmem:[%s3596_s1 + $0x88] sm:$0xff]  ;;  %v2561_v30 = vld [vmem:[%s3596_s1 + $0x80] sm:$0xff]  ;;  %v2608_v46 = vld [vmem:[%s3596_s1 + $0x1f8] sm:$0xff] }
   0xc   :  { %1297 = vmatpush.bf16.msra.mxu2 %v2566_v10  ;;  %v2570_v27 = vld [vmem:[%s3596_s1 + $0xc8] sm:$0xff]  ;;  %v2569_v31 = vld [vmem:[%s3596_s1 + $0xc0] sm:$0xff]  ;;  %v2592_v47 = vld [vmem:[%s3596_s1 + $0x178] sm:$0xff] }
   0xd   :  { %1371 = vmatpush.bf16.msra.mxu3 %v2574_v11  ;;  %v1771_v32 = vld [vmem:[%s3597_s0] sm:$0xf]  ;;  %v2441_v34 = vld [vmem:[%s3597_s0 + $0x4] sm:$0xf]  ;;  %v1779_v36 = vld [vmem:[%s3597_s0 + $0x8] sm:$0xf] }
   0xe   :  { %1150 = vmatpush.bf16.msra.mxu0 %v2549_v12  ;;  %v2445_v33 = vld [vmem:[%s3597_s0 + $0x1c] sm:$0xf0]  ;;  %v1773_v35 = vld [vmem:[%s3597_s0 + $0x20] sm:$0xf0]  ;;  %v2446_v37 = vld [vmem:[%s3597_s0 + $0x24] sm:$0xf0] }
   0xf   :  { %1224 = vmatpush.bf16.msra.mxu1 %v2557_v13  ;;  %v2442_v38 = vld [vmem:[%s3597_s0 + $0xc] sm:$0xf]  ;;  %v1772_v42 = vor.u32 %v2445_v33, %v1771_v32  ;;  %v1776_v43 = vor.u32 %v2441_v34, %v1773_v35  ;;  %v1780_v44 = vor.u32 %v2446_v37, %v1779_v36  ;;  %v2599_v48 = vld [vmem:[%s3596_s1 + $0x1b0] sm:$0xff]  ;;  %v1803_v52 = vld [vmem:[%s3597_s0 + $0x40] sm:$0xf] }
  0x10   :  { %1298 = vmatpush.bf16.msra.mxu2 %v2565_v14  ;;  %v1781_v39 = vld [vmem:[%s3597_s0 + $0x28] sm:$0xf0]  ;;  %v2583_v49 = vld [vmem:[%s3596_s1 + $0x130] sm:$0xff]  ;;  %v2453_v53 = vld [vmem:[%s3597_s0 + $0x5c] sm:$0xf0] }
  0x11   :  { %1372 = vmatpush.bf16.msra.mxu3 %v2573_v15  ;;  %v1784_v45 = vor.u32 %v2442_v38, %v1781_v39  ;;  %v2607_v50 = vld [vmem:[%s3596_s1 + $0x1f0] sm:$0xff]  ;;  %v2449_v54 = vld [vmem:[%s3597_s0 + $0x44] sm:$0xf]  ;;  %v1811_v56 = vld [vmem:[%s3597_s0 + $0x48] sm:$0xf]  ;;  %v1804_v60 = vor.u32 %v2453_v53, %v1803_v52 }
  0x12   :  { %1151 = vmatpush.bf16.msra.mxu0 %v2548_v16  ;;  %v2591_v51 = vld [vmem:[%s3596_s1 + $0x170] sm:$0xff]  ;;  %v1805_v55 = vld [vmem:[%s3597_s0 + $0x60] sm:$0xf0]  ;;  %v2454_v57 = vld [vmem:[%s3597_s0 + $0x64] sm:$0xf0] }
  0x13   :  { %1225 = vmatpush.bf16.msra.mxu1 %v2556_v17  ;;  %v2450_v58 = vld [vmem:[%s3597_s0 + $0x4c] sm:$0xf]  ;;  %v1808_v61 = vor.u32 %v2449_v54, %v1805_v55  ;;  %v1812_v62 = vor.u32 %v2454_v57, %v1811_v56  ;;  %v1835_v4 = vld [vmem:[%s3597_s0 + $0x80] sm:$0xf]  ;;  %v2457_v6 = vld [vmem:[%s3597_s0 + $0x84] sm:$0xf] }
  0x14   :  { %1299 = vmatpush.bf16.msra.mxu2 %v2564_v18  ;;  %v1813_v59 = vld [vmem:[%s3597_s0 + $0x68] sm:$0xf0]  ;;  %v2461_v5 = vld [vmem:[%s3597_s0 + $0x9c] sm:$0xf0]  ;;  %v1837_v7 = vld [vmem:[%s3597_s0 + $0xa0] sm:$0xf0] }
  0x15   :  { %1373 = vmatpush.bf16.msra.mxu3 %v2572_v19  ;;  %v1816_v63 = vor.u32 %v2450_v58, %v1813_v59  ;;  %v2598_v0 = vld [vmem:[%s3596_s1 + $0x1a8] sm:$0xff]  ;;  %v1836_v12 = vor.u32 %v2461_v5, %v1835_v4  ;;  %v1840_v13 = vor.u32 %v2457_v6, %v1837_v7  ;;  %v2597_v16 = vld [vmem:[%s3596_s1 + $0x1a0] sm:$0xff] }
  0x16   :  { %1152 = vmatpush.bf16.msra.mxu0 %v2547_v20  ;;  %v2582_v1 = vld [vmem:[%s3596_s1 + $0x128] sm:$0xff]  ;;  %v1867_v17 = vld [vmem:[%s3597_s0 + $0xc0] sm:$0xf]  ;;  %v2465_v19 = vld [vmem:[%s3597_s0 + $0xc4] sm:$0xf] }
  0x17   :  { %1226 = vmatpush.bf16.msra.mxu1 %v2555_v21  ;;  %v2606_v2 = vld [vmem:[%s3596_s1 + $0x1e8] sm:$0xff]  ;;  %v2469_v18 = vld [vmem:[%s3597_s0 + $0xdc] sm:$0xf0]  ;;  %v1869_v20 = vld [vmem:[%s3597_s0 + $0xe0] sm:$0xf0] }
  0x18   :  { %1300 = vmatpush.bf16.msra.mxu2 %v2563_v22  ;;  %v2590_v3 = vld [vmem:[%s3596_s1 + $0x168] sm:$0xff]  ;;  %v1899_v32 = vld [vmem:[%s3597_s0 + $0x100] sm:$0xf]  ;;  %v2473_v34 = vld [vmem:[%s3597_s0 + $0x104] sm:$0xf] }
  0x19   :  { %1374 = vmatpush.bf16.msra.mxu3 %v2571_v23  ;;  %v1843_v8 = vld [vmem:[%s3597_s0 + $0x88] sm:$0xf]  ;;  %v2458_v10 = vld [vmem:[%s3597_s0 + $0x8c] sm:$0xf]  ;;  %v2477_v33 = vld [vmem:[%s3597_s0 + $0x11c] sm:$0xf0] }
  0x1a   :  { %1153 = vmatpush.bf16.msra.mxu0 %v2546_v24  ;;  %v2462_v9 = vld [vmem:[%s3597_s0 + $0xa4] sm:$0xf0]  ;;  %v1845_v11 = vld [vmem:[%s3597_s0 + $0xa8] sm:$0xf0]  ;;  %v1901_v35 = vld [vmem:[%s3597_s0 + $0x120] sm:$0xf0] }
  0x1b   :  { %1227 = vmatpush.bf16.msra.mxu1 %v2554_v25  ;;  %v1844_v14 = vor.u32 %v2462_v9, %v1843_v8  ;;  %v1848_v15 = vor.u32 %v2458_v10, %v1845_v11  ;;  %v1875_v21 = vld [vmem:[%s3597_s0 + $0xc8] sm:$0xf]  ;;  %v2466_v23 = vld [vmem:[%s3597_s0 + $0xcc] sm:$0xf]  ;;  %v1868_v25 = vor.u32 %v2469_v18, %v1867_v17  ;;  %v2595_v8 = vld [vmem:[%s3596_s1 + $0x190] sm:$0xff] }
  0x1c   :  { %1301 = vmatpush.bf16.msra.mxu2 %v2562_v26  ;;  %v2470_v22 = vld [vmem:[%s3597_s0 + $0xe4] sm:$0xf0]  ;;  %v1877_v24 = vld [vmem:[%s3597_s0 + $0xe8] sm:$0xf0]  ;;  %v1872_v26 = vor.u32 %v2465_v19, %v1869_v20  ;;  %v2579_v9 = vld [vmem:[%s3596_s1 + $0x110] sm:$0xff] }
  0x1d   :  { %1375 = vmatpush.bf16.msra.mxu3 %v2570_v27  ;;  %v1876_v27 = vor.u32 %v2470_v22, %v1875_v21  ;;  %v1907_v36 = vld [vmem:[%s3597_s0 + $0x108] sm:$0xf]  ;;  %v2474_v38 = vld [vmem:[%s3597_s0 + $0x10c] sm:$0xf]  ;;  %v2603_v10 = vld [vmem:[%s3596_s1 + $0x1d0] sm:$0xff] }
  0x1e   :  { %1154 = vmatpush.bf16.msra.mxu0 %v2545_v28  ;;  %v1880_v28 = vor.u32 %v2466_v23, %v1877_v24  ;;  %v2478_v37 = vld [vmem:[%s3597_s0 + $0x124] sm:$0xf0]  ;;  %v1909_v39 = vld [vmem:[%s3597_s0 + $0x128] sm:$0xf0]  ;;  %v2587_v11 = vld [vmem:[%s3596_s1 + $0x150] sm:$0xff] }
  0x1f   :  { %1228 = vmatpush.bf16.msra.mxu1 %v2553_v29  ;;  %v2581_v29 = vld [vmem:[%s3596_s1 + $0x120] sm:$0xff]  ;;  %v1939_v52 = vld [vmem:[%s3597_s0 + $0x148] sm:$0xf]  ;;  %v2482_v54 = vld [vmem:[%s3597_s0 + $0x14c] sm:$0xf] }
  0x20   :  { %1302 = vmatpush.bf16.msra.mxu2 %v2561_v30  ;;  %v2605_v30 = vld [vmem:[%s3596_s1 + $0x1e0] sm:$0xff]  ;;  %v2486_v53 = vld [vmem:[%s3597_s0 + $0x164] sm:$0xf0]  ;;  %v1941_v55 = vld [vmem:[%s3597_s0 + $0x168] sm:$0xf0] }
  0x21   :  { %1376 = vmatpush.bf16.msra.mxu3 %v2569_v31  ;;  %1155 = vmatmul.bf16.vlgmr.msra.gmra.mxu0 %v1772_v42  ;;  %v2589_v31 = vld [vmem:[%s3596_s1 + $0x160] sm:$0xff]  ;;  %v1908_v42 = vor.u32 %v2478_v37, %v1907_v36  ;;  %v1940_v58 = vor.u32 %v2486_v53, %v1939_v52  ;;  %v1944_v59 = vor.u32 %v2482_v54, %v1941_v55  ;;  %v2502_v17 = vld [vmem:[%s3597_s0 + $0x1e4] sm:$0xf0]  ;;  %v2498_v18 = vld [vmem:[%s3597_s0 + $0x1cc] sm:$0xf] }
  0x22   :  { %1443 = vmatpush.bf16.msrb.mxu0 %v2584_v41  ;;  %1229 = vmatmul.bf16.vlgmr.msra.gmra.mxu1 %v1776_v43  ;;  %v1904_v41 = vor.u32 %v2473_v34, %v1901_v35  ;;  %v1912_v43 = vor.u32 %v2474_v38, %v1909_v39  ;;  %v2005_v19 = vld [vmem:[%s3597_s0 + $0x1e8] sm:$0xf0]  ;;  %v2027_v24 = vld [vmem:[%s3597_s0 + $0x200] sm:$0xf]  ;;  %v2513_v52 = vld [vmem:[%s3597_s0 + $0x244] sm:$0xf] }
  0x23   :  { %1303 = vmatmul.bf16.vlgmr.msra.gmra.mxu2 %v1780_v44  ;;  %1517 = vmatpush.bf16.msrb.mxu1 %v2592_v47  ;;  %v2596_v44 = vld [vmem:[%s3596_s1 + $0x198] sm:$0xff]  ;;  %v2008_v23 = vor.u32 %v2498_v18, %v2005_v19  ;;  %v2594_v39 = vld [vmem:[%s3596_s1 + $0x188] sm:$0xff]  ;;  %v2061_v53 = vld [vmem:[%s3597_s0 + $0x260] sm:$0xf0] }
  0x24   :  { %1591 = vmatpush.bf16.msrb.mxu2 %v2600_v40  ;;  %1377 = vmatmul.bf16.vlgmr.msra.gmra.mxu3 %v1784_v45  ;;  %v1900_v40 = vor.u32 %v2477_v33, %v1899_v32  ;;  %v2580_v45 = vld [vmem:[%s3596_s1 + $0x118] sm:$0xff]  ;;  %v2067_v54 = vld [vmem:[%s3597_s0 + $0x248] sm:$0xf]  ;;  %v2521_v18 = vld [vmem:[%s3597_s0 + $0x284] sm:$0xf] }
  0x25   :  { %1665 = vmatpush.bf16.msrb.mxu3 %v2608_v46  ;;  %v2604_v46 = vld [vmem:[%s3596_s1 + $0x1d8] sm:$0xff]  ;;  %v2518_v55 = vld [vmem:[%s3597_s0 + $0x264] sm:$0xf0]  ;;  %v2093_v19 = vld [vmem:[%s3597_s0 + $0x2a0] sm:$0xf0] }
  0x26   :  { %1444 = vmatpush.bf16.msrb.mxu0 %v2583_v49  ;;  %v2588_v47 = vld [vmem:[%s3596_s1 + $0x158] sm:$0xff]  ;;  %v2485_v49 = vld [vmem:[%s3597_s0 + $0x15c] sm:$0xf0] }
  0x27   :  { %1518 = vmatpush.bf16.msrb.mxu1 %v2591_v51  ;;  %v1933_v51 = vld [vmem:[%s3597_s0 + $0x160] sm:$0xf0] }
  0x28   :  { %1592 = vmatpush.bf16.msrb.mxu2 %v2599_v48  ;;  %v1931_v48 = vld [vmem:[%s3597_s0 + $0x140] sm:$0xf] }
  0x29   :  { %1666 = vmatpush.bf16.msrb.mxu3 %v2607_v50  ;;  %v2481_v50 = vld [vmem:[%s3597_s0 + $0x144] sm:$0xf]  ;;  %v1932_v56 = vor.u32 %v2485_v49, %v1931_v48 }
  0x2a   :  { %1445 = vmatpush.bf16.msrb.mxu0 %v2582_v1  ;;  %v1936_v57 = vor.u32 %v2481_v50, %v1933_v51  ;;  %v2494_v1 = vld [vmem:[%s3597_s0 + $0x1a4] sm:$0xf0]  ;;  %v2059_v50 = vld [vmem:[%s3597_s0 + $0x240] sm:$0xf] }
  0x2b   :  { %1519 = vmatpush.bf16.msrb.mxu1 %v2590_v3  ;;  %v1973_v3 = vld [vmem:[%s3597_s0 + $0x1a8] sm:$0xf0]  ;;  %v2517_v51 = vld [vmem:[%s3597_s0 + $0x25c] sm:$0xf0] }
  0x2c   :  { %1593 = vmatpush.bf16.msrb.mxu2 %v2598_v0  ;;  %v1971_v0 = vld [vmem:[%s3597_s0 + $0x188] sm:$0xf] }
  0x2d   :  { %1667 = vmatpush.bf16.msrb.mxu3 %v2606_v2  ;;  %v2490_v2 = vld [vmem:[%s3597_s0 + $0x18c] sm:$0xf]  ;;  %v1972_v6 = vor.u32 %v2494_v1, %v1971_v0  ;;  %v2068_v1 = vor.u32 %v2518_v55, %v2067_v54 }
  0x2e   :  { %1446 = vmatpush.bf16.msrb.mxu0 %v2581_v29  ;;  %v1976_v7 = vor.u32 %v2490_v2, %v1973_v3  ;;  %v2510_v29 = vld [vmem:[%s3597_s0 + $0x224] sm:$0xf0] }
  0x2f   :  { %1520 = vmatpush.bf16.msrb.mxu1 %v2589_v31  ;;  %v2037_v31 = vld [vmem:[%s3597_s0 + $0x228] sm:$0xf0] }
  0x30   :  { %1594 = vmatpush.bf16.msrb.mxu2 %v2597_v16  ;;  %v2003_v16 = vld [vmem:[%s3597_s0 + $0x1c8] sm:$0xf] }
  0x31   :  { %1160 = vmatmul.bf16.gmra.mxu0 %v1804_v60  ;;  %1668 = vmatpush.bf16.msrb.mxu3 %v2605_v30  ;;  %v1963_v60 = vld [vmem:[%s3597_s0 + $0x180] sm:$0xf]  ;;  %v2004_v22 = vor.u32 %v2502_v17, %v2003_v16  ;;  %v2506_v30 = vld [vmem:[%s3597_s0 + $0x20c] sm:$0xf] }
  0x32   :  { %1234 = vmatmul.bf16.gmra.mxu1 %v1808_v61  ;;  %1447 = vmatpush.bf16.msrb.mxu0 %v2580_v45  ;;  %v2493_v61 = vld [vmem:[%s3597_s0 + $0x19c] sm:$0xf0]  ;;  %v2040_v37 = vor.u32 %v2506_v30, %v2037_v31 }
  0x33   :  { %1308 = vmatmul.bf16.gmra.mxu2 %v1812_v62  ;;  %1521 = vmatpush.bf16.msrb.mxu1 %v2588_v47  ;;  %v2489_v62 = vld [vmem:[%s3597_s0 + $0x184] sm:$0xf]  ;;  %v1964_v4 = vor.u32 %v2493_v61, %v1963_v60  ;;  %v2060_v60 = vor.u32 %v2517_v51, %v2059_v50  ;;  %v2064_v61 = vor.u32 %v2513_v52, %v2061_v53  ;;  %v2525_v16 = vld [vmem:[%s3597_s0 + $0x29c] sm:$0xf0]  ;;  %v2133_v50 = vld [vmem:[%s3597_s0 + $0x2e8] sm:$0xf0] }
  0x34   :  { %1382 = vmatmul.bf16.gmra.mxu3 %v1816_v63  ;;  %1595 = vmatpush.bf16.msrb.mxu2 %v2596_v44  ;;  %v1965_v63 = vld [vmem:[%s3597_s0 + $0x1a0] sm:$0xf0] }
  0x35   :  { %1669 = vmatpush.bf16.msrb.mxu3 %v2604_v46  ;;  %v1968_v5 = vor.u32 %v2489_v62, %v1965_v63  ;;  %v2585_v17 = vld [vmem:[%s3596_s1 + $0x140] sm:$0xff] }
  0x36   :  { %1448 = vmatpush.bf16.msrb.mxu0 %v2579_v9 }
  0x37   :  { %1522 = vmatpush.bf16.msrb.mxu1 %v2587_v11 }
  0x38   :  { %1596 = vmatpush.bf16.msrb.mxu2 %v2595_v8 }
  0x39   :  { %1670 = vmatpush.bf16.msrb.mxu3 %v2603_v10 }
  0x3c   :  { %1597 = vmatpush.bf16.msrb.mxu2 %v2594_v39 }
  0x41   :  { %1165 = vmatmul.bf16.gmra.mxu0 %v1836_v12  ;;  %v1995_v12 = vld [vmem:[%s3597_s0 + $0x1c0] sm:$0xf] }
  0x42   :  { %1239 = vmatmul.bf16.gmra.mxu1 %v1840_v13  ;;  %v2501_v13 = vld [vmem:[%s3597_s0 + $0x1dc] sm:$0xf0] }
  0x43   :  { %1313 = vmatmul.bf16.gmra.mxu2 %v1844_v14  ;;  %v2497_v14 = vld [vmem:[%s3597_s0 + $0x1c4] sm:$0xf]  ;;  %v1996_v20 = vor.u32 %v2501_v13, %v1995_v12 }
  0x44   :  { %1387 = vmatmul.bf16.gmra.mxu3 %v1848_v15  ;;  %v1997_v15 = vld [vmem:[%s3597_s0 + $0x1e0] sm:$0xf0] }
  0x45   :  { %v2000_v21 = vor.u32 %v2497_v14, %v1997_v15  ;;  %v2593_v12 = vld [vmem:[%s3596_s1 + $0x180] sm:$0xff] }
  0x46   :  { %v2577_v13 = vld [vmem:[%s3596_s1 + $0x100] sm:$0xff]  ;;  %1598 = vmatpush.bf16.msrb.mxu2 %v2593_v12  ;;  %v2542_v12 = vld [vmem:[%s3597_s0 + $0x324] sm:$0xf0] }
  0x47   :  { %v2601_v14 = vld [vmem:[%s3596_s1 + $0x1c0] sm:$0xff] }
  0x48   :  { %v2091_v15 = vld [vmem:[%s3597_s0 + $0x280] sm:$0xf] }
  0x51   :  { %1170 = vmatmul.bf16.gmra.mxu0 %v1868_v25  ;;  %v2509_v25 = vld [vmem:[%s3597_s0 + $0x21c] sm:$0xf0] }
  0x52   :  { %1244 = vmatmul.bf16.gmra.mxu1 %v1872_v26  ;;  %v2505_v26 = vld [vmem:[%s3597_s0 + $0x204] sm:$0xf]  ;;  %v2028_v32 = vor.u32 %v2509_v25, %v2027_v24 }
  0x53   :  { %1318 = vmatmul.bf16.gmra.mxu2 %v1876_v27  ;;  %v2029_v27 = vld [vmem:[%s3597_s0 + $0x220] sm:$0xf0] }
  0x54   :  { %1392 = vmatmul.bf16.gmra.mxu3 %v1880_v28  ;;  %v2035_v28 = vld [vmem:[%s3597_s0 + $0x208] sm:$0xf]  ;;  %v2032_v33 = vor.u32 %v2505_v26, %v2029_v27  ;;  %v2092_v26 = vor.u32 %v2525_v16, %v2091_v15  ;;  %v2096_v27 = vor.u32 %v2521_v18, %v2093_v19 }
  0x55   :  { %v2036_v36 = vor.u32 %v2510_v29, %v2035_v28 }
  0x61   :  { %1175 = vmatmul.bf16.gmra.mxu0 %v1900_v40  ;;  %v2578_v40 = vld [vmem:[%s3596_s1 + $0x108] sm:$0xff] }
  0x62   :  { %1249 = vmatmul.bf16.gmra.mxu1 %v1904_v41  ;;  %v2602_v41 = vld [vmem:[%s3596_s1 + $0x1c8] sm:$0xff]  ;;  %1449 = vmatpush.bf16.msrb.mxu0 %v2578_v40 }
  0x63   :  { %1323 = vmatmul.bf16.gmra.mxu2 %v1908_v42  ;;  %v2586_v42 = vld [vmem:[%s3596_s1 + $0x148] sm:$0xff]  ;;  %1671 = vmatpush.bf16.msrb.mxu3 %v2602_v41 }
  0x64   :  { %1397 = vmatmul.bf16.gmra.mxu3 %v1912_v43  ;;  %1523 = vmatpush.bf16.msrb.mxu1 %v2586_v42  ;;  %v2123_v42 = vld [vmem:[%s3597_s0 + $0x2c0] sm:$0xf] }
  0x66   :  { %1450 = vmatpush.bf16.msrb.mxu0 %v2577_v13  ;;  %v2538_v13 = vld [vmem:[%s3597_s0 + $0x30c] sm:$0xf] }
  0x67   :  { %1672 = vmatpush.bf16.msrb.mxu3 %v2601_v14  ;;  %v2165_v14 = vld [vmem:[%s3597_s0 + $0x328] sm:$0xf0] }
  0x68   :  { %1524 = vmatpush.bf16.msrb.mxu1 %v2585_v17 }
  0x71   :  { %1180 = vmatmul.bf16.gmra.mxu0 %v1932_v56  ;;  %v2514_v56 = vld [vmem:[%s3597_s0 + $0x24c] sm:$0xf] }
  0x72   :  { %1254 = vmatmul.bf16.gmra.mxu1 %v1936_v57  ;;  %v2069_v57 = vld [vmem:[%s3597_s0 + $0x268] sm:$0xf0] }
  0x73   :  { %1328 = vmatmul.bf16.gmra.mxu2 %v1940_v58  ;;  %v2072_v2 = vor.u32 %v2514_v56, %v2069_v57 }
  0x74   :  { %1402 = vmatmul.bf16.gmra.mxu3 %v1944_v59 }
  0x81   :  { %1185 = vmatmul.bf16.gmra.mxu0 %v1964_v4 }
  0x82   :  { %1259 = vmatmul.bf16.gmra.mxu1 %v1968_v5 }
  0x83   :  { %1333 = vmatmul.bf16.gmra.mxu2 %v1972_v6 }
  0x84   :  { %1407 = vmatmul.bf16.gmra.mxu3 %v1976_v7 }
  0x91   :  { %1190 = vmatmul.bf16.gmra.mxu0 %v1996_v20  ;;  %v2099_v20 = vld [vmem:[%s3597_s0 + $0x288] sm:$0xf] }
  0x92   :  { %1264 = vmatmul.bf16.gmra.mxu1 %v2000_v21  ;;  %v2526_v21 = vld [vmem:[%s3597_s0 + $0x2a4] sm:$0xf0] }
  0x93   :  { %1338 = vmatmul.bf16.gmra.mxu2 %v2004_v22  ;;  %v2522_v22 = vld [vmem:[%s3597_s0 + $0x28c] sm:$0xf]  ;;  %v2100_v31 = vor.u32 %v2526_v21, %v2099_v20 }
  0x94   :  { %1412 = vmatmul.bf16.gmra.mxu3 %v2008_v23  ;;  %v2101_v23 = vld [vmem:[%s3597_s0 + $0x2a8] sm:$0xf0] }
  0x9e   :  { %v1156_v34 = vpop.f32.mrf.mxu0 }
  0x9f   :  { %v1230_v35 = vpop.f32.mrf.mxu1 }
  0xa0   :  { %v1231_v38 = vadd.f32 %v1230_v35, %v1156_v34 }
  0xa1   :  { %1195 = vmatmul.bf16.gmra.mxu0 %v2028_v32  ;;  %v2104_v32 = vor.u32 %v2522_v22, %v2101_v23  ;;  %v2168_v23 = vor.u32 %v2538_v13, %v2165_v14 }
  0xa2   :  { %1269 = vmatmul.bf16.gmra.mxu1 %v2032_v33 }
  0xa3   :  { %1343 = vmatmul.bf16.gmra.mxu2 %v2036_v36 }
  0xa4   :  { %1417 = vmatmul.bf16.gmra.mxu3 %v2040_v37 }
  0xa6   :  { %v1304_v43 = vpop.f32.mrf.mxu2  ;;  %v1158_v46 = vpop.f32.mrf.mxu0 }
  0xa7   :  { %v1378_v44 = vpop.f32.mrf.mxu3  ;;  %v1305_v45 = vadd.f32 %v1304_v43, %v1231_v38  ;;  %v1232_v47 = vpop.f32.mrf.mxu1  ;;  %v2533_v43 = vld [vmem:[%s3597_s0 + $0x2dc] sm:$0xf0] }
  0xa8   :  { %v1233_v48 = vadd.f32 %v1232_v47, %v1158_v46  ;;  %v2131_v46 = vld [vmem:[%s3597_s0 + $0x2c8] sm:$0xf]  ;;  %v2124_v53 = vor.u32 %v2533_v43, %v2123_v42  ;;  %v1797_v42 = vld [vmem:[%s3597_s0 + $0x38] sm:$0xf0] }
  0xa9   :  { %v3020_v49 = vadd.f32 %v1378_v44, %v1305_v45  ;;  %v2529_v44 = vld [vmem:[%s3597_s0 + $0x2c4] sm:$0xf]  ;;  %v2534_v47 = vld [vmem:[%s3597_s0 + $0x2e4] sm:$0xf0] }
  0xaa   :  { %v2125_v45 = vld [vmem:[%s3597_s0 + $0x2e0] sm:$0xf0] }
  0xab   :  { %v2128_v54 = vor.u32 %v2529_v44, %v2125_v45 }
  0xae   :  { %v1306_v58 = vpop.f32.mrf.mxu2  ;;  %v1161_v63 = vpop.f32.mrf.mxu0 }
  0xaf   :  { %v1380_v59 = vpop.f32.mrf.mxu3  ;;  %v1307_v62 = vadd.f32 %v1306_v58, %v1233_v48  ;;  %v1235_v0 = vpop.f32.mrf.mxu1  ;;  %v2530_v48 = vld [vmem:[%s3597_s0 + $0x2cc] sm:$0xf]  ;;  %v2132_v58 = vor.u32 %v2534_v47, %v2131_v46 }
  0xb0   :  { %v1236_v3 = vadd.f32 %v1235_v0, %v1161_v63 }
  0xb1   :  { %v3046_v4 = vadd.f32 %v1380_v59, %v1307_v62  ;;  %1200 = vmatmul.bf16.gmra.mxu0 %v2060_v60  ;;  %v2136_v59 = vor.u32 %v2530_v48, %v2133_v50 }
  0xb2   :  { %1274 = vmatmul.bf16.gmra.mxu1 %v2064_v61 }
  0xb3   :  { %1348 = vmatmul.bf16.gmra.mxu2 %v2068_v1 }
  0xb4   :  { %1422 = vmatmul.bf16.gmra.mxu3 %v2072_v2 }
  0xb6   :  { %v1309_v5 = vpop.f32.mrf.mxu2  ;;  %v1163_v8 = vpop.f32.mrf.mxu0 }
  0xb7   :  { %v1383_v6 = vpop.f32.mrf.mxu3  ;;  %v1310_v7 = vadd.f32 %v1309_v5, %v1236_v3  ;;  %v1237_v9 = vpop.f32.mrf.mxu1 }
  0xb8   :  { %v1238_v10 = vadd.f32 %v1237_v9, %v1163_v8  ;;  %v2537_v8 = vld [vmem:[%s3597_s0 + $0x304] sm:$0xf] }
  0xb9   :  { %v3048_v11 = vadd.f32 %v1383_v6, %v1310_v7  ;;  %v2155_v6 = vld [vmem:[%s3597_s0 + $0x300] sm:$0xf]  ;;  %v2157_v9 = vld [vmem:[%s3597_s0 + $0x320] sm:$0xf0] }
  0xba   :  { %v2541_v7 = vld [vmem:[%s3597_s0 + $0x31c] sm:$0xf0]  ;;  %v2160_v18 = vor.u32 %v2537_v8, %v2157_v9  ;;  %v1829_v8 = vld [vmem:[%s3597_s0 + $0x78] sm:$0xf0] }
  0xbb   :  { %v2156_v17 = vor.u32 %v2541_v7, %v2155_v6  ;;  %v2456_v6 = vld [vmem:[%s3597_s0 + $0x74] sm:$0xf0]  ;;  %v2452_v7 = vld [vmem:[%s3597_s0 + $0x5c] sm:$0xf] }
  0xbe   :  { %v1311_v24 = vpop.f32.mrf.mxu2  ;;  %v1166_v29 = vpop.f32.mrf.mxu0 }
  0xbf   :  { %v1385_v25 = vpop.f32.mrf.mxu3  ;;  %v1312_v28 = vadd.f32 %v1311_v24, %v1238_v10  ;;  %v1240_v30 = vpop.f32.mrf.mxu1  ;;  %v2163_v10 = vld [vmem:[%s3597_s0 + $0x308] sm:$0xf] }
  0xc0   :  { %v1241_v33 = vadd.f32 %v1240_v30, %v1166_v29  ;;  %v2164_v22 = vor.u32 %v2542_v12, %v2163_v10 }
  0xc1   :  { %v3086_v34 = vadd.f32 %v1385_v25, %v1312_v28  ;;  %1205 = vmatmul.bf16.gmra.mxu0 %v2092_v26 }
  0xc2   :  { %1279 = vmatmul.bf16.gmra.mxu1 %v2096_v27 }
  0xc3   :  { %1353 = vmatmul.bf16.gmra.mxu2 %v2100_v31 }
  0xc4   :  { %1427 = vmatmul.bf16.gmra.mxu3 %v2104_v32 }
  0xc6   :  { %v1314_v35 = vpop.f32.mrf.mxu2  ;;  %v1168_v38 = vpop.f32.mrf.mxu0 }
  0xc7   :  { %v1388_v36 = vpop.f32.mrf.mxu3  ;;  %v1315_v37 = vadd.f32 %v1314_v35, %v1241_v33  ;;  %v1242_v39 = vpop.f32.mrf.mxu1  ;;  %v1787_v33 = vld [vmem:[%s3597_s0 + $0x10] sm:$0xf] }
  0xc8   :  { %v1243_v40 = vadd.f32 %v1242_v39, %v1168_v38  ;;  %v2447_v35 = vld [vmem:[%s3597_s0 + $0x2c] sm:$0xf0]  ;;  %v1795_v38 = vld [vmem:[%s3597_s0 + $0x18] sm:$0xf] }
  0xc9   :  { %v3088_v41 = vadd.f32 %v1388_v36, %v1315_v37  ;;  %v2443_v36 = vld [vmem:[%s3597_s0 + $0x14] sm:$0xf]  ;;  %v2448_v39 = vld [vmem:[%s3597_s0 + $0x34] sm:$0xf0]  ;;  %v1788_v45 = vor.u32 %v2447_v35, %v1787_v33 }
  0xca   :  { %v1789_v37 = vld [vmem:[%s3597_s0 + $0x30] sm:$0xf0]  ;;  %v1859_v35 = vld [vmem:[%s3597_s0 + $0x98] sm:$0xf] }
  0xcb   :  { %v1792_v46 = vor.u32 %v2443_v36, %v1789_v37  ;;  %v1853_v33 = vld [vmem:[%s3597_s0 + $0xb0] sm:$0xf0]  ;;  %v2464_v36 = vld [vmem:[%s3597_s0 + $0xb4] sm:$0xf0]  ;;  %v2460_v37 = vld [vmem:[%s3597_s0 + $0x9c] sm:$0xf] }
  0xce   :  { %v1316_v51 = vpop.f32.mrf.mxu2  ;;  %v1171_v56 = vpop.f32.mrf.mxu0 }
  0xcf   :  { %v1390_v52 = vpop.f32.mrf.mxu3  ;;  %v1317_v55 = vadd.f32 %v1316_v51, %v1243_v40  ;;  %v1245_v57 = vpop.f32.mrf.mxu1  ;;  %v2444_v40 = vld [vmem:[%s3597_s0 + $0x1c] sm:$0xf]  ;;  %v1796_v51 = vor.u32 %v2448_v39, %v1795_v38 }
  0xd0   :  { %v1246_v60 = vadd.f32 %v1245_v57, %v1171_v56  ;;  %v1861_v38 = vld [vmem:[%s3597_s0 + $0xb8] sm:$0xf0] }
  0xd1   :  { %v3114_v61 = vadd.f32 %v1390_v52, %v1317_v55  ;;  %1210 = vmatmul.bf16.gmra.mxu0 %v2124_v53  ;;  %v1800_v52 = vor.u32 %v2444_v40, %v1797_v42 }
  0xd2   :  { %1284 = vmatmul.bf16.gmra.mxu1 %v2128_v54 }
  0xd3   :  { %1358 = vmatmul.bf16.gmra.mxu2 %v2132_v58 }
  0xd4   :  { %1432 = vmatmul.bf16.gmra.mxu3 %v2136_v59 }
  0xd6   :  { %v1319_v62 = vpop.f32.mrf.mxu2  ;;  %v1173_v1 = vpop.f32.mrf.mxu0 }
  0xd7   :  { %v1393_v63 = vpop.f32.mrf.mxu3  ;;  %v1320_v0 = vadd.f32 %v1319_v62, %v1246_v60  ;;  %v1247_v2 = vpop.f32.mrf.mxu1 }
  0xd8   :  { %v1248_v3 = vadd.f32 %v1247_v2, %v1173_v1  ;;  %v2451_v1 = vld [vmem:[%s3597_s0 + $0x54] sm:$0xf] }
  0xd9   :  { %v3116_v5 = vadd.f32 %v1393_v63, %v1320_v0  ;;  %v1819_v63 = vld [vmem:[%s3597_s0 + $0x50] sm:$0xf]  ;;  %v1821_v2 = vld [vmem:[%s3597_s0 + $0x70] sm:$0xf0] }
  0xda   :  { %v2455_v0 = vld [vmem:[%s3597_s0 + $0x6c] sm:$0xf0]  ;;  %v1824_v13 = vor.u32 %v2451_v1, %v1821_v2  ;;  %v1885_v1 = vld [vmem:[%s3597_s0 + $0xf0] sm:$0xf0]  ;;  %v1891_v2 = vld [vmem:[%s3597_s0 + $0xd8] sm:$0xf] }
  0xdb   :  { %v1820_v12 = vor.u32 %v2455_v0, %v1819_v63  ;;  %v2471_v63 = vld [vmem:[%s3597_s0 + $0xec] sm:$0xf0]  ;;  %v2467_v0 = vld [vmem:[%s3597_s0 + $0xd4] sm:$0xf] }
  0xde   :  { %v1321_v15 = vpop.f32.mrf.mxu2  ;;  %v1176_v20 = vpop.f32.mrf.mxu0 }
  0xdf   :  { %v1395_v16 = vpop.f32.mrf.mxu3  ;;  %v1322_v19 = vadd.f32 %v1321_v15, %v1248_v3  ;;  %v1250_v21 = vpop.f32.mrf.mxu1  ;;  %v1827_v3 = vld [vmem:[%s3597_s0 + $0x58] sm:$0xf] }
  0xe0   :  { %v1251_v24 = vadd.f32 %v1250_v21, %v1176_v20 }
  0xe1   :  { %v3142_v25 = vadd.f32 %v1395_v16, %v1322_v19  ;;  %1215 = vmatmul.bf16.gmra.mxu0 %v2156_v17  ;;  %v1828_v17 = vor.u32 %v2456_v6, %v1827_v3  ;;  %v2472_v3 = vld [vmem:[%s3597_s0 + $0xf4] sm:$0xf0]  ;;  %v2468_v6 = vld [vmem:[%s3597_s0 + $0xdc] sm:$0xf] }
  0xe2   :  { %1289 = vmatmul.bf16.gmra.mxu1 %v2160_v18  ;;  %v1832_v18 = vor.u32 %v2452_v7, %v1829_v8  ;;  %v1893_v7 = vld [vmem:[%s3597_s0 + $0xf8] sm:$0xf0] }
  0xe3   :  { %1363 = vmatmul.bf16.gmra.mxu2 %v2164_v22 }
  0xe4   :  { %1437 = vmatmul.bf16.gmra.mxu3 %v2168_v23 }
  0xe6   :  { %v1324_v26 = vpop.f32.mrf.mxu2  ;;  %v1178_v29 = vpop.f32.mrf.mxu0 }
  0xe7   :  { %v1398_v27 = vpop.f32.mrf.mxu3  ;;  %v1325_v28 = vadd.f32 %v1324_v26, %v1251_v24  ;;  %v1252_v30 = vpop.f32.mrf.mxu1 }
  0xe8   :  { %v1253_v31 = vadd.f32 %v1252_v30, %v1178_v29  ;;  %v1851_v29 = vld [vmem:[%s3597_s0 + $0x90] sm:$0xf] }
  0xe9   :  { %v3144_v32 = vadd.f32 %v1398_v27, %v1325_v28  ;;  %v2463_v30 = vld [vmem:[%s3597_s0 + $0xac] sm:$0xf0] }
  0xea   :  { %v1852_v42 = vor.u32 %v2463_v30, %v1851_v29  ;;  %v1915_v30 = vld [vmem:[%s3597_s0 + $0x110] sm:$0xf] }
  0xee   :  { %v1326_v43 = vpop.f32.mrf.mxu2  ;;  %v1181_v48 = vpop.f32.mrf.mxu0 }
  0xef   :  { %v1400_v44 = vpop.f32.mrf.mxu3  ;;  %v1327_v47 = vadd.f32 %v1326_v43, %v1253_v31  ;;  %v1255_v50 = vpop.f32.mrf.mxu1  ;;  %v2459_v31 = vld [vmem:[%s3597_s0 + $0x94] sm:$0xf] }
  0xf0   :  { %v1256_v53 = vadd.f32 %v1255_v50, %v1181_v48  ;;  %v1856_v43 = vor.u32 %v2459_v31, %v1853_v33  ;;  %v1864_v48 = vor.u32 %v2460_v37, %v1861_v38  ;;  %v2479_v31 = vld [vmem:[%s3597_s0 + $0x12c] sm:$0xf0]  ;;  %v2475_v33 = vld [vmem:[%s3597_s0 + $0x114] sm:$0xf]  ;;  %v2480_v37 = vld [vmem:[%s3597_s0 + $0x134] sm:$0xf0] }
  0xf1   :  { %v3170_v54 = vadd.f32 %v1400_v44, %v1327_v47  ;;  %1451 = vmatmul.bf16.vlgmr.msrb.gmra.mxu0 %v1788_v45  ;;  %v1860_v47 = vor.u32 %v2464_v36, %v1859_v35  ;;  %v1917_v35 = vld [vmem:[%s3597_s0 + $0x130] sm:$0xf0]  ;;  %v1923_v36 = vld [vmem:[%s3597_s0 + $0x118] sm:$0xf]  ;;  %v2476_v38 = vld [vmem:[%s3597_s0 + $0x11c] sm:$0xf] }
  0xf2   :  { %1525 = vmatmul.bf16.vlgmr.msrb.gmra.mxu1 %v1792_v46 }
  0xf3   :  { %1599 = vmatmul.bf16.vlgmr.msrb.gmra.mxu2 %v1796_v51 }
  0xf4   :  { %1673 = vmatmul.bf16.vlgmr.msrb.gmra.mxu3 %v1800_v52 }
  0xf6   :  { %v1329_v55 = vpop.f32.mrf.mxu2  ;;  %v1183_v58 = vpop.f32.mrf.mxu0 }
  0xf7   :  { %v1403_v56 = vpop.f32.mrf.mxu3  ;;  %v1330_v57 = vadd.f32 %v1329_v55, %v1256_v53  ;;  %v1257_v59 = vpop.f32.mrf.mxu1 }
  0xf8   :  { %v1258_v60 = vadd.f32 %v1257_v59, %v1183_v58 }
  0xf9   :  { %v3172_v62 = vadd.f32 %v1403_v56, %v1330_v57 }
  0xfe   :  { %v1331_v9 = vpop.f32.mrf.mxu2  ;;  %v1186_v15 = vpop.f32.mrf.mxu0 }
  0xff   :  { %v1405_v10 = vpop.f32.mrf.mxu3  ;;  %v1332_v14 = vadd.f32 %v1331_v9, %v1258_v60  ;;  %v1260_v16 = vpop.f32.mrf.mxu1  ;;  %v1883_v60 = vld [vmem:[%s3597_s0 + $0xd0] sm:$0xf] }
 0x100   :  { %v1261_v19 = vadd.f32 %v1260_v16, %v1186_v15  ;;  %v1892_v16 = vor.u32 %v2472_v3, %v1891_v2  ;;  %v2487_v2 = vld [vmem:[%s3597_s0 + $0x16c] sm:$0xf0]  ;;  %v2483_v3 = vld [vmem:[%s3597_s0 + $0x154] sm:$0xf] }
 0x101   :  { %v3198_v20 = vadd.f32 %v1405_v10, %v1332_v14  ;;  %1456 = vmatmul.bf16.gmra.mxu0 %v1820_v12  ;;  %v1884_v10 = vor.u32 %v2471_v63, %v1883_v60  ;;  %v1888_v12 = vor.u32 %v2467_v0, %v1885_v1  ;;  %v1947_v1 = vld [vmem:[%s3597_s0 + $0x150] sm:$0xf] }
 0x102   :  { %1530 = vmatmul.bf16.gmra.mxu1 %v1824_v13 }
 0x103   :  { %1604 = vmatmul.bf16.gmra.mxu2 %v1828_v17  ;;  %v1896_v17 = vor.u32 %v2468_v6, %v1893_v7  ;;  %v1949_v6 = vld [vmem:[%s3597_s0 + $0x170] sm:$0xf0]  ;;  %v1955_v7 = vld [vmem:[%s3597_s0 + $0x158] sm:$0xf] }
 0x104   :  { %1678 = vmatmul.bf16.gmra.mxu3 %v1832_v18 }
 0x106   :  { %v1334_v21 = vpop.f32.mrf.mxu2  ;;  %v1188_v24 = vpop.f32.mrf.mxu0 }
 0x107   :  { %v1408_v22 = vpop.f32.mrf.mxu3  ;;  %v1335_v23 = vadd.f32 %v1334_v21, %v1261_v19  ;;  %v1262_v26 = vpop.f32.mrf.mxu1 }
 0x108   :  { %v1263_v27 = vadd.f32 %v1262_v26, %v1188_v24 }
 0x109   :  { %v3200_v28 = vadd.f32 %v1408_v22, %v1335_v23 }
 0x10e   :  { %v1336_v39 = vpop.f32.mrf.mxu2  ;;  %v1191_v45 = vpop.f32.mrf.mxu0 }
 0x10f   :  { %v1410_v40 = vpop.f32.mrf.mxu3  ;;  %v1337_v44 = vadd.f32 %v1336_v39, %v1263_v27  ;;  %v1265_v46 = vpop.f32.mrf.mxu1  ;;  %v1925_v39 = vld [vmem:[%s3597_s0 + $0x138] sm:$0xf0] }
 0x110   :  { %v1266_v50 = vadd.f32 %v1265_v46, %v1191_v45 }
 0x111   :  { %v3226_v51 = vadd.f32 %v1410_v40, %v1337_v44  ;;  %1461 = vmatmul.bf16.gmra.mxu0 %v1852_v42  ;;  %v1920_v44 = vor.u32 %v2475_v33, %v1917_v35 }
 0x112   :  { %1535 = vmatmul.bf16.gmra.mxu1 %v1856_v43  ;;  %v1916_v43 = vor.u32 %v2479_v31, %v1915_v30 }
 0x113   :  { %1609 = vmatmul.bf16.gmra.mxu2 %v1860_v47 }
 0x114   :  { %1683 = vmatmul.bf16.gmra.mxu3 %v1864_v48  ;;  %v1924_v48 = vor.u32 %v2480_v37, %v1923_v36  ;;  %v1979_v37 = vld [vmem:[%s3597_s0 + $0x190] sm:$0xf] }
 0x116   :  { %v1339_v52 = vpop.f32.mrf.mxu2  ;;  %v1193_v56 = vpop.f32.mrf.mxu0 }
 0x117   :  { %v1413_v53 = vpop.f32.mrf.mxu3  ;;  %v1340_v55 = vadd.f32 %v1339_v52, %v1266_v50  ;;  %v1267_v57 = vpop.f32.mrf.mxu1  ;;  %v1928_v50 = vor.u32 %v2476_v38, %v1925_v39  ;;  %v2495_v38 = vld [vmem:[%s3597_s0 + $0x1ac] sm:$0xf0]  ;;  %v2491_v39 = vld [vmem:[%s3597_s0 + $0x194] sm:$0xf] }
 0x118   :  { %v1268_v58 = vadd.f32 %v1267_v57, %v1193_v56 }
 0x119   :  { %v3228_v59 = vadd.f32 %v1413_v53, %v1340_v55 }
 0x11e   :  { %v1341_v8 = vpop.f32.mrf.mxu2  ;;  %v1196_v14 = vpop.f32.mrf.mxu0 }
 0x11f   :  { %v1415_v9 = vpop.f32.mrf.mxu3  ;;  %v1342_v13 = vadd.f32 %v1341_v8, %v1268_v58  ;;  %v1270_v15 = vpop.f32.mrf.mxu1  ;;  %v2488_v8 = vld [vmem:[%s3597_s0 + $0x174] sm:$0xf0] }
 0x120   :  { %v1271_v18 = vadd.f32 %v1270_v15, %v1196_v14  ;;  %v1948_v14 = vor.u32 %v2487_v2, %v1947_v1  ;;  %v1952_v15 = vor.u32 %v2483_v3, %v1949_v6 }
 0x121   :  { %v3254_v19 = vadd.f32 %v1415_v9, %v1342_v13  ;;  %1466 = vmatmul.bf16.gmra.mxu0 %v1884_v10  ;;  %v2484_v9 = vld [vmem:[%s3597_s0 + $0x15c] sm:$0xf] }
 0x122   :  { %1540 = vmatmul.bf16.gmra.mxu1 %v1888_v12  ;;  %v1957_v10 = vld [vmem:[%s3597_s0 + $0x178] sm:$0xf0] }
 0x123   :  { %1614 = vmatmul.bf16.gmra.mxu2 %v1892_v16 }
 0x124   :  { %1688 = vmatmul.bf16.gmra.mxu3 %v1896_v17 }
 0x126   :  { %v1344_v21 = vpop.f32.mrf.mxu2  ;;  %v1198_v24 = vpop.f32.mrf.mxu0 }
 0x127   :  { %v1418_v22 = vpop.f32.mrf.mxu3  ;;  %v1345_v23 = vadd.f32 %v1344_v21, %v1271_v18  ;;  %v1272_v26 = vpop.f32.mrf.mxu1  ;;  %v1956_v21 = vor.u32 %v2488_v8, %v1955_v7 }
 0x128   :  { %v1273_v27 = vadd.f32 %v1272_v26, %v1198_v24 }
 0x129   :  { %v3256_v29 = vadd.f32 %v1418_v22, %v1345_v23  ;;  %v1960_v22 = vor.u32 %v2484_v9, %v1957_v10  ;;  %v2011_v10 = vld [vmem:[%s3597_s0 + $0x1d0] sm:$0xf] }
 0x12e   :  { %v1346_v40 = vpop.f32.mrf.mxu2  ;;  %v1201_v46 = vpop.f32.mrf.mxu0 }
 0x12f   :  { %v1420_v42 = vpop.f32.mrf.mxu3  ;;  %v1347_v45 = vadd.f32 %v1346_v40, %v1273_v27  ;;  %v1275_v47 = vpop.f32.mrf.mxu1  ;;  %v1981_v40 = vld [vmem:[%s3597_s0 + $0x1b0] sm:$0xf0] }
 0x130   :  { %v1276_v52 = vadd.f32 %v1275_v47, %v1201_v46 }
 0x131   :  { %v3282_v53 = vadd.f32 %v1420_v42, %v1347_v45  ;;  %1471 = vmatmul.bf16.gmra.mxu0 %v1916_v43  ;;  %v1987_v42 = vld [vmem:[%s3597_s0 + $0x198] sm:$0xf]  ;;  %v1989_v45 = vld [vmem:[%s3597_s0 + $0x1b8] sm:$0xf0] }
 0x132   :  { %1545 = vmatmul.bf16.gmra.mxu1 %v1920_v44  ;;  %v2496_v43 = vld [vmem:[%s3597_s0 + $0x1b4] sm:$0xf0]  ;;  %v2492_v44 = vld [vmem:[%s3597_s0 + $0x19c] sm:$0xf] }
 0x133   :  { %1619 = vmatmul.bf16.gmra.mxu2 %v1924_v48  ;;  %v1980_v48 = vor.u32 %v2495_v38, %v1979_v37 }
 0x134   :  { %1693 = vmatmul.bf16.gmra.mxu3 %v1928_v50  ;;  %v1984_v50 = vor.u32 %v2491_v39, %v1981_v40 }
 0x136   :  { %v1349_v55 = vpop.f32.mrf.mxu2  ;;  %v1203_v58 = vpop.f32.mrf.mxu0 }
 0x137   :  { %v1423_v56 = vpop.f32.mrf.mxu3  ;;  %v1350_v57 = vadd.f32 %v1349_v55, %v1276_v52  ;;  %v1277_v60 = vpop.f32.mrf.mxu1 }
 0x138   :  { %v1278_v63 = vadd.f32 %v1277_v60, %v1203_v58  ;;  %v1992_v58 = vor.u32 %v2492_v44, %v1989_v45 }
 0x139   :  { %v3284_v0 = vadd.f32 %v1423_v56, %v1350_v57  ;;  %v1988_v57 = vor.u32 %v2496_v43, %v1987_v42 }
 0x13e   :  { %v1351_v12 = vpop.f32.mrf.mxu2  ;;  %v1206_v17 = vpop.f32.mrf.mxu0 }
 0x13f   :  { %v1425_v13 = vpop.f32.mrf.mxu3  ;;  %v1352_v16 = vadd.f32 %v1351_v12, %v1278_v63  ;;  %v1280_v18 = vpop.f32.mrf.mxu1  ;;  %v2503_v12 = vld [vmem:[%s3597_s0 + $0x1ec] sm:$0xf0] }
 0x140   :  { %v1281_v23 = vadd.f32 %v1280_v18, %v1206_v17  ;;  %v2500_v17 = vld [vmem:[%s3597_s0 + $0x1dc] sm:$0xf] }
 0x141   :  { %v3310_v24 = vadd.f32 %v1425_v13, %v1352_v16  ;;  %1476 = vmatmul.bf16.gmra.mxu0 %v1948_v14  ;;  %v2499_v13 = vld [vmem:[%s3597_s0 + $0x1d4] sm:$0xf]  ;;  %v2504_v16 = vld [vmem:[%s3597_s0 + $0x1f4] sm:$0xf0]  ;;  %v2021_v18 = vld [vmem:[%s3597_s0 + $0x1f8] sm:$0xf0] }
 0x142   :  { %1550 = vmatmul.bf16.gmra.mxu1 %v1952_v15  ;;  %v2013_v14 = vld [vmem:[%s3597_s0 + $0x1f0] sm:$0xf0]  ;;  %v2019_v15 = vld [vmem:[%s3597_s0 + $0x1d8] sm:$0xf] }
 0x143   :  { %1624 = vmatmul.bf16.gmra.mxu2 %v1956_v21 }
 0x144   :  { %1698 = vmatmul.bf16.gmra.mxu3 %v1960_v22 }
 0x146   :  { %v1354_v26 = vpop.f32.mrf.mxu2  ;;  %v1208_v31 = vpop.f32.mrf.mxu0 }
 0x147   :  { %v1428_v27 = vpop.f32.mrf.mxu3  ;;  %v1355_v30 = vadd.f32 %v1354_v26, %v1281_v23  ;;  %v1282_v33 = vpop.f32.mrf.mxu1  ;;  %v2012_v23 = vor.u32 %v2503_v12, %v2011_v10  ;;  %v2016_v26 = vor.u32 %v2499_v13, %v2013_v14 }
 0x148   :  { %v1283_v35 = vadd.f32 %v1282_v33, %v1208_v31  ;;  %v2020_v33 = vor.u32 %v2504_v16, %v2019_v15 }
 0x149   :  { %v3312_v36 = vadd.f32 %v1428_v27, %v1355_v30 }
 0x14e   :  { %v1356_v46 = vpop.f32.mrf.mxu2  ;;  %v1211_v55 = vpop.f32.mrf.mxu0 }
 0x14f   :  { %v1430_v47 = vpop.f32.mrf.mxu3  ;;  %v1357_v52 = vadd.f32 %v1356_v46, %v1283_v35  ;;  %v1285_v56 = vpop.f32.mrf.mxu1  ;;  %v2024_v35 = vor.u32 %v2500_v17, %v2021_v18 }
 0x150   :  { %v1286_v60 = vadd.f32 %v1285_v56, %v1211_v55  ;;  %v2051_v55 = vld [vmem:[%s3597_s0 + $0x218] sm:$0xf] }
 0x151   :  { %v3338_v63 = vadd.f32 %v1430_v47, %v1357_v52  ;;  %1481 = vmatmul.bf16.gmra.mxu0 %v1980_v48  ;;  %v2043_v47 = vld [vmem:[%s3597_s0 + $0x210] sm:$0xf]  ;;  %v2045_v52 = vld [vmem:[%s3597_s0 + $0x230] sm:$0xf0]  ;;  %v2512_v56 = vld [vmem:[%s3597_s0 + $0x234] sm:$0xf0] }
 0x152   :  { %1555 = vmatmul.bf16.gmra.mxu1 %v1984_v50  ;;  %v2511_v48 = vld [vmem:[%s3597_s0 + $0x22c] sm:$0xf0]  ;;  %v2507_v50 = vld [vmem:[%s3597_s0 + $0x214] sm:$0xf]  ;;  %v2052_v10 = vor.u32 %v2512_v56, %v2051_v55 }
 0x153   :  { %1629 = vmatmul.bf16.gmra.mxu2 %v1988_v57  ;;  %v2508_v57 = vld [vmem:[%s3597_s0 + $0x21c] sm:$0xf] }
 0x154   :  { %1703 = vmatmul.bf16.gmra.mxu3 %v1992_v58  ;;  %v2053_v58 = vld [vmem:[%s3597_s0 + $0x238] sm:$0xf0] }
 0x155   :  { %v2056_v12 = vor.u32 %v2508_v57, %v2053_v58 }
 0x156   :  { %v1359_v1 = vpop.f32.mrf.mxu2  ;;  %v1213_v6 = vpop.f32.mrf.mxu0 }
 0x157   :  { %v1433_v2 = vpop.f32.mrf.mxu3  ;;  %v1360_v3 = vadd.f32 %v1359_v1, %v1286_v60  ;;  %v1287_v7 = vpop.f32.mrf.mxu1 }
 0x158   :  { %v1288_v8 = vadd.f32 %v1287_v7, %v1213_v6 }
 0x159   :  { %v3340_v9 = vadd.f32 %v1433_v2, %v1360_v3  ;;  %v2044_v2 = vor.u32 %v2511_v48, %v2043_v47  ;;  %v2048_v3 = vor.u32 %v2507_v50, %v2045_v52 }
 0x15e   :  { %v1361_v21 = vpop.f32.mrf.mxu2  ;;  %v1216_v30 = vpop.f32.mrf.mxu0 }
 0x15f   :  { %v1435_v22 = vpop.f32.mrf.mxu3  ;;  %v1362_v27 = vadd.f32 %v1361_v21, %v1288_v8  ;;  %v1290_v31 = vpop.f32.mrf.mxu1 }
 0x160   :  { %v1291_v37 = vadd.f32 %v1290_v31, %v1216_v30  ;;  %v2515_v30 = vld [vmem:[%s3597_s0 + $0x254] sm:$0xf]  ;;  %v2083_v31 = vld [vmem:[%s3597_s0 + $0x258] sm:$0xf] }
 0x161   :  { %v3366_v38 = vadd.f32 %v1435_v22, %v1362_v27  ;;  %1486 = vmatmul.bf16.gmra.mxu0 %v2012_v23  ;;  %v2075_v27 = vld [vmem:[%s3597_s0 + $0x250] sm:$0xf] }
 0x162   :  { %1560 = vmatmul.bf16.gmra.mxu1 %v2016_v26 }
 0x163   :  { %1634 = vmatmul.bf16.gmra.mxu2 %v2020_v33  ;;  %v2520_v33 = vld [vmem:[%s3597_s0 + $0x274] sm:$0xf0] }
 0x164   :  { %1708 = vmatmul.bf16.gmra.mxu3 %v2024_v35  ;;  %v2516_v35 = vld [vmem:[%s3597_s0 + $0x25c] sm:$0xf]  ;;  %v2084_v50 = vor.u32 %v2520_v33, %v2083_v31 }
 0x166   :  { %v1364_v39 = vpop.f32.mrf.mxu2  ;;  %v1218_v43 = vpop.f32.mrf.mxu0 }
 0x167   :  { %v1438_v40 = vpop.f32.mrf.mxu3  ;;  %v1365_v42 = vadd.f32 %v1364_v39, %v1291_v37  ;;  %v1292_v44 = vpop.f32.mrf.mxu1  ;;  %v2085_v37 = vld [vmem:[%s3597_s0 + $0x278] sm:$0xf0] }
 0x168   :  { %v1293_v45 = vadd.f32 %v1292_v44, %v1218_v43  ;;  %v2088_v52 = vor.u32 %v2516_v35, %v2085_v37 }
 0x169   :  { %v3368_v46 = vadd.f32 %v1438_v40, %v1365_v42 }
 0x16e   :  { %v1366_v60 = vpop.f32.mrf.mxu2  ;;  %v1452_v7 = vpop.f32.mrf.mxu0 }
 0x16f   :  { %v1440_v1 = vpop.f32.mrf.mxu3  ;;  %v1367_v6 = vadd.f32 %v1366_v60, %v1293_v45  ;;  %v1526_v8 = vpop.f32.mrf.mxu1  ;;  %v1453_v14 = vadd.f32 %v1452_v7, %v3020_v49  ;;  %v2519_v49 = vld [vmem:[%s3597_s0 + $0x26c] sm:$0xf0] }
 0x170   :  { %v2076_v43 = vor.u32 %v2519_v49, %v2075_v27 }
 0x171   :  { %v3394_v13 = vadd.f32 %v1440_v1, %v1367_v6  ;;  %1491 = vmatmul.bf16.gmra.mxu0 %v2044_v2  ;;  %v1527_v15 = vadd.f32 %v1526_v8, %v1453_v14  ;;  %v2527_v8 = vld [vmem:[%s3597_s0 + $0x2ac] sm:$0xf0]  ;;  %v2528_v14 = vld [vmem:[%s3597_s0 + $0x2b4] sm:$0xf0] }
 0x172   :  { %1565 = vmatmul.bf16.gmra.mxu1 %v2048_v3 }
 0x173   :  { %1639 = vmatmul.bf16.gmra.mxu2 %v2052_v10  ;;  %v2523_v10 = vld [vmem:[%s3597_s0 + $0x294] sm:$0xf] }
 0x174   :  { %1713 = vmatmul.bf16.gmra.mxu3 %v2056_v12  ;;  %v2115_v12 = vld [vmem:[%s3597_s0 + $0x298] sm:$0xf] }
 0x176   :  { %v1600_v16 = vpop.f32.mrf.mxu2  ;;  %v1454_v21 = vpop.f32.mrf.mxu0 }
 0x177   :  { %v1674_v17 = vpop.f32.mrf.mxu3  ;;  %v1601_v18 = vadd.f32 %v1600_v16, %v1527_v15  ;;  %v1528_v22 = vpop.f32.mrf.mxu1  ;;  %v1455_v26 = vadd.f32 %v1454_v21, %v3046_v4  ;;  %v2077_v4 = vld [vmem:[%s3597_s0 + $0x270] sm:$0xf0]  ;;  %v2524_v15 = vld [vmem:[%s3597_s0 + $0x29c] sm:$0xf] }
 0x178   :  { %v2080_v44 = vor.u32 %v2515_v30, %v2077_v4  ;;  %v2117_v16 = vld [vmem:[%s3597_s0 + $0x2b8] sm:$0xf0]  ;;  %v2116_v30 = vor.u32 %v2528_v14, %v2115_v12 }
 0x179   :  { %v1675_v23 = vadd.f32 %v1674_v17, %v1601_v18  ;;  %v1529_v39 = vadd.f32 %v1528_v22, %v1455_v26  ;;  %v2120_v4 = vor.u32 %v2524_v15, %v2117_v16 }
 0x17b   :  { %1739 = vst [vmem:[%s3598_s2] sm:$0xff] %v1675_v23 }
 0x17e   :  { %v1602_v40 = vpop.f32.mrf.mxu2  ;;  %v1457_v47 = vpop.f32.mrf.mxu0 }
 0x17f   :  { %v1676_v42 = vpop.f32.mrf.mxu3  ;;  %v1603_v45 = vadd.f32 %v1602_v40, %v1529_v39  ;;  %v1531_v48 = vpop.f32.mrf.mxu1  ;;  %v1458_v56 = vadd.f32 %v1457_v47, %v3048_v11  ;;  %v2107_v11 = vld [vmem:[%s3597_s0 + $0x290] sm:$0xf] }
 0x180   :  { %v2108_v22 = vor.u32 %v2527_v8, %v2107_v11  ;;  %v2535_v47 = vld [vmem:[%s3597_s0 + $0x2ec] sm:$0xf0] }
 0x181   :  { %v1677_v55 = vadd.f32 %v1676_v42, %v1603_v45  ;;  %1496 = vmatmul.bf16.gmra.mxu0 %v2076_v43  ;;  %v1532_v57 = vadd.f32 %v1531_v48, %v1458_v56  ;;  %v2531_v48 = vld [vmem:[%s3597_s0 + $0x2d4] sm:$0xf]  ;;  %v2149_v56 = vld [vmem:[%s3597_s0 + $0x2f8] sm:$0xf0] }
 0x182   :  { %1570 = vmatmul.bf16.gmra.mxu1 %v2080_v44 }
 0x183   :  { %1740 = vst [vmem:[%s3598_s2 + $0x8] sm:$0xff] %v1677_v55  ;;  %1644 = vmatmul.bf16.gmra.mxu2 %v2084_v50  ;;  %v2147_v50 = vld [vmem:[%s3597_s0 + $0x2d8] sm:$0xf]  ;;  %v2532_v55 = vld [vmem:[%s3597_s0 + $0x2dc] sm:$0xf] }
 0x184   :  { %1718 = vmatmul.bf16.gmra.mxu3 %v2088_v52  ;;  %v2536_v52 = vld [vmem:[%s3597_s0 + $0x2f4] sm:$0xf0]  ;;  %v2152_v8 = vor.u32 %v2532_v55, %v2149_v56 }
 0x185   :  { %v2148_v11 = vor.u32 %v2536_v52, %v2147_v50 }
 0x186   :  { %v1605_v58 = vpop.f32.mrf.mxu2  ;;  %v1459_v2 = vpop.f32.mrf.mxu0 }
 0x187   :  { %v1679_v60 = vpop.f32.mrf.mxu3  ;;  %v1606_v1 = vadd.f32 %v1605_v58, %v1532_v57  ;;  %v1533_v3 = vpop.f32.mrf.mxu1  ;;  %v1460_v7 = vadd.f32 %v1459_v2, %v3086_v34  ;;  %v2109_v34 = vld [vmem:[%s3597_s0 + $0x2b0] sm:$0xf0] }
 0x188   :  { %v2112_v23 = vor.u32 %v2523_v10, %v2109_v34 }
 0x189   :  { %v1680_v6 = vadd.f32 %v1679_v60, %v1606_v1  ;;  %v1534_v17 = vadd.f32 %v1533_v3, %v1460_v7 }
 0x18b   :  { %1741 = vst [vmem:[%s3598_s2 + $0x10] sm:$0xff] %v1680_v6 }
 0x18e   :  { %v1607_v18 = vpop.f32.mrf.mxu2  ;;  %v1462_v27 = vpop.f32.mrf.mxu0 }
 0x18f   :  { %v1681_v21 = vpop.f32.mrf.mxu3  ;;  %v1608_v26 = vadd.f32 %v1607_v18, %v1534_v17  ;;  %v1536_v49 = vpop.f32.mrf.mxu1  ;;  %v1463_v33 = vadd.f32 %v1462_v27, %v3088_v41  ;;  %v2139_v41 = vld [vmem:[%s3597_s0 + $0x2d0] sm:$0xf]  ;;  %v2179_v27 = vld [vmem:[%s3597_s0 + $0x318] sm:$0xf] }
 0x190   :  { %v2140_v1 = vor.u32 %v2535_v47, %v2139_v41 }
 0x191   :  { %v1682_v31 = vadd.f32 %v1681_v21, %v1608_v26  ;;  %1501 = vmatmul.bf16.gmra.mxu0 %v2108_v22  ;;  %v1537_v35 = vadd.f32 %v1536_v49, %v1463_v33  ;;  %v2539_v26 = vld [vmem:[%s3597_s0 + $0x314] sm:$0xf]  ;;  %v2544_v49 = vld [vmem:[%s3597_s0 + $0x334] sm:$0xf0] }
 0x192   :  { %1575 = vmatmul.bf16.gmra.mxu1 %v2112_v23  ;;  %v2543_v23 = vld [vmem:[%s3597_s0 + $0x32c] sm:$0xf0] }
 0x193   :  { %1742 = vst [vmem:[%s3598_s2 + $0x18] sm:$0xff] %v1682_v31  ;;  %1649 = vmatmul.bf16.gmra.mxu2 %v2116_v30  ;;  %v2540_v30 = vld [vmem:[%s3597_s0 + $0x31c] sm:$0xf] }
 0x194   :  { %1723 = vmatmul.bf16.gmra.mxu3 %v2120_v4  ;;  %v2181_v4 = vld [vmem:[%s3597_s0 + $0x338] sm:$0xf0] }
 0x196   :  { %v1610_v37 = vpop.f32.mrf.mxu2  ;;  %v1464_v42 = vpop.f32.mrf.mxu0 }
 0x197   :  { %v1684_v39 = vpop.f32.mrf.mxu3  ;;  %v1611_v40 = vadd.f32 %v1610_v37, %v1537_v35  ;;  %v1538_v43 = vpop.f32.mrf.mxu1  ;;  %v1465_v45 = vadd.f32 %v1464_v42, %v3114_v61  ;;  %v2141_v61 = vld [vmem:[%s3597_s0 + $0x2f0] sm:$0xf0] }
 0x198   :  { %v2144_v2 = vor.u32 %v2531_v48, %v2141_v61 }
 0x199   :  { %v1685_v44 = vadd.f32 %v1684_v39, %v1611_v40  ;;  %v1539_v57 = vadd.f32 %v1538_v43, %v1465_v45  ;;  %v2184_v45 = vor.u32 %v2540_v30, %v2181_v4 }
 0x19b   :  { %1743 = vst [vmem:[%s3598_s2 + $0x20] sm:$0xff] %v1685_v44  ;;  %v2180_v44 = vor.u32 %v2544_v49, %v2179_v27 }
 0x19e   :  { %v1612_v58 = vpop.f32.mrf.mxu2  ;;  %v1467_v6 = vpop.f32.mrf.mxu0 }
 0x19f   :  { %v1686_v60 = vpop.f32.mrf.mxu3  ;;  %v1613_v3 = vadd.f32 %v1612_v58, %v1539_v57  ;;  %v1541_v7 = vpop.f32.mrf.mxu1  ;;  %v1468_v34 = vadd.f32 %v1467_v6, %v3116_v5  ;;  %v2171_v5 = vld [vmem:[%s3597_s0 + $0x310] sm:$0xf] }
 0x1a0   :  { %v2172_v37 = vor.u32 %v2543_v23, %v2171_v5 }
 0x1a1   :  { %v1687_v10 = vadd.f32 %v1686_v60, %v1613_v3  ;;  %1506 = vmatmul.bf16.gmra.mxu0 %v2140_v1  ;;  %v1542_v12 = vadd.f32 %v1541_v7, %v1468_v34 }
 0x1a2   :  { %1580 = vmatmul.bf16.gmra.mxu1 %v2144_v2 }
 0x1a3   :  { %1744 = vst [vmem:[%s3598_s2 + $0x28] sm:$0xff] %v1687_v10  ;;  %1654 = vmatmul.bf16.gmra.mxu2 %v2148_v11 }
 0x1a4   :  { %1728 = vmatmul.bf16.gmra.mxu3 %v2152_v8 }
 0x1a6   :  { %v1615_v14 = vpop.f32.mrf.mxu2  ;;  %v1469_v17 = vpop.f32.mrf.mxu0 }
 0x1a7   :  { %v1689_v15 = vpop.f32.mrf.mxu3  ;;  %v1616_v16 = vadd.f32 %v1615_v14, %v1542_v12  ;;  %v1543_v18 = vpop.f32.mrf.mxu1  ;;  %v1470_v22 = vadd.f32 %v1469_v17, %v3142_v25  ;;  %v2173_v25 = vld [vmem:[%s3597_s0 + $0x330] sm:$0xf0] }
 0x1a8   :  { %v2176_v39 = vor.u32 %v2539_v26, %v2173_v25 }
 0x1a9   :  { %v1690_v21 = vadd.f32 %v1689_v15, %v1616_v16  ;;  %v1544_v31 = vadd.f32 %v1543_v18, %v1470_v22 }
 0x1ab   :  { %1745 = vst [vmem:[%s3598_s2 + $0x30] sm:$0xff] %v1690_v21 }
 0x1ae   :  { %v1617_v33 = vpop.f32.mrf.mxu2  ;;  %v1472_v42 = vpop.f32.mrf.mxu0 }
 0x1af   :  { %v1691_v35 = vpop.f32.mrf.mxu3  ;;  %v1618_v40 = vadd.f32 %v1617_v33, %v1544_v31  ;;  %v1546_v43 = vpop.f32.mrf.mxu1  ;;  %v1473_v47 = vadd.f32 %v1472_v42, %v3144_v32 }
 0x1b1   :  { %v1692_v41 = vadd.f32 %v1691_v35, %v1618_v40  ;;  %1511 = vmatmul.bf16.gmra.mxu0 %v2172_v37  ;;  %v1547_v48 = vadd.f32 %v1546_v43, %v1473_v47 }
 0x1b2   :  { %1585 = vmatmul.bf16.gmra.mxu1 %v2176_v39 }
 0x1b3   :  { %1746 = vst [vmem:[%s3598_s2 + $0x38] sm:$0xff] %v1692_v41  ;;  %1659 = vmatmul.bf16.gmra.mxu2 %v2180_v44 }
 0x1b4   :  { %1733 = vmatmul.bf16.gmra.mxu3 %v2184_v45 }
 0x1b6   :  { %v1620_v61 = vpop.f32.mrf.mxu2  ;;  %v1474_v55 = vpop.f32.mrf.mxu0 }
 0x1b7   :  { %v1694_v50 = vpop.f32.mrf.mxu3  ;;  %v1621_v52 = vadd.f32 %v1620_v61, %v1547_v48  ;;  %v1548_v56 = vpop.f32.mrf.mxu1  ;;  %v1475_v58 = vadd.f32 %v1474_v55, %v3170_v54 }
 0x1b9   :  { %v1695_v57 = vadd.f32 %v1694_v50, %v1621_v52  ;;  %v1549_v32 = vadd.f32 %v1548_v56, %v1475_v58 }
 0x1bb   :  { %1747 = vst [vmem:[%s3598_s2 + $0x40] sm:$0xff] %v1695_v57 }
 0x1be   :  { %v1622_v60 = vpop.f32.mrf.mxu2  ;;  %v1477_v3 = vpop.f32.mrf.mxu0 }
 0x1bf   :  { %v1696_v1 = vpop.f32.mrf.mxu3  ;;  %v1623_v2 = vadd.f32 %v1622_v60, %v1549_v32  ;;  %v1551_v6 = vpop.f32.mrf.mxu1  ;;  %v1478_v11 = vadd.f32 %v1477_v3, %v3172_v62 }
 0x1c1   :  { %v1697_v7 = vadd.f32 %v1696_v1, %v1623_v2  ;;  %v1552_v8 = vadd.f32 %v1551_v6, %v1478_v11 }
 0x1c3   :  { %1748 = vst [vmem:[%s3598_s2 + $0x48] sm:$0xff] %v1697_v7 }
 0x1c6   :  { %v1625_v10 = vpop.f32.mrf.mxu2  ;;  %v1479_v12 = vpop.f32.mrf.mxu0 }
 0x1c7   :  { %v1699_v54 = vpop.f32.mrf.mxu3  ;;  %v1626_v34 = vadd.f32 %v1625_v10, %v1552_v8  ;;  %v1553_v14 = vpop.f32.mrf.mxu1  ;;  %v1480_v16 = vadd.f32 %v1479_v12, %v3198_v20 }
 0x1c9   :  { %v1700_v15 = vadd.f32 %v1699_v54, %v1626_v34  ;;  %v1554_v17 = vadd.f32 %v1553_v14, %v1480_v16 }
 0x1cb   :  { %1749 = vst [vmem:[%s3598_s2 + $0x50] sm:$0xff] %v1700_v15 }
 0x1ce   :  { %v1627_v18 = vpop.f32.mrf.mxu2  ;;  %v1482_v22 = vpop.f32.mrf.mxu0 }
 0x1cf   :  { %v1701_v62 = vpop.f32.mrf.mxu3  ;;  %v1628_v21 = vadd.f32 %v1627_v18, %v1554_v17  ;;  %v1556_v5 = vpop.f32.mrf.mxu1  ;;  %v1483_v26 = vadd.f32 %v1482_v22, %v3200_v28 }
 0x1d1   :  { %v1702_v23 = vadd.f32 %v1701_v62, %v1628_v21  ;;  %v1557_v25 = vadd.f32 %v1556_v5, %v1483_v26 }
 0x1d3   :  { %1750 = vst [vmem:[%s3598_s2 + $0x58] sm:$0xff] %v1702_v23 }
 0x1d6   :  { %v1630_v27 = vpop.f32.mrf.mxu2  ;;  %v1484_v30 = vpop.f32.mrf.mxu0 }
 0x1d7   :  { %v1704_v20 = vpop.f32.mrf.mxu3  ;;  %v1631_v49 = vadd.f32 %v1630_v27, %v1557_v25  ;;  %v1558_v4 = vpop.f32.mrf.mxu1  ;;  %v1485_v33 = vadd.f32 %v1484_v30, %v3226_v51 }
 0x1d9   :  { %v1705_v31 = vadd.f32 %v1704_v20, %v1631_v49  ;;  %v1559_v35 = vadd.f32 %v1558_v4, %v1485_v33 }
 0x1db   :  { %1751 = vst [vmem:[%s3598_s2 + $0x60] sm:$0xff] %v1705_v31 }
 0x1de   :  { %v1632_v37 = vpop.f32.mrf.mxu2  ;;  %v1487_v40 = vpop.f32.mrf.mxu0 }
 0x1df   :  { %v1706_v28 = vpop.f32.mrf.mxu3  ;;  %v1633_v39 = vadd.f32 %v1632_v37, %v1559_v35  ;;  %v1561_v42 = vpop.f32.mrf.mxu1  ;;  %v1488_v44 = vadd.f32 %v1487_v40, %v3228_v59 }
 0x1e1   :  { %v1707_v43 = vadd.f32 %v1706_v28, %v1633_v39  ;;  %v1562_v45 = vadd.f32 %v1561_v42, %v1488_v44 }
 0x1e3   :  { %1752 = vst [vmem:[%s3598_s2 + $0x68] sm:$0xff] %v1707_v43 }
 0x1e6   :  { %v1635_v41 = vpop.f32.mrf.mxu2  ;;  %v1489_v48 = vpop.f32.mrf.mxu0 }
 0x1e7   :  { %v1709_v51 = vpop.f32.mrf.mxu3  ;;  %v1636_v47 = vadd.f32 %v1635_v41, %v1562_v45  ;;  %v1563_v61 = vpop.f32.mrf.mxu1  ;;  %v1490_v52 = vadd.f32 %v1489_v48, %v3254_v19 }
 0x1e9   :  { %v1710_v50 = vadd.f32 %v1709_v51, %v1636_v47  ;;  %v1564_v55 = vadd.f32 %v1563_v61, %v1490_v52 }
 0x1eb   :  { %1753 = vst [vmem:[%s3598_s2 + $0x70] sm:$0xff] %v1710_v50 }
 0x1ee   :  { %v1637_v56 = vpop.f32.mrf.mxu2  ;;  %v1492_v58 = vpop.f32.mrf.mxu0 }
 0x1ef   :  { %v1711_v59 = vpop.f32.mrf.mxu3  ;;  %v1638_v57 = vadd.f32 %v1637_v56, %v1564_v55  ;;  %v1566_v32 = vpop.f32.mrf.mxu1  ;;  %v1493_v1 = vadd.f32 %v1492_v58, %v3256_v29 }
 0x1f1   :  { %v1712_v60 = vadd.f32 %v1711_v59, %v1638_v57  ;;  %v1567_v2 = vadd.f32 %v1566_v32, %v1493_v1 }
 0x1f3   :  { %1754 = vst [vmem:[%s3598_s2 + $0x78] sm:$0xff] %v1712_v60 }
 0x1f6   :  { %v1640_v3 = vpop.f32.mrf.mxu2  ;;  %v1494_v7 = vpop.f32.mrf.mxu0 }
 0x1f7   :  { %v1714_v19 = vpop.f32.mrf.mxu3  ;;  %v1641_v6 = vadd.f32 %v1640_v3, %v1567_v2  ;;  %v1568_v11 = vpop.f32.mrf.mxu1  ;;  %v1495_v10 = vadd.f32 %v1494_v7, %v3282_v53 }
 0x1f9   :  { %v1715_v8 = vadd.f32 %v1714_v19, %v1641_v6  ;;  %v1569_v54 = vadd.f32 %v1568_v11, %v1495_v10 }
 0x1fb   :  { %1755 = vst [vmem:[%s3598_s2 + $0x80] sm:$0xff] %v1715_v8 }
 0x1fe   :  { %v1642_v34 = vpop.f32.mrf.mxu2  ;;  %v1497_v14 = vpop.f32.mrf.mxu0 }
 0x1ff   :  { %v1716_v29 = vpop.f32.mrf.mxu3  ;;  %v1643_v12 = vadd.f32 %v1642_v34, %v1569_v54  ;;  %v1571_v15 = vpop.f32.mrf.mxu1  ;;  %v1498_v17 = vadd.f32 %v1497_v14, %v3284_v0 }
 0x201   :  { %v1717_v16 = vadd.f32 %v1716_v29, %v1643_v12  ;;  %v1572_v18 = vadd.f32 %v1571_v15, %v1498_v17 }
 0x203   :  { %1756 = vst [vmem:[%s3598_s2 + $0x88] sm:$0xff] %v1717_v16 }
 0x206   :  { %v1645_v62 = vpop.f32.mrf.mxu2  ;;  %v1499_v22 = vpop.f32.mrf.mxu0 }
 0x207   :  { %v1719_v53 = vpop.f32.mrf.mxu3  ;;  %v1646_v21 = vadd.f32 %v1645_v62, %v1572_v18  ;;  %v1573_v5 = vpop.f32.mrf.mxu1  ;;  %v1500_v26 = vadd.f32 %v1499_v22, %v3310_v24 }
 0x209   :  { %v1720_v23 = vadd.f32 %v1719_v53, %v1646_v21  ;;  %v1574_v25 = vadd.f32 %v1573_v5, %v1500_v26 }
 0x20b   :  { %1757 = vst [vmem:[%s3598_s2 + $0x90] sm:$0xff] %v1720_v23 }
 0x20e   :  { %v1647_v27 = vpop.f32.mrf.mxu2  ;;  %v1502_v49 = vpop.f32.mrf.mxu0 }
 0x20f   :  { %v1721_v0 = vpop.f32.mrf.mxu3  ;;  %v1648_v20 = vadd.f32 %v1647_v27, %v1574_v25  ;;  %v1576_v30 = vpop.f32.mrf.mxu1  ;;  %v1503_v31 = vadd.f32 %v1502_v49, %v3312_v36 }
 0x211   :  { %v1722_v4 = vadd.f32 %v1721_v0, %v1648_v20  ;;  %v1577_v33 = vadd.f32 %v1576_v30, %v1503_v31 }
 0x213   :  { %1758 = vst [vmem:[%s3598_s2 + $0x98] sm:$0xff] %v1722_v4 }
 0x216   :  { %v1650_v35 = vpop.f32.mrf.mxu2  ;;  %v1504_v28 = vpop.f32.mrf.mxu0 }
 0x217   :  { %v1724_v24 = vpop.f32.mrf.mxu3  ;;  %v1651_v37 = vadd.f32 %v1650_v35, %v1577_v33  ;;  %v1578_v39 = vpop.f32.mrf.mxu1  ;;  %v1505_v42 = vadd.f32 %v1504_v28, %v3338_v63 }
 0x219   :  { %v1725_v40 = vadd.f32 %v1724_v24, %v1651_v37  ;;  %v1579_v43 = vadd.f32 %v1578_v39, %v1505_v42 }
 0x21b   :  { %1759 = vst [vmem:[%s3598_s2 + $0xa0] sm:$0xff] %v1725_v40 }
 0x21e   :  { %v1652_v44 = vpop.f32.mrf.mxu2  ;;  %v1507_v41 = vpop.f32.mrf.mxu0 }
 0x21f   :  { %v1726_v36 = vpop.f32.mrf.mxu3  ;;  %v1653_v45 = vadd.f32 %v1652_v44, %v1579_v43  ;;  %v1581_v51 = vpop.f32.mrf.mxu1  ;;  %v1508_v48 = vadd.f32 %v1507_v41, %v3340_v9 }
 0x221   :  { %v1727_v47 = vadd.f32 %v1726_v36, %v1653_v45  ;;  %v1582_v61 = vadd.f32 %v1581_v51, %v1508_v48 }
 0x223   :  { %1760 = vst [vmem:[%s3598_s2 + $0xa8] sm:$0xff] %v1727_v47 }
 0x226   :  { %v1655_v50 = vpop.f32.mrf.mxu2  ;;  %v1509_v55 = vpop.f32.mrf.mxu0 }
 0x227   :  { %v1729_v63 = vpop.f32.mrf.mxu3  ;;  %v1656_v52 = vadd.f32 %v1655_v50, %v1582_v61  ;;  %v1583_v56 = vpop.f32.mrf.mxu1  ;;  %v1510_v57 = vadd.f32 %v1509_v55, %v3366_v38 }
 0x229   :  { %v1730_v59 = vadd.f32 %v1729_v63, %v1656_v52  ;;  %v1584_v58 = vadd.f32 %v1583_v56, %v1510_v57 }
 0x22b   :  { %1761 = vst [vmem:[%s3598_s2 + $0xb0] sm:$0xff] %v1730_v59 }
 0x22e   :  { %v1657_v32 = vpop.f32.mrf.mxu2  ;;  %v1512_v1 = vpop.f32.mrf.mxu0 }
 0x22f   :  { %v1731_v9 = vpop.f32.mrf.mxu3  ;;  %v1658_v60 = vadd.f32 %v1657_v32, %v1584_v58  ;;  %v1513_v3 = vadd.f32 %v1512_v1, %v3368_v46  ;;  %v1586_v19 = vpop.f32.mrf.mxu1 }
 0x231   :  { %v1732_v2 = vadd.f32 %v1731_v9, %v1658_v60  ;;  %v1587_v6 = vadd.f32 %v1586_v19, %v1513_v3 }
 0x233   :  { %1762 = vst [vmem:[%s3598_s2 + $0xb8] sm:$0xff] %v1732_v2 }
 0x236   :  { %v1660_v7 = vpop.f32.mrf.mxu2  ;;  %v1514_v8 = vpop.f32.mrf.mxu0 }
 0x237   :  { %v1734_v38 = vpop.f32.mrf.mxu3  ;;  %v1661_v11 = vadd.f32 %v1660_v7, %v1587_v6  ;;  %v1515_v54 = vadd.f32 %v1514_v8, %v3394_v13  ;;  %v1588_v34 = vpop.f32.mrf.mxu1 }
 0x239   :  { %v1735_v10 = vadd.f32 %v1734_v38, %v1661_v11  ;;  %v1589_v29 = vadd.f32 %v1588_v34, %v1515_v54 }
 0x23b   :  { %1763 = vst [vmem:[%s3598_s2 + $0xc0] sm:$0xff] %v1735_v10 }
 0x23e   :  { %v1662_v46 = vpop.f32.mrf.mxu2 }
 0x23f   :  { %v1663_v12 = vadd.f32 %v1662_v46, %v1589_v29  ;;  %v1736_v14 = vpop.f32.mrf.mxu3 }
 0x241   :  { %v1737_v15 = vadd.f32 %v1736_v14, %v1663_v12 }
 0x243   :  { %1764 = vst [vmem:[%s3598_s2 + $0xc8] sm:$0xff] %v1737_v15 }

// kernel: convnet_forward.9
= control target key start
LH: loop header
LB: loop body
LE: loop exit
PB: predicated region body
PF: predicated region fallthrough
CT: control target
= control target key end

     0   :  { %s1152_s1 = inlined_call_operand.vmem [shape: bf16[256,128], index: 1, kind: input, shape index: {}]   ;;  %s1153_s0 = inlined_call_operand.vmem [shape: bf16[256,256], index: 0, kind: input, shape index: {}]   ;;  %s1154_s2 = inlined_call_operand.vmem [shape: f32[256,128], index: 2, kind: output, shape index: {}]  }
   0x1   :  { %v776_v0 = vld [vmem:[%s1152_s1 + $0x38] sm:$0xff]  ;;  %v775_v2 = vld [vmem:[%s1152_s1 + $0x30] sm:$0xff]  ;;  %v774_v4 = vld [vmem:[%s1152_s1 + $0x28] sm:$0xff] }
   0x2   :  { %v784_v1 = vld [vmem:[%s1152_s1 + $0x78] sm:$0xff]  ;;  %331 = vmatpush.bf16.msra.mxu0 %v776_v0  ;;  %785 = vmatpush.bf16.msra.mxu2 %v776_v0  ;;  %v783_v3 = vld [vmem:[%s1152_s1 + $0x70] sm:$0xff]  ;;  %v782_v5 = vld [vmem:[%s1152_s1 + $0x68] sm:$0xff] }
   0x3   :  { %420 = vmatpush.bf16.msra.mxu1 %v784_v1  ;;  %793 = vmatpush.bf16.msra.mxu3 %v784_v1  ;;  %v773_v6 = vld [vmem:[%s1152_s1 + $0x20] sm:$0xff]  ;;  %v772_v8 = vld [vmem:[%s1152_s1 + $0x18] sm:$0xff]  ;;  %v771_v10 = vld [vmem:[%s1152_s1 + $0x10] sm:$0xff] }
   0x4   :  { %v781_v7 = vld [vmem:[%s1152_s1 + $0x60] sm:$0xff]  ;;  %v780_v9 = vld [vmem:[%s1152_s1 + $0x58] sm:$0xff]  ;;  %v779_v11 = vld [vmem:[%s1152_s1 + $0x50] sm:$0xff] }
   0x5   :  { %v770_v12 = vld [vmem:[%s1152_s1 + $0x8] sm:$0xff]  ;;  %v769_v14 = vld [vmem:[%s1152_s1] sm:$0xff]  ;;  %v555_v28 = vld [vmem:[%s1153_s0 + $0x10] sm:$0xf] }
   0x6   :  { %332 = vmatpush.bf16.msra.mxu0 %v775_v2  ;;  %786 = vmatpush.bf16.msra.mxu2 %v775_v2  ;;  %v778_v13 = vld [vmem:[%s1152_s1 + $0x48] sm:$0xff]  ;;  %v777_v15 = vld [vmem:[%s1152_s1 + $0x40] sm:$0xff]  ;;  %v740_v29 = vld [vmem:[%s1153_s0 + $0x14] sm:$0xf0] }
   0x7   :  { %421 = vmatpush.bf16.msra.mxu1 %v783_v3  ;;  %794 = vmatpush.bf16.msra.mxu3 %v783_v3  ;;  %v547_v16 = vld [vmem:[%s1153_s0] sm:$0xf]  ;;  %v738_v17 = vld [vmem:[%s1153_s0 + $0x4] sm:$0xf0]  ;;  %v737_v20 = vld [vmem:[%s1153_s0 + $0x4] sm:$0xf]  ;;  %v556_v36 = vor.u32 %v740_v29, %v555_v28 }
   0x8   :  { %v611_v18 = vld [vmem:[%s1153_s0 + $0x80] sm:$0xf]  ;;  %v754_v19 = vld [vmem:[%s1153_s0 + $0x84] sm:$0xf0]  ;;  %v549_v21 = vld [vmem:[%s1153_s0 + $0x8] sm:$0xf0]  ;;  %v548_v24 = vor.u32 %v738_v17, %v547_v16 }
   0x9   :  { %v753_v22 = vld [vmem:[%s1153_s0 + $0x84] sm:$0xf]  ;;  %v613_v23 = vld [vmem:[%s1153_s0 + $0x88] sm:$0xf0]  ;;  %v612_v25 = vor.u32 %v754_v19, %v611_v18  ;;  %v552_v26 = vor.u32 %v737_v20, %v549_v21  ;;  %v619_v30 = vld [vmem:[%s1153_s0 + $0x90] sm:$0xf] }
   0xa   :  { %333 = vmatpush.bf16.msra.mxu0 %v774_v4  ;;  %787 = vmatpush.bf16.msra.mxu2 %v774_v4  ;;  %v616_v27 = vor.u32 %v753_v22, %v613_v23  ;;  %v756_v31 = vld [vmem:[%s1153_s0 + $0x94] sm:$0xf0]  ;;  %v739_v32 = vld [vmem:[%s1153_s0 + $0x14] sm:$0xf]  ;;  %v557_v33 = vld [vmem:[%s1153_s0 + $0x18] sm:$0xf0] }
   0xb   :  { %422 = vmatpush.bf16.msra.mxu1 %v782_v5  ;;  %795 = vmatpush.bf16.msra.mxu3 %v782_v5  ;;  %v755_v34 = vld [vmem:[%s1153_s0 + $0x94] sm:$0xf]  ;;  %v621_v35 = vld [vmem:[%s1153_s0 + $0x98] sm:$0xf0]  ;;  %v620_v37 = vor.u32 %v756_v31, %v619_v30  ;;  %v560_v38 = vor.u32 %v739_v32, %v557_v33  ;;  %v563_v40 = vld [vmem:[%s1153_s0 + $0x20] sm:$0xf] }
   0xc   :  { %v624_v39 = vor.u32 %v755_v34, %v621_v35  ;;  %v742_v41 = vld [vmem:[%s1153_s0 + $0x24] sm:$0xf0]  ;;  %v627_v42 = vld [vmem:[%s1153_s0 + $0xa0] sm:$0xf]  ;;  %v741_v44 = vld [vmem:[%s1153_s0 + $0x24] sm:$0xf] }
   0xd   :  { %v758_v43 = vld [vmem:[%s1153_s0 + $0xa4] sm:$0xf0]  ;;  %v565_v45 = vld [vmem:[%s1153_s0 + $0x28] sm:$0xf0]  ;;  %v757_v46 = vld [vmem:[%s1153_s0 + $0xa4] sm:$0xf]  ;;  %v564_v48 = vor.u32 %v742_v41, %v563_v40 }
   0xe   :  { %334 = vmatpush.bf16.msra.mxu0 %v773_v6  ;;  %788 = vmatpush.bf16.msra.mxu2 %v773_v6  ;;  %v629_v47 = vld [vmem:[%s1153_s0 + $0xa8] sm:$0xf0]  ;;  %v628_v49 = vor.u32 %v758_v43, %v627_v42  ;;  %v568_v50 = vor.u32 %v741_v44, %v565_v45  ;;  %v571_v52 = vld [vmem:[%s1153_s0 + $0x30] sm:$0xf]  ;;  %v744_v53 = vld [vmem:[%s1153_s0 + $0x34] sm:$0xf0] }
   0xf   :  { %423 = vmatpush.bf16.msra.mxu1 %v781_v7  ;;  %796 = vmatpush.bf16.msra.mxu3 %v781_v7  ;;  %v632_v51 = vor.u32 %v757_v46, %v629_v47  ;;  %v635_v54 = vld [vmem:[%s1153_s0 + $0xb0] sm:$0xf]  ;;  %v760_v55 = vld [vmem:[%s1153_s0 + $0xb4] sm:$0xf0]  ;;  %v743_v56 = vld [vmem:[%s1153_s0 + $0x34] sm:$0xf]  ;;  %v572_v60 = vor.u32 %v744_v53, %v571_v52 }
  0x10   :  { %v573_v57 = vld [vmem:[%s1153_s0 + $0x38] sm:$0xf0]  ;;  %v759_v58 = vld [vmem:[%s1153_s0 + $0xb4] sm:$0xf]  ;;  %v636_v61 = vor.u32 %v760_v55, %v635_v54  ;;  %v579_v0 = vld [vmem:[%s1153_s0 + $0x40] sm:$0xf] }
  0x11   :  { %v637_v59 = vld [vmem:[%s1153_s0 + $0xb8] sm:$0xf0]  ;;  %v576_v62 = vor.u32 %v743_v56, %v573_v57  ;;  %v746_v1 = vld [vmem:[%s1153_s0 + $0x44] sm:$0xf0]  ;;  %v643_v2 = vld [vmem:[%s1153_s0 + $0xc0] sm:$0xf] }
  0x12   :  { %335 = vmatpush.bf16.msra.mxu0 %v772_v8  ;;  %789 = vmatpush.bf16.msra.mxu2 %v772_v8  ;;  %v640_v63 = vor.u32 %v759_v58, %v637_v59  ;;  %v762_v3 = vld [vmem:[%s1153_s0 + $0xc4] sm:$0xf0]  ;;  %v745_v4 = vld [vmem:[%s1153_s0 + $0x44] sm:$0xf]  ;;  %v581_v5 = vld [vmem:[%s1153_s0 + $0x48] sm:$0xf0]  ;;  %v580_v8 = vor.u32 %v746_v1, %v579_v0 }
  0x13   :  { %424 = vmatpush.bf16.msra.mxu1 %v780_v9  ;;  %797 = vmatpush.bf16.msra.mxu3 %v780_v9  ;;  %v761_v6 = vld [vmem:[%s1153_s0 + $0xc4] sm:$0xf]  ;;  %v645_v7 = vld [vmem:[%s1153_s0 + $0xc8] sm:$0xf0]  ;;  %v644_v9 = vor.u32 %v762_v3, %v643_v2  ;;  %v747_v16 = vld [vmem:[%s1153_s0 + $0x54] sm:$0xf] }
  0x14   :  { %v589_v17 = vld [vmem:[%s1153_s0 + $0x58] sm:$0xf0]  ;;  %v763_v18 = vld [vmem:[%s1153_s0 + $0xd4] sm:$0xf]  ;;  %v749_v28 = vld [vmem:[%s1153_s0 + $0x64] sm:$0xf] }
  0x15   :  { %v653_v19 = vld [vmem:[%s1153_s0 + $0xd8] sm:$0xf0]  ;;  %v592_v22 = vor.u32 %v747_v16, %v589_v17  ;;  %v597_v29 = vld [vmem:[%s1153_s0 + $0x68] sm:$0xf0]  ;;  %v765_v30 = vld [vmem:[%s1153_s0 + $0xe4] sm:$0xf] }
  0x16   :  { %336 = vmatpush.bf16.msra.mxu0 %v771_v10  ;;  %790 = vmatpush.bf16.msra.mxu2 %v771_v10  ;;  %v584_v10 = vor.u32 %v745_v4, %v581_v5  ;;  %v656_v23 = vor.u32 %v763_v18, %v653_v19  ;;  %v661_v31 = vld [vmem:[%s1153_s0 + $0xe8] sm:$0xf0]  ;;  %v600_v34 = vor.u32 %v749_v28, %v597_v29  ;;  %v751_v40 = vld [vmem:[%s1153_s0 + $0x74] sm:$0xf]  ;;  %v605_v41 = vld [vmem:[%s1153_s0 + $0x78] sm:$0xf0] }
  0x17   :  { %425 = vmatpush.bf16.msra.mxu1 %v779_v11  ;;  %798 = vmatpush.bf16.msra.mxu3 %v779_v11  ;;  %v648_v11 = vor.u32 %v761_v6, %v645_v7  ;;  %v664_v35 = vor.u32 %v765_v30, %v661_v31  ;;  %v767_v42 = vld [vmem:[%s1153_s0 + $0xf4] sm:$0xf]  ;;  %v669_v43 = vld [vmem:[%s1153_s0 + $0xf8] sm:$0xf0]  ;;  %v608_v46 = vor.u32 %v751_v40, %v605_v41 }
  0x18   :  { %v672_v47 = vor.u32 %v767_v42, %v669_v43 }
  0x1a   :  { %337 = vmatpush.bf16.msra.mxu0 %v770_v12  ;;  %791 = vmatpush.bf16.msra.mxu2 %v770_v12  ;;  %v587_v12 = vld [vmem:[%s1153_s0 + $0x50] sm:$0xf] }
  0x1b   :  { %426 = vmatpush.bf16.msra.mxu1 %v778_v13  ;;  %799 = vmatpush.bf16.msra.mxu3 %v778_v13  ;;  %v748_v13 = vld [vmem:[%s1153_s0 + $0x54] sm:$0xf0] }
  0x1c   :  { %v588_v20 = vor.u32 %v748_v13, %v587_v12 }
  0x1e   :  { %338 = vmatpush.bf16.msra.mxu0 %v769_v14  ;;  %792 = vmatpush.bf16.msra.mxu2 %v769_v14  ;;  %v651_v14 = vld [vmem:[%s1153_s0 + $0xd0] sm:$0xf] }
  0x1f   :  { %427 = vmatpush.bf16.msra.mxu1 %v777_v15  ;;  %800 = vmatpush.bf16.msra.mxu3 %v777_v15  ;;  %v764_v15 = vld [vmem:[%s1153_s0 + $0xd4] sm:$0xf0] }
  0x20   :  { %v652_v21 = vor.u32 %v764_v15, %v651_v14 }
  0x21   :  { %339 = vmatmul.bf16.vlgmr.msra.gmra.mxu0 %v548_v24  ;;  %379 = vmatmul.bf16.vlgmr.msra.gmra.mxu2 %v612_v25  ;;  %v595_v24 = vld [vmem:[%s1153_s0 + $0x60] sm:$0xf]  ;;  %v750_v25 = vld [vmem:[%s1153_s0 + $0x64] sm:$0xf0] }
  0x22   :  { %428 = vmatmul.bf16.vlgmr.msra.gmra.mxu1 %v552_v26  ;;  %468 = vmatmul.bf16.vlgmr.msra.gmra.mxu3 %v616_v27  ;;  %v659_v26 = vld [vmem:[%s1153_s0 + $0xe0] sm:$0xf]  ;;  %v766_v27 = vld [vmem:[%s1153_s0 + $0xe4] sm:$0xf0]  ;;  %v596_v32 = vor.u32 %v750_v25, %v595_v24 }
  0x23   :  { %v660_v33 = vor.u32 %v766_v27, %v659_v26 }
  0x31   :  { %344 = vmatmul.bf16.gmra.mxu0 %v556_v36  ;;  %384 = vmatmul.bf16.gmra.mxu2 %v620_v37  ;;  %v603_v36 = vld [vmem:[%s1153_s0 + $0x70] sm:$0xf]  ;;  %v752_v37 = vld [vmem:[%s1153_s0 + $0x74] sm:$0xf0] }
  0x32   :  { %433 = vmatmul.bf16.gmra.mxu1 %v560_v38  ;;  %473 = vmatmul.bf16.gmra.mxu3 %v624_v39  ;;  %v667_v38 = vld [vmem:[%s1153_s0 + $0xf0] sm:$0xf]  ;;  %v768_v39 = vld [vmem:[%s1153_s0 + $0xf4] sm:$0xf0]  ;;  %v604_v44 = vor.u32 %v752_v37, %v603_v36 }
  0x33   :  { %v668_v45 = vor.u32 %v768_v39, %v667_v38 }
  0x41   :  { %349 = vmatmul.bf16.gmra.mxu0 %v564_v48  ;;  %389 = vmatmul.bf16.gmra.mxu2 %v628_v49 }
  0x42   :  { %438 = vmatmul.bf16.gmra.mxu1 %v568_v50  ;;  %478 = vmatmul.bf16.gmra.mxu3 %v632_v51 }
  0x51   :  { %354 = vmatmul.bf16.gmra.mxu0 %v572_v60  ;;  %394 = vmatmul.bf16.gmra.mxu2 %v636_v61 }
  0x52   :  { %443 = vmatmul.bf16.gmra.mxu1 %v576_v62  ;;  %483 = vmatmul.bf16.gmra.mxu3 %v640_v63 }
  0x61   :  { %359 = vmatmul.bf16.gmra.mxu0 %v580_v8  ;;  %399 = vmatmul.bf16.gmra.mxu2 %v644_v9 }
  0x62   :  { %448 = vmatmul.bf16.gmra.mxu1 %v584_v10  ;;  %488 = vmatmul.bf16.gmra.mxu3 %v648_v11 }
  0x71   :  { %364 = vmatmul.bf16.gmra.mxu0 %v588_v20  ;;  %404 = vmatmul.bf16.gmra.mxu2 %v652_v21 }
  0x72   :  { %453 = vmatmul.bf16.gmra.mxu1 %v592_v22  ;;  %493 = vmatmul.bf16.gmra.mxu3 %v656_v23 }
  0x81   :  { %369 = vmatmul.bf16.gmra.mxu0 %v596_v32  ;;  %409 = vmatmul.bf16.gmra.mxu2 %v660_v33 }
  0x82   :  { %458 = vmatmul.bf16.gmra.mxu1 %v600_v34  ;;  %498 = vmatmul.bf16.gmra.mxu3 %v664_v35 }
  0x91   :  { %374 = vmatmul.bf16.gmra.mxu0 %v604_v44  ;;  %414 = vmatmul.bf16.gmra.mxu2 %v668_v45 }
  0x92   :  { %463 = vmatmul.bf16.gmra.mxu1 %v608_v46  ;;  %503 = vmatmul.bf16.gmra.mxu3 %v672_v47 }
  0x9e   :  { %v340_v48 = vpop.f32.mrf.mxu0 }
  0x9f   :  { %v429_v49 = vpop.f32.mrf.mxu1 }
  0xa0   :  { %v430_v50 = vadd.f32 %v429_v49, %v340_v48 }
  0xa2   :  { %509 = vst [vmem:[%s1154_s2] sm:$0xff] %v430_v50 }
  0xa4   :  { %v380_v51 = vpop.f32.mrf.mxu2 }
  0xa5   :  { %v469_v52 = vpop.f32.mrf.mxu3 }
  0xa6   :  { %v470_v53 = vadd.f32 %v469_v52, %v380_v51  ;;  %v342_v54 = vpop.f32.mrf.mxu0 }
  0xa7   :  { %v431_v55 = vpop.f32.mrf.mxu1 }
  0xa8   :  { %525 = vst [vmem:[%s1154_s2 + $0x80] sm:$0xff] %v470_v53  ;;  %v432_v56 = vadd.f32 %v431_v55, %v342_v54 }
  0xaa   :  { %510 = vst [vmem:[%s1154_s2 + $0x8] sm:$0xff] %v432_v56 }
  0xac   :  { %v382_v57 = vpop.f32.mrf.mxu2 }
  0xad   :  { %v471_v58 = vpop.f32.mrf.mxu3 }
  0xae   :  { %v472_v59 = vadd.f32 %v471_v58, %v382_v57  ;;  %v345_v60 = vpop.f32.mrf.mxu0 }
  0xaf   :  { %v434_v61 = vpop.f32.mrf.mxu1 }
  0xb0   :  { %526 = vst [vmem:[%s1154_s2 + $0x88] sm:$0xff] %v472_v59  ;;  %v435_v62 = vadd.f32 %v434_v61, %v345_v60 }
  0xb2   :  { %511 = vst [vmem:[%s1154_s2 + $0x10] sm:$0xff] %v435_v62 }
  0xb4   :  { %v385_v63 = vpop.f32.mrf.mxu2 }
  0xb5   :  { %v474_v0 = vpop.f32.mrf.mxu3 }
  0xb6   :  { %v475_v1 = vadd.f32 %v474_v0, %v385_v63  ;;  %v347_v2 = vpop.f32.mrf.mxu0 }
  0xb7   :  { %v436_v3 = vpop.f32.mrf.mxu1 }
  0xb8   :  { %527 = vst [vmem:[%s1154_s2 + $0x90] sm:$0xff] %v475_v1  ;;  %v437_v4 = vadd.f32 %v436_v3, %v347_v2 }
  0xba   :  { %512 = vst [vmem:[%s1154_s2 + $0x18] sm:$0xff] %v437_v4 }
  0xbc   :  { %v387_v5 = vpop.f32.mrf.mxu2 }
  0xbd   :  { %v476_v6 = vpop.f32.mrf.mxu3 }
  0xbe   :  { %v477_v7 = vadd.f32 %v476_v6, %v387_v5  ;;  %v350_v8 = vpop.f32.mrf.mxu0 }
  0xbf   :  { %v439_v9 = vpop.f32.mrf.mxu1 }
  0xc0   :  { %528 = vst [vmem:[%s1154_s2 + $0x98] sm:$0xff] %v477_v7  ;;  %v440_v10 = vadd.f32 %v439_v9, %v350_v8 }
  0xc2   :  { %513 = vst [vmem:[%s1154_s2 + $0x20] sm:$0xff] %v440_v10 }
  0xc4   :  { %v390_v11 = vpop.f32.mrf.mxu2 }
  0xc5   :  { %v479_v12 = vpop.f32.mrf.mxu3 }
  0xc6   :  { %v480_v13 = vadd.f32 %v479_v12, %v390_v11  ;;  %v352_v14 = vpop.f32.mrf.mxu0 }
  0xc7   :  { %v441_v15 = vpop.f32.mrf.mxu1 }
  0xc8   :  { %529 = vst [vmem:[%s1154_s2 + $0xa0] sm:$0xff] %v480_v13  ;;  %v442_v16 = vadd.f32 %v441_v15, %v352_v14 }
  0xca   :  { %514 = vst [vmem:[%s1154_s2 + $0x28] sm:$0xff] %v442_v16 }
  0xcc   :  { %v392_v17 = vpop.f32.mrf.mxu2 }
  0xcd   :  { %v481_v18 = vpop.f32.mrf.mxu3 }
  0xce   :  { %v482_v19 = vadd.f32 %v481_v18, %v392_v17  ;;  %v355_v20 = vpop.f32.mrf.mxu0 }
  0xcf   :  { %v444_v21 = vpop.f32.mrf.mxu1 }
  0xd0   :  { %530 = vst [vmem:[%s1154_s2 + $0xa8] sm:$0xff] %v482_v19  ;;  %v445_v22 = vadd.f32 %v444_v21, %v355_v20 }
  0xd2   :  { %515 = vst [vmem:[%s1154_s2 + $0x30] sm:$0xff] %v445_v22 }
  0xd4   :  { %v395_v23 = vpop.f32.mrf.mxu2 }
  0xd5   :  { %v484_v24 = vpop.f32.mrf.mxu3 }
  0xd6   :  { %v485_v25 = vadd.f32 %v484_v24, %v395_v23  ;;  %v357_v26 = vpop.f32.mrf.mxu0 }
  0xd7   :  { %v446_v27 = vpop.f32.mrf.mxu1 }
  0xd8   :  { %531 = vst [vmem:[%s1154_s2 + $0xb0] sm:$0xff] %v485_v25  ;;  %v447_v28 = vadd.f32 %v446_v27, %v357_v26 }
  0xda   :  { %516 = vst [vmem:[%s1154_s2 + $0x38] sm:$0xff] %v447_v28 }
  0xdc   :  { %v397_v29 = vpop.f32.mrf.mxu2 }
  0xdd   :  { %v486_v30 = vpop.f32.mrf.mxu3 }
  0xde   :  { %v487_v31 = vadd.f32 %v486_v30, %v397_v29  ;;  %v360_v32 = vpop.f32.mrf.mxu0 }
  0xdf   :  { %v449_v33 = vpop.f32.mrf.mxu1 }
  0xe0   :  { %532 = vst [vmem:[%s1154_s2 + $0xb8] sm:$0xff] %v487_v31  ;;  %v450_v34 = vadd.f32 %v449_v33, %v360_v32 }
  0xe2   :  { %517 = vst [vmem:[%s1154_s2 + $0x40] sm:$0xff] %v450_v34 }
  0xe4   :  { %v400_v35 = vpop.f32.mrf.mxu2 }
  0xe5   :  { %v489_v36 = vpop.f32.mrf.mxu3 }
  0xe6   :  { %v490_v37 = vadd.f32 %v489_v36, %v400_v35  ;;  %v362_v38 = vpop.f32.mrf.mxu0 }
  0xe7   :  { %v451_v39 = vpop.f32.mrf.mxu1 }
  0xe8   :  { %533 = vst [vmem:[%s1154_s2 + $0xc0] sm:$0xff] %v490_v37  ;;  %v452_v40 = vadd.f32 %v451_v39, %v362_v38 }
  0xea   :  { %518 = vst [vmem:[%s1154_s2 + $0x48] sm:$0xff] %v452_v40 }
  0xec   :  { %v402_v41 = vpop.f32.mrf.mxu2 }
  0xed   :  { %v491_v42 = vpop.f32.mrf.mxu3 }
  0xee   :  { %v492_v43 = vadd.f32 %v491_v42, %v402_v41  ;;  %v365_v44 = vpop.f32.mrf.mxu0 }
  0xef   :  { %v454_v45 = vpop.f32.mrf.mxu1 }
  0xf0   :  { %534 = vst [vmem:[%s1154_s2 + $0xc8] sm:$0xff] %v492_v43  ;;  %v455_v46 = vadd.f32 %v454_v45, %v365_v44 }
  0xf2   :  { %519 = vst [vmem:[%s1154_s2 + $0x50] sm:$0xff] %v455_v46 }
  0xf4   :  { %v405_v47 = vpop.f32.mrf.mxu2 }
  0xf5   :  { %v494_v48 = vpop.f32.mrf.mxu3 }
  0xf6   :  { %v495_v49 = vadd.f32 %v494_v48, %v405_v47  ;;  %v367_v50 = vpop.f32.mrf.mxu0 }
  0xf7   :  { %v456_v51 = vpop.f32.mrf.mxu1 }
  0xf8   :  { %535 = vst [vmem:[%s1154_s2 + $0xd0] sm:$0xff] %v495_v49  ;;  %v457_v52 = vadd.f32 %v456_v51, %v367_v50 }
  0xfa   :  { %520 = vst [vmem:[%s1154_s2 + $0x58] sm:$0xff] %v457_v52 }
  0xfc   :  { %v407_v53 = vpop.f32.mrf.mxu2 }
  0xfd   :  { %v496_v54 = vpop.f32.mrf.mxu3 }
  0xfe   :  { %v497_v55 = vadd.f32 %v496_v54, %v407_v53  ;;  %v370_v56 = vpop.f32.mrf.mxu0 }
  0xff   :  { %v459_v57 = vpop.f32.mrf.mxu1 }
 0x100   :  { %536 = vst [vmem:[%s1154_s2 + $0xd8] sm:$0xff] %v497_v55  ;;  %v460_v58 = vadd.f32 %v459_v57, %v370_v56 }
 0x102   :  { %521 = vst [vmem:[%s1154_s2 + $0x60] sm:$0xff] %v460_v58 }
 0x104   :  { %v410_v59 = vpop.f32.mrf.mxu2 }
 0x105   :  { %v499_v60 = vpop.f32.mrf.mxu3 }
 0x106   :  { %v500_v61 = vadd.f32 %v499_v60, %v410_v59  ;;  %v372_v62 = vpop.f32.mrf.mxu0 }
 0x107   :  { %v461_v63 = vpop.f32.mrf.mxu1 }
 0x108   :  { %537 = vst [vmem:[%s1154_s2 + $0xe0] sm:$0xff] %v500_v61  ;;  %v462_v0 = vadd.f32 %v461_v63, %v372_v62 }
 0x10a   :  { %522 = vst [vmem:[%s1154_s2 + $0x68] sm:$0xff] %v462_v0 }
 0x10c   :  { %v412_v1 = vpop.f32.mrf.mxu2 }
 0x10d   :  { %v501_v2 = vpop.f32.mrf.mxu3 }
 0x10e   :  { %v502_v3 = vadd.f32 %v501_v2, %v412_v1  ;;  %v375_v4 = vpop.f32.mrf.mxu0 }
 0x10f   :  { %v464_v5 = vpop.f32.mrf.mxu1 }
 0x110   :  { %538 = vst [vmem:[%s1154_s2 + $0xe8] sm:$0xff] %v502_v3  ;;  %v465_v6 = vadd.f32 %v464_v5, %v375_v4 }
 0x112   :  { %523 = vst [vmem:[%s1154_s2 + $0x70] sm:$0xff] %v465_v6 }
 0x114   :  { %v415_v7 = vpop.f32.mrf.mxu2 }
 0x115   :  { %v504_v8 = vpop.f32.mrf.mxu3 }
 0x116   :  { %v505_v9 = vadd.f32 %v504_v8, %v415_v7  ;;  %v377_v10 = vpop.f32.mrf.mxu0 }
 0x117   :  { %v466_v11 = vpop.f32.mrf.mxu1 }
 0x118   :  { %539 = vst [vmem:[%s1154_s2 + $0xf0] sm:$0xff] %v505_v9  ;;  %v467_v12 = vadd.f32 %v466_v11, %v377_v10 }
 0x11a   :  { %524 = vst [vmem:[%s1154_s2 + $0x78] sm:$0xff] %v467_v12 }
 0x11c   :  { %v417_v13 = vpop.f32.mrf.mxu2 }
 0x11d   :  { %v506_v14 = vpop.f32.mrf.mxu3 }
 0x11e   :  { %v507_v15 = vadd.f32 %v506_v14, %v417_v13 }
 0x120   :  { %540 = vst [vmem:[%s1154_s2 + $0xf8] sm:$0xff] %v507_v15 }

// kernel: convnet_forward.10
= control target key start
LH: loop header
LB: loop body
LE: loop exit
PB: predicated region body
PF: predicated region fallthrough
CT: control target
= control target key end

     0   :  { %vm362_vm0 = vcmask 523264   ;;  %s903_s1 = inlined_call_operand.vmem [shape: bf16[576,128], index: 1, kind: input, shape index: {}]   ;;  %s904_s0 = inlined_call_operand.vmem [shape: bf16[32,576], index: 0, kind: input, shape index: {}]   ;;  %s905_s2 = inlined_call_operand.vmem [shape: f32[32,128], index: 2, kind: output, shape index: {}]  }
   0x1   :  { %v675_v0 = vld [vmem:[%s903_s1 + $0x38] sm:$0xff]  ;;  %v674_v4 = vld [vmem:[%s903_s1 + $0x30] sm:$0xff]  ;;  %v673_v8 = vld [vmem:[%s903_s1 + $0x28] sm:$0xff] }
   0x2   :  { %v683_v1 = vld [vmem:[%s903_s1 + $0x78] sm:$0xff]  ;;  %369 = vmatpush.bf16.msra.mxu0 %v675_v0  ;;  %v682_v5 = vld [vmem:[%s903_s1 + $0x70] sm:$0xff]  ;;  %v681_v9 = vld [vmem:[%s903_s1 + $0x68] sm:$0xff] }
   0x3   :  { %v691_v2 = vld [vmem:[%s903_s1 + $0xb8] sm:$0xff]  ;;  %388 = vmatpush.bf16.msra.mxu1 %v683_v1  ;;  %v690_v6 = vld [vmem:[%s903_s1 + $0xb0] sm:$0xff]  ;;  %v689_v10 = vld [vmem:[%s903_s1 + $0xa8] sm:$0xff] }
   0x4   :  { %v699_v3 = vld [vmem:[%s903_s1 + $0xf8] sm:$0xff]  ;;  %407 = vmatpush.bf16.msra.mxu2 %v691_v2  ;;  %v698_v7 = vld [vmem:[%s903_s1 + $0xf0] sm:$0xff]  ;;  %v697_v11 = vld [vmem:[%s903_s1 + $0xe8] sm:$0xff] }
   0x5   :  { %426 = vmatpush.bf16.msra.mxu3 %v699_v3  ;;  %v672_v12 = vld [vmem:[%s903_s1 + $0x20] sm:$0xff]  ;;  %v671_v16 = vld [vmem:[%s903_s1 + $0x18] sm:$0xff]  ;;  %v670_v20 = vld [vmem:[%s903_s1 + $0x10] sm:$0xff] }
   0x6   :  { %370 = vmatpush.bf16.msra.mxu0 %v674_v4  ;;  %v680_v13 = vld [vmem:[%s903_s1 + $0x60] sm:$0xff]  ;;  %v679_v17 = vld [vmem:[%s903_s1 + $0x58] sm:$0xff]  ;;  %v678_v21 = vld [vmem:[%s903_s1 + $0x50] sm:$0xff] }
   0x7   :  { %389 = vmatpush.bf16.msra.mxu1 %v682_v5  ;;  %v688_v14 = vld [vmem:[%s903_s1 + $0xa0] sm:$0xff]  ;;  %v687_v18 = vld [vmem:[%s903_s1 + $0x98] sm:$0xff]  ;;  %v686_v22 = vld [vmem:[%s903_s1 + $0x90] sm:$0xff] }
   0x8   :  { %408 = vmatpush.bf16.msra.mxu2 %v690_v6  ;;  %v696_v15 = vld [vmem:[%s903_s1 + $0xe0] sm:$0xff]  ;;  %v695_v19 = vld [vmem:[%s903_s1 + $0xd8] sm:$0xff]  ;;  %v694_v23 = vld [vmem:[%s903_s1 + $0xd0] sm:$0xff] }
   0x9   :  { %427 = vmatpush.bf16.msra.mxu3 %v698_v7  ;;  %v669_v24 = vld [vmem:[%s903_s1 + $0x8] sm:$0xff]  ;;  %v668_v28 = vld [vmem:[%s903_s1] sm:$0xff]  ;;  %v660_v33 = vld [vmem:[%s904_s0 + $0x10] sm:$0xf0] }
   0xa   :  { %371 = vmatpush.bf16.msra.mxu0 %v673_v8  ;;  %v677_v25 = vld [vmem:[%s903_s1 + $0x48] sm:$0xff]  ;;  %v676_v29 = vld [vmem:[%s903_s1 + $0x40] sm:$0xff]  ;;  %v476_v35 = vld [vmem:[%s904_s0 + $0x14] sm:$0xf0] }
   0xb   :  { %390 = vmatpush.bf16.msra.mxu1 %v681_v9  ;;  %v685_v26 = vld [vmem:[%s903_s1 + $0x88] sm:$0xff]  ;;  %v684_v30 = vld [vmem:[%s903_s1 + $0x80] sm:$0xff]  ;;  %v661_v37 = vld [vmem:[%s904_s0 + $0x18] sm:$0xf0] }
   0xc   :  { %409 = vmatpush.bf16.msra.mxu2 %v689_v10  ;;  %v693_v27 = vld [vmem:[%s903_s1 + $0xc8] sm:$0xff]  ;;  %v692_v31 = vld [vmem:[%s903_s1 + $0xc0] sm:$0xff]  ;;  %v703_v40 = vld [vmem:[%s903_s1 + $0x118] sm:$0xff] }
   0xd   :  { %428 = vmatpush.bf16.msra.mxu3 %v697_v11  ;;  %v474_v32 = vld [vmem:[%s904_s0] sm:$0xf]  ;;  %v658_v34 = vld [vmem:[%s904_s0 + $0x4] sm:$0xf]  ;;  %v482_v36 = vld [vmem:[%s904_s0 + $0x8] sm:$0xf] }
   0xe   :  { %372 = vmatpush.bf16.msra.mxu0 %v672_v12  ;;  %v659_v38 = vld [vmem:[%s904_s0 + $0xc] sm:$0xf]  ;;  %v484_v39 = vld [vmem:[%s904_s0 + $0x1c] sm:$0xf0]  ;;  %v475_v41 = vor.u32 %v660_v33, %v474_v32  ;;  %v479_v42 = vor.u32 %v658_v34, %v476_v35  ;;  %v483_v43 = vor.u32 %v661_v37, %v482_v36  ;;  %v702_v45 = vld [vmem:[%s903_s1 + $0x110] sm:$0xff] }
   0xf   :  { %391 = vmatpush.bf16.msra.mxu1 %v680_v13  ;;  %v487_v44 = vor.u32 %v659_v38, %v484_v39  ;;  %v701_v46 = vld [vmem:[%s903_s1 + $0x108] sm:$0xff]  ;;  %v700_v47 = vld [vmem:[%s903_s1 + $0x100] sm:$0xff]  ;;  %v665_v49 = vld [vmem:[%s904_s0 + $0x38] sm:$0xf0] }
  0x10   :  { %410 = vmatpush.bf16.msra.mxu2 %v688_v14  ;;  %v494_v48 = vld [vmem:[%s904_s0 + $0x28] sm:$0xf]  ;;  %v663_v50 = vld [vmem:[%s904_s0 + $0x2c] sm:$0xf]  ;;  %v496_v51 = vld [vmem:[%s904_s0 + $0x3c] sm:$0xf0] }
  0x11   :  { %429 = vmatpush.bf16.msra.mxu3 %v696_v15  ;;  %v502_v52 = vld [vmem:[%s904_s0 + $0x30] sm:$0xf]  ;;  %v666_v53 = vld [vmem:[%s904_s0 + $0x40] sm:$0xf0]  ;;  %v664_v54 = vld [vmem:[%s904_s0 + $0x34] sm:$0xf]  ;;  %v495_v56 = vor.u32 %v665_v49, %v494_v48  ;;  %v499_v57 = vor.u32 %v663_v50, %v496_v51 }
  0x12   :  { %373 = vmatpush.bf16.msra.mxu0 %v671_v16  ;;  %v504_v55 = vld [vmem:[%s904_s0 + $0x44] sm:$0xf0]  ;;  %v503_v58 = vor.u32 %v666_v53, %v502_v52  ;;  %v490_v60 = vld [vmem:[%s904_s0 + $0x10] sm:$0xf]  ;;  %v662_v61 = vld [vmem:[%s904_s0 + $0x20] sm:$0xf0] }
  0x13   :  { %392 = vmatpush.bf16.msra.mxu1 %v679_v17  ;;  %v507_v59 = vor.u32 %v664_v54, %v504_v55  ;;  %v510_v62 = vld [vmem:[%s904_s0 + $0x38] sm:$0xf]  ;;  %v667_v63 = vld [vmem:[%s904_s0 + $0x48] sm:$0xf0]  ;;  %v491_v0 = vor.u32 %v662_v61, %v490_v60 }
  0x14   :  { %411 = vmatpush.bf16.msra.mxu2 %v687_v18  ;;  %v511_v1 = vor.u32 %v667_v63, %v510_v62 }
  0x15   :  { %430 = vmatpush.bf16.msra.mxu3 %v695_v19 }
  0x16   :  { %374 = vmatpush.bf16.msra.mxu0 %v670_v20 }
  0x17   :  { %393 = vmatpush.bf16.msra.mxu1 %v678_v21 }
  0x18   :  { %412 = vmatpush.bf16.msra.mxu2 %v686_v22 }
  0x19   :  { %431 = vmatpush.bf16.msra.mxu3 %v694_v23 }
  0x1a   :  { %375 = vmatpush.bf16.msra.mxu0 %v669_v24 }
  0x1b   :  { %394 = vmatpush.bf16.msra.mxu1 %v677_v25 }
  0x1c   :  { %413 = vmatpush.bf16.msra.mxu2 %v685_v26 }
  0x1d   :  { %432 = vmatpush.bf16.msra.mxu3 %v693_v27 }
  0x1e   :  { %376 = vmatpush.bf16.msra.mxu0 %v668_v28 }
  0x1f   :  { %395 = vmatpush.bf16.msra.mxu1 %v676_v29 }
  0x20   :  { %414 = vmatpush.bf16.msra.mxu2 %v684_v30 }
  0x21   :  { %433 = vmatpush.bf16.msra.mxu3 %v692_v31  ;;  %377 = vmatmul.bf16.vlgmr.msra.gmra.mxu0 %v475_v41 }
  0x22   :  { %449 = vmatpush.bf16.msrb.mxu0 %v703_v40  ;;  %396 = vmatmul.bf16.vlgmr.msra.gmra.mxu1 %v479_v42 }
  0x23   :  { %704 = vmatpush.bf16.msrb.mxu1 %v703_v40  ;;  %415 = vmatmul.bf16.vlgmr.msra.gmra.mxu2 %v483_v43 }
  0x24   :  { %434 = vmatmul.bf16.vlgmr.msra.gmra.mxu3 %v487_v44 }
  0x26   :  { %450 = vmatpush.bf16.msrb.mxu0 %v702_v45 }
  0x27   :  { %705 = vmatpush.bf16.msrb.mxu1 %v702_v45 }
  0x2a   :  { %451 = vmatpush.bf16.msrb.mxu0 %v701_v46 }
  0x2b   :  { %706 = vmatpush.bf16.msrb.mxu1 %v701_v46 }
  0x2e   :  { %452 = vmatpush.bf16.msrb.mxu0 %v700_v47 }
  0x2f   :  { %707 = vmatpush.bf16.msrb.mxu1 %v700_v47 }
  0x31   :  { %382 = vmatmul.bf16.gmra.mxu0 %v495_v56 }
  0x32   :  { %401 = vmatmul.bf16.gmra.mxu1 %v499_v57 }
  0x33   :  { %420 = vmatmul.bf16.gmra.mxu2 %v503_v58 }
  0x34   :  { %439 = vmatmul.bf16.gmra.mxu3 %v507_v59 }
  0x41   :  { %656 = vmatmul.msk.bf16.vlgmr.msrb.gmra.mxu0 %vm362_vm0, %v491_v0 }
  0x42   :  { %657 = vmatmul.msk.bf16.vlgmr.msrb.gmra.mxu1 %vm362_vm0, %v511_v1 }
  0x9e   :  { %v378_v2 = vpop.f32.mrf.mxu0 }
  0x9f   :  { %v397_v3 = vpop.f32.mrf.mxu1 }
  0xa0   :  { %v398_v15 = vadd.f32 %v397_v3, %v378_v2 }
  0xa6   :  { %v416_v4 = vpop.f32.mrf.mxu2  ;;  %v380_v6 = vpop.f32.mrf.mxu0 }
  0xa7   :  { %v435_v5 = vpop.f32.mrf.mxu3  ;;  %v399_v7 = vpop.f32.mrf.mxu1  ;;  %v417_v17 = vadd.f32 %v416_v4, %v398_v15 }
  0xa8   :  { %v400_v25 = vadd.f32 %v399_v7, %v380_v6 }
  0xa9   :  { %v436_v20 = vadd.f32 %v435_v5, %v417_v17 }
  0xae   :  { %v418_v8 = vpop.f32.mrf.mxu2  ;;  %v383_v9 = vpop.f32.mrf.mxu0 }
  0xaf   :  { %v402_v10 = vpop.f32.mrf.mxu1  ;;  %v437_v11 = vpop.f32.mrf.mxu3  ;;  %v419_v29 = vadd.f32 %v418_v8, %v400_v25 }
  0xb0   :  { %v403_v16 = vadd.f32 %v402_v10, %v383_v9 }
  0xb1   :  { %v438_v32 = vadd.f32 %v437_v11, %v419_v29 }
  0xb6   :  { %v421_v12 = vpop.f32.mrf.mxu2  ;;  %v385_v13 = vpop.f32.mrf.mxu0 }
  0xb7   :  { %v404_v14 = vpop.f32.mrf.mxu1  ;;  %v422_v18 = vadd.f32 %v421_v12, %v403_v16  ;;  %v440_v19 = vpop.f32.mrf.mxu3 }
  0xb8   :  { %v405_v26 = vadd.f32 %v404_v14, %v385_v13 }
  0xb9   :  { %v441_v21 = vadd.f32 %v440_v19, %v422_v18 }
  0xbe   :  { %v423_v22 = vpop.f32.mrf.mxu2  ;;  %v454_v23 = vpop.f32.mrf.mxu0 }
  0xbf   :  { %v459_v24 = vpop.f32.mrf.mxu1  ;;  %v455_v27 = vadd.f32 %v454_v23, %v436_v20  ;;  %v424_v30 = vadd.f32 %v423_v22, %v405_v26  ;;  %v442_v31 = vpop.f32.mrf.mxu3 }
  0xc0   :  { %v460_v28 = vadd.f32 %v459_v24, %v441_v21 }
  0xc1   :  { %464 = vst [vmem:[%s905_s2] sm:$0xff] %v455_v27  ;;  %v443_v33 = vadd.f32 %v442_v31, %v424_v30 }
  0xc2   :  { %466 = vst [vmem:[%s905_s2 + $0x10] sm:$0xff] %v460_v28 }
  0xc6   :  { %v456_v34 = vpop.f32.mrf.mxu0 }
  0xc7   :  { %v461_v35 = vpop.f32.mrf.mxu1  ;;  %v457_v36 = vadd.f32 %v456_v34, %v438_v32 }
  0xc8   :  { %v462_v37 = vadd.f32 %v461_v35, %v443_v33 }
  0xc9   :  { %465 = vst [vmem:[%s905_s2 + $0x8] sm:$0xff] %v457_v36 }
  0xca   :  { %467 = vst [vmem:[%s905_s2 + $0x18] sm:$0xff] %v462_v37 }

// kernel: convnet_forward.11
= control target key start
LH: loop header
LB: loop body
LE: loop exit
PB: predicated region body
PF: predicated region fallthrough
CT: control target
= control target key end

     0   :  { %s1708_s1 = inlined_call_operand.vmem [shape: bf16[1152,128], index: 1, kind: input, shape index: {}]   ;;  %s1709_s2 = inlined_call_operand.vmem [shape: f32[1,128], index: 2, kind: input, shape index: {}]   ;;  %s1710_s0 = inlined_call_operand.vmem [shape: bf16[16,1152], index: 0, kind: input, shape index: {}]   ;;  %s1711_s4 = inlined_call_operand.vmem [shape: f32[1,128], index: 4, kind: input, shape index: {}]   ;;  %s1712_s3 = inlined_call_operand.vmem [shape: bf16[128,128], index: 3, kind: input, shape index: {}]   ;;  %s1713_s5 = inlined_call_operand.vmem [shape: f32[16,128], index: 5, kind: output, shape index: {}]  }
   0x1   :  { %v1289_v0 = vld [vmem:[%s1708_s1 + $0x38] sm:$0xff]  ;;  %v1288_v4 = vld [vmem:[%s1708_s1 + $0x30] sm:$0xff]  ;;  %v1287_v8 = vld [vmem:[%s1708_s1 + $0x28] sm:$0xff] }
   0x2   :  { %v1305_v1 = vld [vmem:[%s1708_s1 + $0xb8] sm:$0xff]  ;;  %656 = vmatpush.bf16.msra.mxu0 %v1289_v0  ;;  %v1304_v5 = vld [vmem:[%s1708_s1 + $0xb0] sm:$0xff]  ;;  %v1303_v9 = vld [vmem:[%s1708_s1 + $0xa8] sm:$0xff] }
   0x3   :  { %v1297_v2 = vld [vmem:[%s1708_s1 + $0x78] sm:$0xff]  ;;  %684 = vmatpush.bf16.msra.mxu2 %v1305_v1  ;;  %v1296_v6 = vld [vmem:[%s1708_s1 + $0x70] sm:$0xff]  ;;  %v1295_v10 = vld [vmem:[%s1708_s1 + $0x68] sm:$0xff] }
   0x4   :  { %v1313_v3 = vld [vmem:[%s1708_s1 + $0xf8] sm:$0xff]  ;;  %670 = vmatpush.bf16.msra.mxu1 %v1297_v2  ;;  %v1312_v7 = vld [vmem:[%s1708_s1 + $0xf0] sm:$0xff]  ;;  %v1311_v11 = vld [vmem:[%s1708_s1 + $0xe8] sm:$0xff] }
   0x5   :  { %698 = vmatpush.bf16.msra.mxu3 %v1313_v3  ;;  %v1286_v12 = vld [vmem:[%s1708_s1 + $0x20] sm:$0xff]  ;;  %v1285_v16 = vld [vmem:[%s1708_s1 + $0x18] sm:$0xff]  ;;  %v1284_v20 = vld [vmem:[%s1708_s1 + $0x10] sm:$0xff] }
   0x6   :  { %657 = vmatpush.bf16.msra.mxu0 %v1288_v4  ;;  %v1302_v13 = vld [vmem:[%s1708_s1 + $0xa0] sm:$0xff]  ;;  %v1301_v17 = vld [vmem:[%s1708_s1 + $0x98] sm:$0xff]  ;;  %v1300_v21 = vld [vmem:[%s1708_s1 + $0x90] sm:$0xff] }
   0x7   :  { %685 = vmatpush.bf16.msra.mxu2 %v1304_v5  ;;  %v1294_v14 = vld [vmem:[%s1708_s1 + $0x60] sm:$0xff]  ;;  %v1293_v18 = vld [vmem:[%s1708_s1 + $0x58] sm:$0xff]  ;;  %v1292_v22 = vld [vmem:[%s1708_s1 + $0x50] sm:$0xff] }
   0x8   :  { %671 = vmatpush.bf16.msra.mxu1 %v1296_v6  ;;  %v1310_v15 = vld [vmem:[%s1708_s1 + $0xe0] sm:$0xff]  ;;  %v1309_v19 = vld [vmem:[%s1708_s1 + $0xd8] sm:$0xff]  ;;  %v1308_v23 = vld [vmem:[%s1708_s1 + $0xd0] sm:$0xff] }
   0x9   :  { %699 = vmatpush.bf16.msra.mxu3 %v1312_v7  ;;  %v1283_v24 = vld [vmem:[%s1708_s1 + $0x8] sm:$0xff]  ;;  %v1282_v28 = vld [vmem:[%s1708_s1] sm:$0xff]  ;;  %v1321_v30 = vld [vmem:[%s1708_s1 + $0x138] sm:$0xff] }
   0xa   :  { %658 = vmatpush.bf16.msra.mxu0 %v1287_v8  ;;  %v1299_v25 = vld [vmem:[%s1708_s1 + $0x88] sm:$0xff]  ;;  %v1298_v29 = vld [vmem:[%s1708_s1 + $0x80] sm:$0xff]  ;;  %v1337_v31 = vld [vmem:[%s1708_s1 + $0x1b8] sm:$0xff] }
   0xb   :  { %686 = vmatpush.bf16.msra.mxu2 %v1303_v9  ;;  %v1291_v26 = vld [vmem:[%s1708_s1 + $0x48] sm:$0xff]  ;;  %v1290_v32 = vld [vmem:[%s1708_s1 + $0x40] sm:$0xff]  ;;  %v1329_v38 = vld [vmem:[%s1708_s1 + $0x178] sm:$0xff] }
   0xc   :  { %672 = vmatpush.bf16.msra.mxu1 %v1295_v10  ;;  %v1307_v27 = vld [vmem:[%s1708_s1 + $0xc8] sm:$0xff]  ;;  %v1306_v33 = vld [vmem:[%s1708_s1 + $0xc0] sm:$0xff]  ;;  %v1345_v39 = vld [vmem:[%s1708_s1 + $0x1f8] sm:$0xff] }
   0xd   :  { %700 = vmatpush.bf16.msra.mxu3 %v1311_v11  ;;  %v919_v34 = vld [vmem:[%s1710_s0] sm:$0xf]  ;;  %v1277_v35 = vld [vmem:[%s1710_s0 + $0x20] sm:$0xf0]  ;;  %v927_v36 = vld [vmem:[%s1710_s0 + $0x8] sm:$0xf] }
   0xe   :  { %659 = vmatpush.bf16.msra.mxu0 %v1286_v12  ;;  %v1278_v37 = vld [vmem:[%s1710_s0 + $0x28] sm:$0xf0]  ;;  %v1273_v40 = vld [vmem:[%s1710_s0 + $0x4] sm:$0xf]  ;;  %v921_v41 = vld [vmem:[%s1710_s0 + $0x24] sm:$0xf0]  ;;  %v920_v44 = vor.u32 %v1277_v35, %v919_v34 }
   0xf   :  { %687 = vmatpush.bf16.msra.mxu2 %v1302_v13  ;;  %v1274_v42 = vld [vmem:[%s1710_s0 + $0xc] sm:$0xf]  ;;  %v929_v43 = vld [vmem:[%s1710_s0 + $0x2c] sm:$0xf0]  ;;  %v928_v45 = vor.u32 %v1278_v37, %v927_v36  ;;  %v924_v48 = vor.u32 %v1273_v40, %v921_v41  ;;  %v1318_v56 = vld [vmem:[%s1708_s1 + $0x120] sm:$0xff] }
  0x10   :  { %673 = vmatpush.bf16.msra.mxu1 %v1294_v14  ;;  %v1320_v46 = vld [vmem:[%s1708_s1 + $0x130] sm:$0xff]  ;;  %v932_v49 = vor.u32 %v1274_v42, %v929_v43  ;;  %v1319_v52 = vld [vmem:[%s1708_s1 + $0x128] sm:$0xff]  ;;  %v1334_v57 = vld [vmem:[%s1708_s1 + $0x1a0] sm:$0xff] }
  0x11   :  { %701 = vmatpush.bf16.msra.mxu3 %v1310_v15  ;;  %v1336_v47 = vld [vmem:[%s1708_s1 + $0x1b0] sm:$0xff]  ;;  %v1335_v53 = vld [vmem:[%s1708_s1 + $0x1a8] sm:$0xff]  ;;  %v1326_v58 = vld [vmem:[%s1708_s1 + $0x160] sm:$0xff] }
  0x12   :  { %660 = vmatpush.bf16.msra.mxu0 %v1285_v16  ;;  %v1328_v50 = vld [vmem:[%s1708_s1 + $0x170] sm:$0xff]  ;;  %v1327_v54 = vld [vmem:[%s1708_s1 + $0x168] sm:$0xff]  ;;  %v1342_v59 = vld [vmem:[%s1708_s1 + $0x1e0] sm:$0xff] }
  0x13   :  { %688 = vmatpush.bf16.msra.mxu2 %v1301_v17  ;;  %v1344_v51 = vld [vmem:[%s1708_s1 + $0x1f0] sm:$0xff]  ;;  %v1343_v55 = vld [vmem:[%s1708_s1 + $0x1e8] sm:$0xff]  ;;  %v1317_v60 = vld [vmem:[%s1708_s1 + $0x118] sm:$0xff] }
  0x14   :  { %674 = vmatpush.bf16.msra.mxu1 %v1293_v18  ;;  %v1333_v61 = vld [vmem:[%s1708_s1 + $0x198] sm:$0xff]  ;;  %v1316_v0 = vld [vmem:[%s1708_s1 + $0x110] sm:$0xff]  ;;  %v1315_v4 = vld [vmem:[%s1708_s1 + $0x108] sm:$0xff] }
  0x15   :  { %702 = vmatpush.bf16.msra.mxu3 %v1309_v19  ;;  %v1325_v62 = vld [vmem:[%s1708_s1 + $0x158] sm:$0xff]  ;;  %v1332_v1 = vld [vmem:[%s1708_s1 + $0x190] sm:$0xff]  ;;  %v1331_v5 = vld [vmem:[%s1708_s1 + $0x188] sm:$0xff] }
  0x16   :  { %661 = vmatpush.bf16.msra.mxu0 %v1284_v20  ;;  %v1341_v63 = vld [vmem:[%s1708_s1 + $0x1d8] sm:$0xff]  ;;  %v1324_v2 = vld [vmem:[%s1708_s1 + $0x150] sm:$0xff]  ;;  %v1323_v6 = vld [vmem:[%s1708_s1 + $0x148] sm:$0xff] }
  0x17   :  { %689 = vmatpush.bf16.msra.mxu2 %v1300_v21  ;;  %v1340_v3 = vld [vmem:[%s1708_s1 + $0x1d0] sm:$0xff]  ;;  %v1339_v7 = vld [vmem:[%s1708_s1 + $0x1c8] sm:$0xff]  ;;  %v1314_v8 = vld [vmem:[%s1708_s1 + $0x100] sm:$0xff] }
  0x18   :  { %675 = vmatpush.bf16.msra.mxu1 %v1292_v22  ;;  %v1330_v9 = vld [vmem:[%s1708_s1 + $0x180] sm:$0xff]  ;;  %v1353_v10 = vld [vmem:[%s1708_s1 + $0x238] sm:$0xff]  ;;  %v935_v11 = vld [vmem:[%s1710_s0 + $0x10] sm:$0xf] }
  0x19   :  { %703 = vmatpush.bf16.msra.mxu3 %v1308_v23  ;;  %v1279_v12 = vld [vmem:[%s1710_s0 + $0x30] sm:$0xf0]  ;;  %v943_v13 = vld [vmem:[%s1710_s0 + $0x18] sm:$0xf]  ;;  %v1280_v14 = vld [vmem:[%s1710_s0 + $0x38] sm:$0xf0] }
  0x1a   :  { %662 = vmatpush.bf16.msra.mxu0 %v1283_v24  ;;  %v1322_v15 = vld [vmem:[%s1708_s1 + $0x140] sm:$0xff]  ;;  %v1275_v17 = vld [vmem:[%s1710_s0 + $0x14] sm:$0xf]  ;;  %v937_v18 = vld [vmem:[%s1710_s0 + $0x34] sm:$0xf0]  ;;  %v936_v21 = vor.u32 %v1279_v12, %v935_v11  ;;  %v944_v22 = vor.u32 %v1280_v14, %v943_v13 }
  0x1b   :  { %690 = vmatpush.bf16.msra.mxu2 %v1299_v25  ;;  %v1338_v16 = vld [vmem:[%s1708_s1 + $0x1c0] sm:$0xff]  ;;  %v1276_v19 = vld [vmem:[%s1710_s0 + $0x1c] sm:$0xf]  ;;  %v940_v23 = vor.u32 %v1275_v17, %v937_v18  ;;  %v1352_v25 = vld [vmem:[%s1708_s1 + $0x230] sm:$0xff] }
  0x1c   :  { %676 = vmatpush.bf16.msra.mxu1 %v1291_v26  ;;  %v945_v20 = vld [vmem:[%s1710_s0 + $0x3c] sm:$0xf0]  ;;  %v1351_v26 = vld [vmem:[%s1708_s1 + $0x228] sm:$0xff]  ;;  %v1361_v35 = vld [vmem:[%s1712_s3 + $0x38] sm:$0xff] }
  0x1d   :  { %704 = vmatpush.bf16.msra.mxu3 %v1307_v27  ;;  %v948_v24 = vor.u32 %v1276_v19, %v945_v20  ;;  %v1350_v27 = vld [vmem:[%s1708_s1 + $0x220] sm:$0xff]  ;;  %v1360_v36 = vld [vmem:[%s1712_s3 + $0x30] sm:$0xff]  ;;  %v1359_v37 = vld [vmem:[%s1712_s3 + $0x28] sm:$0xff] }
  0x1e   :  { %663 = vmatpush.bf16.msra.mxu0 %v1282_v28  ;;  %v1349_v28 = vld [vmem:[%s1708_s1 + $0x218] sm:$0xff]  ;;  %v1356_v43 = vld [vmem:[%s1712_s3 + $0x10] sm:$0xff]  ;;  %v1363_v19 = vld [vmem:[%s1711_s4] ss:$0 sm:$0xff] }
  0x1f   :  { %691 = vmatpush.bf16.msra.mxu2 %v1298_v29  ;;  %v1348_v29 = vld [vmem:[%s1708_s1 + $0x210] sm:$0xff]  ;;  %v1357_v40 = vld [vmem:[%s1712_s3 + $0x18] sm:$0xff] }
  0x20   :  { %677 = vmatpush.bf16.msra.mxu1 %v1290_v32  ;;  %v951_v32 = vld [vmem:[%s1710_s0 + $0x20] sm:$0xf] }
  0x21   :  { %705 = vmatpush.bf16.msra.mxu3 %v1306_v33  ;;  %664 = vmatmul.bf16.vlgmr.msra.gmra.mxu0 %v920_v44  ;;  %v1281_v33 = vld [vmem:[%s1710_s0 + $0x40] sm:$0xf0] }
  0x22   :  { %712 = vmatpush.bf16.msrb.mxu0 %v1321_v30  ;;  %692 = vmatmul.bf16.vlgmr.msra.gmra.mxu2 %v928_v45  ;;  %v1347_v30 = vld [vmem:[%s1708_s1 + $0x208] sm:$0xff]  ;;  %v952_v34 = vor.u32 %v1281_v33, %v951_v32  ;;  %v1362_v45 = vld [vmem:[%s1709_s2] ss:$0 sm:$0xff] }
  0x23   :  { %740 = vmatpush.bf16.msrb.mxu2 %v1337_v31  ;;  %678 = vmatmul.bf16.vlgmr.msra.gmra.mxu1 %v924_v48  ;;  %v1346_v31 = vld [vmem:[%s1708_s1 + $0x200] sm:$0xff] }
  0x24   :  { %726 = vmatpush.bf16.msrb.mxu1 %v1329_v38  ;;  %706 = vmatmul.bf16.vlgmr.msra.gmra.mxu3 %v932_v49  ;;  %v1358_v38 = vld [vmem:[%s1712_s3 + $0x20] sm:$0xff] }
  0x25   :  { %754 = vmatpush.bf16.msrb.mxu3 %v1345_v39 }
  0x26   :  { %713 = vmatpush.bf16.msrb.mxu0 %v1320_v46 }
  0x27   :  { %741 = vmatpush.bf16.msrb.mxu2 %v1336_v47  ;;  %v1355_v47 = vld [vmem:[%s1712_s3 + $0x8] sm:$0xff] }
  0x28   :  { %727 = vmatpush.bf16.msrb.mxu1 %v1328_v50  ;;  %v1354_v50 = vld [vmem:[%s1712_s3] sm:$0xff] }
  0x29   :  { %755 = vmatpush.bf16.msrb.mxu3 %v1344_v51 }
  0x2a   :  { %714 = vmatpush.bf16.msrb.mxu0 %v1319_v52 }
  0x2b   :  { %742 = vmatpush.bf16.msrb.mxu2 %v1335_v53 }
  0x2c   :  { %728 = vmatpush.bf16.msrb.mxu1 %v1327_v54 }
  0x2d   :  { %756 = vmatpush.bf16.msrb.mxu3 %v1343_v55 }
  0x2e   :  { %715 = vmatpush.bf16.msrb.mxu0 %v1318_v56 }
  0x2f   :  { %743 = vmatpush.bf16.msrb.mxu2 %v1334_v57 }
  0x30   :  { %729 = vmatpush.bf16.msrb.mxu1 %v1326_v58 }
  0x31   :  { %757 = vmatpush.bf16.msrb.mxu3 %v1342_v59 }
  0x32   :  { %716 = vmatpush.bf16.msrb.mxu0 %v1317_v60 }
  0x33   :  { %744 = vmatpush.bf16.msrb.mxu2 %v1333_v61 }
  0x34   :  { %730 = vmatpush.bf16.msrb.mxu1 %v1325_v62 }
  0x35   :  { %758 = vmatpush.bf16.msrb.mxu3 %v1341_v63 }
  0x36   :  { %717 = vmatpush.bf16.msrb.mxu0 %v1316_v0 }
  0x37   :  { %745 = vmatpush.bf16.msrb.mxu2 %v1332_v1 }
  0x38   :  { %731 = vmatpush.bf16.msrb.mxu1 %v1324_v2 }
  0x39   :  { %759 = vmatpush.bf16.msrb.mxu3 %v1340_v3 }
  0x3a   :  { %718 = vmatpush.bf16.msrb.mxu0 %v1315_v4 }
  0x3b   :  { %746 = vmatpush.bf16.msrb.mxu2 %v1331_v5 }
  0x3c   :  { %732 = vmatpush.bf16.msrb.mxu1 %v1323_v6 }
  0x3d   :  { %760 = vmatpush.bf16.msrb.mxu3 %v1339_v7 }
  0x3e   :  { %719 = vmatpush.bf16.msrb.mxu0 %v1314_v8 }
  0x3f   :  { %747 = vmatpush.bf16.msrb.mxu2 %v1330_v9 }
  0x40   :  { %733 = vmatpush.bf16.msrb.mxu1 %v1322_v15 }
  0x41   :  { %761 = vmatpush.bf16.msrb.mxu3 %v1338_v16  ;;  %720 = vmatmul.bf16.vlgmr.msrb.gmra.mxu0 %v936_v21 }
  0x42   :  { %768 = vmatpush.bf16.msra.mxu0 %v1353_v10  ;;  %748 = vmatmul.bf16.vlgmr.msrb.gmra.mxu2 %v944_v22 }
  0x43   :  { %734 = vmatmul.bf16.vlgmr.msrb.gmra.mxu1 %v940_v23 }
  0x44   :  { %762 = vmatmul.bf16.vlgmr.msrb.gmra.mxu3 %v948_v24  ;;  %853 = vmatpush.bf16.msra.mxu1 %v1361_v35 }
  0x46   :  { %769 = vmatpush.bf16.msra.mxu0 %v1352_v25 }
  0x48   :  { %854 = vmatpush.bf16.msra.mxu1 %v1360_v36 }
  0x4a   :  { %770 = vmatpush.bf16.msra.mxu0 %v1351_v26 }
  0x4c   :  { %855 = vmatpush.bf16.msra.mxu1 %v1359_v37 }
  0x4e   :  { %771 = vmatpush.bf16.msra.mxu0 %v1350_v27 }
  0x50   :  { %856 = vmatpush.bf16.msra.mxu1 %v1358_v38 }
  0x52   :  { %772 = vmatpush.bf16.msra.mxu0 %v1349_v28 }
  0x54   :  { %857 = vmatpush.bf16.msra.mxu1 %v1357_v40 }
  0x56   :  { %773 = vmatpush.bf16.msra.mxu0 %v1348_v29 }
  0x58   :  { %858 = vmatpush.bf16.msra.mxu1 %v1356_v43 }
  0x5a   :  { %774 = vmatpush.bf16.msra.mxu0 %v1347_v30 }
  0x5c   :  { %859 = vmatpush.bf16.msra.mxu1 %v1355_v47 }
  0x5e   :  { %775 = vmatpush.bf16.msra.mxu0 %v1346_v31 }
  0x60   :  { %860 = vmatpush.bf16.msra.mxu1 %v1354_v50 }
  0x61   :  { %776 = vmatmul.bf16.vlgmr.msra.gmra.mxu0 %v952_v34 }
  0x9e   :  { %v665_v39 = vpop.f32.mrf.mxu0 }
  0x9f   :  { %v666_v48 = vadd.f32 %v1362_v45, %v665_v39 }
  0xa0   :  { %v679_v41 = vpop.f32.mrf.mxu1 }
  0xa1   :  { %v680_v52 = vadd.f32 %v679_v41, %v666_v48 }
  0xa5   :  { %v693_v42 = vpop.f32.mrf.mxu2 }
  0xa6   :  { %v667_v44 = vpop.f32.mrf.mxu0  ;;  %v694_v56 = vadd.f32 %v693_v42, %v680_v52 }
  0xa7   :  { %v707_v46 = vpop.f32.mrf.mxu3  ;;  %v668_v54 = vadd.f32 %v1362_v45, %v667_v44 }
  0xa8   :  { %v681_v49 = vpop.f32.mrf.mxu1  ;;  %v708_v59 = vadd.f32 %v707_v46, %v694_v56 }
  0xa9   :  { %v682_v57 = vadd.f32 %v681_v49, %v668_v54 }
  0xad   :  { %v695_v51 = vpop.f32.mrf.mxu2 }
  0xae   :  { %v696_v61 = vadd.f32 %v695_v51, %v682_v57 }
  0xaf   :  { %v709_v55 = vpop.f32.mrf.mxu3 }
  0xb0   :  { %v710_v1 = vadd.f32 %v709_v55, %v696_v61 }
  0xbe   :  { %v721_v53 = vpop.f32.mrf.mxu0 }
  0xbf   :  { %v722_v63 = vadd.f32 %v721_v53, %v708_v59 }
  0xc0   :  { %v735_v58 = vpop.f32.mrf.mxu1 }
  0xc1   :  { %v736_v2 = vadd.f32 %v735_v58, %v722_v63 }
  0xc5   :  { %v749_v60 = vpop.f32.mrf.mxu2 }
  0xc6   :  { %v723_v62 = vpop.f32.mrf.mxu0  ;;  %v750_v7 = vadd.f32 %v749_v60, %v736_v2 }
  0xc7   :  { %v763_v0 = vpop.f32.mrf.mxu3  ;;  %v724_v3 = vadd.f32 %v723_v62, %v710_v1 }
  0xc8   :  { %v737_v4 = vpop.f32.mrf.mxu1  ;;  %v764_v11 = vadd.f32 %v763_v0, %v750_v7 }
  0xc9   :  { %v738_v8 = vadd.f32 %v737_v4, %v724_v3 }
  0xcd   :  { %v751_v5 = vpop.f32.mrf.mxu2 }
  0xce   :  { %v752_v9 = vadd.f32 %v751_v5, %v738_v8 }
  0xcf   :  { %v765_v10 = vpop.f32.mrf.mxu3 }
  0xd0   :  { %v766_v12 = vadd.f32 %v765_v10, %v752_v9 }
  0xde   :  { %v777_v6 = vpop.f32.mrf.mxu0 }
  0xdf   :  { %v778_v13 = vadd.f32 %v777_v6, %v764_v11 }
  0xe1   :  { %v782_v16 = vmax.f32 %v778_v13, 0.0 }
  0xe6   :  { %v779_v14 = vpop.f32.mrf.mxu0 }
  0xe7   :  { %v780_v15 = vadd.f32 %v779_v14, %v766_v12 }
  0xe9   :  { %v783_v17 = vmax.f32 %v780_v15, 0.0 }
  0xeb   :  { %v784_v18 = vpack.c.bf16 %v783_v17, %v782_v16 }
  0xed   :  { %861 = vmatmul.bf16.vlgmr.msra.gmra.mxu1 %v784_v18 }
 0x16a   :  { %v862_v20 = vpop.f32.mrf.mxu1 }
 0x16b   :  { %v863_v21 = vadd.f32 %v1363_v19, %v862_v20 }
 0x16d   :  { %867 = vmax.xlane.f32.xlu0 %v863_v21 }
 0x172   :  { %v864_v22 = vpop.f32.mrf.mxu1 }
 0x173   :  { %v865_v23 = vadd.f32 %v1363_v19, %v864_v22 }
 0x175   :  { %869 = vmax.xlane.f32.xlu0 %v865_v23 }
 0x1e0   :  { %v868_v24 = vpop.xlane.xlu0 %867 }
 0x1e1   :  { %v871_v25 = vsub.f32 %v863_v21, %v868_v24 }
 0x1e3   :  { %v873_v26 = vmul.f32 1.442695, %v871_v25 }
 0x1e5   :  { %1364 = vpow2.f32 %v873_v26 }
 0x1e8   :  { %v870_v27 = vpop.xlane.xlu0 %869 }
 0x1e9   :  { %v872_v28 = vsub.f32 %v865_v23, %v870_v27 }
 0x1eb   :  { %v1365_v29 = vpop.eup %1364  ;;  %v875_v30 = vmul.f32 1.442695, %v872_v28 }
 0x1ec   :  { %877 = vadd.xlane.f32.xlu1 %v1365_v29 }
 0x1ed   :  { %1366 = vpow2.f32 %v875_v30 }
 0x1f3   :  { %v1367_v31 = vpop.eup %1366 }
 0x1f4   :  { %879 = vadd.xlane.f32.xlu1 %v1367_v31 }
 0x25f   :  { %v878_v32 = vpop.xlane.xlu1 %877 }
 0x260   :  { %1368 = vrcp.f32 %v878_v32  ;;  %v892_v37 = vand.u32 2147483648, %v878_v32  ;;  %v890_v39 = vand.u32 2147483647, %v878_v32  ;;  %vm886_vm1 = vweird.f32 %v878_v32 }
 0x262   :  { %v893_v42 = vor.u32 1.1754944e-38, %v892_v37  ;;  %vm891_vm3 = vcmp.eq.f32.partialorder %v890_v39, 8.507059e+37 }
 0x266   :  { %v1369_v33 = vpop.eup %1368 }
 0x267   :  { %v882_v34 = vmul.f32 %v1369_v33, %v878_v32  ;;  %v880_v35 = vpop.xlane.xlu1 %879  ;;  %vm887_vm0 = vweird.f32 %v1369_v33 }
 0x268   :  { %1370 = vrcp.f32 %v880_v35  ;;  %vm888_vm2 = vmor %vm886_vm1, %vm887_vm0  ;;  %v907_v48 = vand.u32 2147483648, %v880_v35  ;;  %v905_v50 = vand.u32 2147483647, %v880_v35  ;;  %vm901_vm5 = vweird.f32 %v880_v35 }
 0x269   :  { %v883_v36 = vsub.f32 1.0, %v882_v34 }
 0x26a   :  { %v908_v52 = vor.u32 1.1754944e-38, %v907_v48  ;;  %vm906_vm7 = vcmp.eq.f32.partialorder %v905_v50, 8.507059e+37 }
 0x26b   :  { %v884_v38 = vmul.f32 %v1369_v33, %v883_v36 }
 0x26d   :  { %v885_v40 = vadd.f32 %v1369_v33, %v884_v38 }
 0x26e   :  { %v1371_v41 = vpop.eup %1370 }
 0x26f   :  { %v889_v43 = vsel %vm888_vm2, %v1369_v33, %v885_v40  ;;  %v897_v44 = vmul.f32 %v1371_v41, %v880_v35  ;;  %vm902_vm4 = vweird.f32 %v1371_v41 }
 0x270   :  { %v894_v45 = vsel %vm891_vm3, %v893_v42, %v889_v43  ;;  %vm903_vm6 = vmor %vm901_vm5, %vm902_vm4 }
 0x271   :  { %v895_v46 = vmul.f32 %v1365_v29, %v894_v45  ;;  %v898_v47 = vsub.f32 1.0, %v897_v44 }
 0x273   :  { %911 = vst [vmem:[%s1713_s5] sm:$0xff] %v895_v46  ;;  %v899_v49 = vmul.f32 %v1371_v41, %v898_v47 }
 0x275   :  { %v900_v51 = vadd.f32 %v1371_v41, %v899_v49 }
 0x277   :  { %v904_v53 = vsel %vm903_vm6, %v1371_v41, %v900_v51 }
 0x278   :  { %v909_v54 = vsel %vm906_vm7, %v908_v52, %v904_v53 }
 0x279   :  { %v910_v55 = vmul.f32 %v1367_v31, %v909_v54 }
 0x27b   :  { %912 = vst [vmem:[%s1713_s5 + $0x8] sm:$0xff] %v910_v55 }

</bundles_post_ra>
